<compile_context>
chip_gen: v6e
topology: v6e:2x2x1
jax: 0.10.0
libtpu: 0.0.40
codegen_flags: <defaults>
</compile_context>

<pallas_src>
import math
import functools

import jax
import jax.numpy as jnp
from jax import lax
from jax.experimental import pallas as pl
from jax.experimental.pallas import tpu as pltpu

# Keep kernel numerics aligned with the XLA reference (full fp32 MXU passes).
_PREC = lax.Precision.HIGHEST


def _torch_norm(x, alpha, bias, d, eps=1e-6):
    # x: (N, D); alpha, bias: (1, D).  torch std() is unbiased (ddof=1).
    mean = jnp.mean(x, axis=-1, keepdims=True)
    var = jnp.sum((x - mean) ** 2, axis=-1, keepdims=True) * (1.0 / (d - 1))
    inv = 1.0 / (jnp.sqrt(var) + eps)
    return alpha * (x - mean) * inv + bias


def _encoder_layer_kernel(
    q_ref, k_ref, mask_ref,
    norm_ref,                 # (6, D)  rows: a_q, b_q, a_k, b_k, a_qa, b_qa
    wq_ref,                   # (D+1, D)     last row = bias
    wkv_ref,                  # (D+1, 2D)    last row = [bk | bv]
    wo_ref,                   # (D+1, D)     last row = bias
    w1_ref,                   # (D+1, D_FF)  last row = bias
    w2_ref,                   # (D_FF+1, D)  last row = bias
    o_ref,
    *, heads, d_k, d_model, bt, seq_len, compute_dtype,
):
    D = d_model
    L = seq_len
    cd = compute_dtype

    def mm(a, b):
        return jnp.dot(a.astype(cd), b.astype(cd),
                       preferred_element_type=jnp.float32, precision=_PREC)

    def mm_nt(a, b):
        # a @ b.T without materializing a transpose (contract last dims).
        return lax.dot_general(a.astype(cd), b.astype(cd),
                               (((1,), (1,)), ((), ())),
                               preferred_element_type=jnp.float32,
                               precision=_PREC)

    x_q = q_ref[...]                      # (bt*L, D)
    x_k = k_ref[...]                      # (bt*L, D)

    norm_ab = norm_ref[...]               # (6, D)
    a_q, b_q = norm_ab[0:1], norm_ab[1:2]
    a_k, b_k = norm_ab[2:3], norm_ab[3:4]
    a_qa, b_qa = norm_ab[4:5], norm_ab[5:6]

    # --- pre-norms (fp32 on the VPU) ----------------------------------------
    q2 = _torch_norm(x_q, a_q, b_q, D)
    k2 = _torch_norm(x_k, a_k, b_k, D)

    # --- projections: Q separate, K/V fused ---------------------------------
    inv_scale = 1.0 / math.sqrt(d_k)
    wq_w, wq_b = wq_ref[:D, :], wq_ref[D:D + 1, :]
    Q = (mm(q2, wq_w) + wq_b) * inv_scale          # fold 1/sqrt(d_k) once
    wkv_w, wkv_b = wkv_ref[:D, :], wkv_ref[D:D + 1, :]
    KV = mm(k2, wkv_w) + wkv_b                     # (bt*L, 2D); [:, :D]=K, [:, D:]=V

    wo_w, wo_b = wo_ref[:D, :], wo_ref[D:D + 1, :]

    # hoisted mask bias: 1.0 == masked -> -1e9 additive bias
    neg_bias = jnp.where(mask_ref[...] > 0.5,
                         jnp.float32(-1e9), jnp.float32(0.0))   # (bt, L, L)

    # --- multi-head attention (tp = 0), accumulate straight into wo ---------
    attn_rows = []
    for b in range(bt):                            # static unroll (tiny bt)
        rows = slice(b * L, (b + 1) * L)
        nb = neg_bias[b]                           # (L, L)
        acc = jnp.zeros((L, D), jnp.float32)
        for h in range(heads):                     # static unroll over heads
            hk = slice(h * d_k, (h + 1) * d_k)
            hv = slice(D + h * d_k, D + (h + 1) * d_k)
            qh = Q[rows, hk]                       # (L, d_k)
            kh = KV[rows, hk]
            vh = KV[rows, hv]
            s = mm_nt(qh, kh) + nb                 # (L, L), already scaled+masked
            s = s - jnp.max(s, axis=-1, keepdims=True)
            p = jnp.exp(s)
            # Exact reciprocal: approx=True round-trips through bf16 in
            # interpret mode and violates the 1e-3 tolerance.
            p = p * (1.0 / jnp.sum(p, axis=-1, keepdims=True))
            ho = mm(p, vh)                         # (L, d_k)
            acc = acc + mm(ho, wo_w[h * d_k:(h + 1) * d_k, :])   # (L, D)
        attn_rows.append(acc)
    attn = jnp.concatenate(attn_rows, axis=0) + wo_b             # (bt*L, D)

    x = x_q + attn

    # --- feed-forward with post-attn pre-norm --------------------------------
    q2b = _torch_norm(x, a_qa, b_qa, D)
    d_ff = w2_ref.shape[0] - 1
    w1_w, w1_b = w1_ref[:D, :], w1_ref[D:D + 1, :]
    h1 = jnp.maximum(mm(q2b, w1_w) + w1_b, 0.0)
    w2_w, w2_b = w2_ref[:d_ff, :], w2_ref[d_ff:d_ff + 1, :]
    ff = mm(h1, w2_w) + w2_b

    o_ref[...] = x + ff


def _pack_params(params):
    """Pack 18 raw parameter arrays into 6 slabs (bias appended as last row)."""
    (a_q, b_q, a_k, b_k, a_qa, b_qa,
     wq, bq, wk, bk, wv, bv, wo, bo, w1, b1, w2, b2) = params
    norm_ab = jnp.concatenate([a_q, b_q, a_k, b_k, a_qa, b_qa], axis=0)   # (6, D)
    wq_p = jnp.concatenate([wq, bq], axis=0)                              # (D+1, D)
    wkv_p = jnp.concatenate([jnp.concatenate([wk, wv], axis=1),
                             jnp.concatenate([bk, bv], axis=1)], axis=0)  # (D+1, 2D)
    wo_p = jnp.concatenate([wo, bo], axis=0)                              # (D+1, D)
    w1_p = jnp.concatenate([w1, b1], axis=0)                              # (D+1, D_FF)
    w2_p = jnp.concatenate([w2, b2], axis=0)                              # (D_FF+1, D)
    return norm_ab, wq_p, wkv_p, wo_p, w1_p, w2_p


def encoder_layer_pallas(q, k, mask_f, params, *, heads, batch_tile=None,
                         compute_dtype=jnp.float32):
    B, L, D = q.shape
    d_k = D // heads
    packed = _pack_params(params)   # in a real model this packing is done once
    norm_ab, wq_p, wkv_p, wo_p, w1_p, w2_p = packed
    D_FF = w1_p.shape[1]

    # Fold batch into the sublane dim; process `bt` batches per grid step.
    # (Set batch_tile=1 on v7x if you want one block per TensorCore.)
    bt = batch_tile if batch_tile is not None else min(B, 8)
    assert B % bt == 0, "batch must be divisible by batch_tile"
    nsteps = B // bt

    q_flat = q.reshape(B * L, D)
    k_flat = k.reshape(B * L, D)

    kernel = functools.partial(
        _encoder_layer_kernel, heads=heads, d_k=d_k, d_model=D,
        bt=bt, seq_len=L, compute_dtype=compute_dtype)

    def param_spec(shape):
        return pl.BlockSpec(shape, lambda i: (0, 0))

    in_specs = [
        pl.BlockSpec((bt * L, D), lambda i: (i, 0)),    # q (flattened)
        pl.BlockSpec((bt * L, D), lambda i: (i, 0)),    # k (flattened)
        pl.BlockSpec((bt, L, L), lambda i: (i, 0, 0)),  # mask
        param_spec(norm_ab.shape),
        param_spec(wq_p.shape),
        param_spec(wkv_p.shape),
        param_spec(wo_p.shape),
        param_spec(w1_p.shape),
        param_spec(w2_p.shape),
    ]
    out_specs = pl.BlockSpec((bt * L, D), lambda i: (i, 0))

    flops = (2 * B * L * (D * D + D * 2 * D + D * D + D * D_FF + D_FF * D)
             + 4 * B * heads * L * L * d_k)
    transcendentals = B * heads * L * L + 3 * B * L
    bytes_accessed = 4 * (3 * B * L * D + B * L * L + 6 * D
                          + (D + 1) * (4 * D + D_FF) + (D_FF + 1) * D)
    cost = pl.CostEstimate(flops=int(flops),
                           transcendentals=int(transcendentals),
                           bytes_accessed=int(bytes_accessed))

    out_flat = pl.pallas_call(
        kernel,
        out_shape=jax.ShapeDtypeStruct((B * L, D), jnp.float32),
        grid=(nsteps,),
        in_specs=in_specs,
        out_specs=out_specs,
        compiler_params=pltpu.CompilerParams(dimension_semantics=("parallel",)),
        cost_estimate=cost,
    )(q_flat, k_flat, mask_f, *packed)
    return out_flat.reshape(B, L, D), k


# ----------------------------- pure-JAX reference ---------------------------
def encoder_layer_ref(q, k, mask_f, params, *, heads):
    (a_q, b_q, a_k, b_k, a_qa, b_qa,
     wq, bq, wk, bk, wv, bv, wo, bo, w1, b1, w2, b2) = params
    B, L, D = q.shape
    d_k = D // heads

    def norm(x, a, b):
        mean = jnp.mean(x, axis=-1, keepdims=True)
        var = jnp.sum((x - mean) ** 2, axis=-1, keepdims=True) / (D - 1)
        return a[0] * (x - mean) / (jnp.sqrt(var) + 1e-6) + b[0]

    q2, k2 = norm(q, a_q, b_q), norm(k, a_k, b_k)
    Q = jnp.matmul(q2, wq, precision=_PREC) + bq[0]
    K = jnp.matmul(k2, wk, precision=_PREC) + bk[0]
    V = jnp.matmul(k2, wv, precision=_PREC) + bv[0]
    Qh = Q.reshape(B, L, heads, d_k).transpose(0, 2, 1, 3)
    Kh = K.reshape(B, L, heads, d_k).transpose(0, 2, 1, 3)
    Vh = V.reshape(B, L, heads, d_k).transpose(0, 2, 1, 3)
    s = jnp.einsum("bhqd,bhkd->bhqk", Qh, Kh, precision=_PREC) / math.sqrt(d_k)
    s = jnp.where(mask_f[:, None] > 0.5, -1e9, s)
    p = jax.nn.softmax(s, axis=-1)
    o = jnp.einsum("bhqk,bhkd->bhqd", p, Vh,
                   precision=_PREC).transpose(0, 2, 1, 3).reshape(B, L, D)
    attn_out = jnp.matmul(o, wo, precision=_PREC) + bo[0]
    q = q + attn_out
    q2 = norm(q, a_qa, b_qa)
    h1 = jnp.maximum(jnp.matmul(q2, w1, precision=_PREC) + b1[0], 0.0)
    ff = jnp.matmul(h1, w2, precision=_PREC) + b2[0]
    return q + ff, k


if __name__ == "__main__":
    B, L, D, HEADS, D_FF = 2, 8, 32, 4, 64

    key = jax.random.PRNGKey(0)
    keys = jax.random.split(key, 20)

    q = jax.random.normal(keys[0], (B, L, D), dtype=jnp.float32)
    k = jax.random.normal(keys[1], (B, L, D), dtype=jnp.float32)
    # deterministic mask: 1.0 = masked
    mask_bool = (jnp.arange(L)[None, :] > (jnp.arange(L)[:, None] + 3))
    mask_f = jnp.broadcast_to(mask_bool.astype(jnp.float32), (B, L, L))

    def lin(kw, kb, fan_in, fan_out):
        w = jax.random.normal(kw, (fan_in, fan_out), dtype=jnp.float32) * (1.0 / math.sqrt(fan_in))
        b = jax.random.normal(kb, (1, fan_out), dtype=jnp.float32) * 0.02
        return w, b

    # Norm params (alpha=ones, bias=zeros as in __init__)
    a_q = jnp.ones((1, D), jnp.float32);  b_q = jnp.zeros((1, D), jnp.float32)
    a_k = jnp.ones((1, D), jnp.float32);  b_k = jnp.zeros((1, D), jnp.float32)
    a_qa = jnp.ones((1, D), jnp.float32); b_qa = jnp.zeros((1, D), jnp.float32)

    wq, bq = lin(keys[2], keys[3], D, D)
    wk, bk = lin(keys[4], keys[5], D, D)
    wv, bv = lin(keys[6], keys[7], D, D)
    wo, bo = lin(keys[8], keys[9], D, D)
    w1, b1 = lin(keys[10], keys[11], D, D_FF)
    w2, b2 = lin(keys[12], keys[13], D_FF, D)

    params = (a_q, b_q, a_k, b_k, a_qa, b_qa,
              wq, bq, wk, bk, wv, bv, wo, bo, w1, b1, w2, b2)

    q_out, k_out = encoder_layer_pallas(q, k, mask_f, params, heads=HEADS)
    q_out = jax.block_until_ready(q_out)

    q_ref, _ = encoder_layer_ref(q, k, mask_f, params, heads=HEADS)
    max_err = float(jnp.max(jnp.abs(q_out - q_ref)))
    assert jnp.allclose(q_out, q_ref, rtol=1e-3, atol=1e-3), (
        f"mismatch vs reference (max abs err = {max_err:.3e})")
    assert q_out.shape == (B, L, D) and k_out.shape == (B, L, D)

    print("KERNEL_OK")
</pallas_src>

<mosaic_0001>
module attributes {stable_mosaic.version = 11 : i64} {
  func.func @_encoder_layer_kernel(%arg0: i32, %arg1: memref<16x32xf32, #tpu.memory_space<vmem>>, %arg2: memref<16x32xf32, #tpu.memory_space<vmem>>, %arg3: memref<2x8x8xf32, #tpu.memory_space<vmem>>, %arg4: memref<6x32xf32, #tpu.memory_space<vmem>>, %arg5: memref<33x32xf32, #tpu.memory_space<vmem>>, %arg6: memref<33x64xf32, #tpu.memory_space<vmem>>, %arg7: memref<33x32xf32, #tpu.memory_space<vmem>>, %arg8: memref<33x64xf32, #tpu.memory_space<vmem>>, %arg9: memref<65x32xf32, #tpu.memory_space<vmem>>, %arg10: memref<16x32xf32, #tpu.memory_space<vmem>>) attributes {dimension_semantics = [#tpu.dimension_semantics<parallel>], iteration_bounds = array<i64: 1>, scalar_prefetch = 0 : i64, scratch_operands = 0 : i64, tpu.core_type = #tpu.core_type<tc>, window_params = [{transform_indices = @transform_0, window_bounds = array<i64: 16, 32>}, {transform_indices = @transform_1, window_bounds = array<i64: 16, 32>}, {transform_indices = @transform_2, window_bounds = array<i64: 2, 8, 8>}, {pipeline_mode = #tpu.pipeline_mode<synchronous>, transform_indices = @transform_3, window_bounds = array<i64: 6, 32>}, {pipeline_mode = #tpu.pipeline_mode<synchronous>, transform_indices = @transform_4, window_bounds = array<i64: 33, 32>}, {pipeline_mode = #tpu.pipeline_mode<synchronous>, transform_indices = @transform_5, window_bounds = array<i64: 33, 64>}, {pipeline_mode = #tpu.pipeline_mode<synchronous>, transform_indices = @transform_6, window_bounds = array<i64: 33, 32>}, {pipeline_mode = #tpu.pipeline_mode<synchronous>, transform_indices = @transform_7, window_bounds = array<i64: 33, 64>}, {pipeline_mode = #tpu.pipeline_mode<synchronous>, transform_indices = @transform_8, window_bounds = array<i64: 65, 32>}, {transform_indices = @transform_9, window_bounds = array<i64: 16, 32>}]} {
    %c0 = arith.constant 0 : index
    %c0_0 = arith.constant 0 : index
    %0 = vector.load %arg1[%c0, %c0_0] : memref<16x32xf32, #tpu.memory_space<vmem>>, vector<16x32xf32>
    %c0_1 = arith.constant 0 : index
    %c0_2 = arith.constant 0 : index
    %1 = vector.load %arg2[%c0_1, %c0_2] : memref<16x32xf32, #tpu.memory_space<vmem>>, vector<16x32xf32>
    %c0_3 = arith.constant 0 : index
    %c0_4 = arith.constant 0 : index
    %2 = vector.load %arg4[%c0_3, %c0_4] : memref<6x32xf32, #tpu.memory_space<vmem>>, vector<6x32xf32>
    %3 = vector.extract_strided_slice %2 {offsets = [0, 0], sizes = [1, 32], strides = [1, 1]} : vector<6x32xf32> to vector<1x32xf32>
    %4 = vector.extract_strided_slice %2 {offsets = [1, 0], sizes = [1, 32], strides = [1, 1]} : vector<6x32xf32> to vector<1x32xf32>
    %5 = vector.extract_strided_slice %2 {offsets = [2, 0], sizes = [1, 32], strides = [1, 1]} : vector<6x32xf32> to vector<1x32xf32>
    %6 = vector.extract_strided_slice %2 {offsets = [3, 0], sizes = [1, 32], strides = [1, 1]} : vector<6x32xf32> to vector<1x32xf32>
    %7 = vector.extract_strided_slice %2 {offsets = [4, 0], sizes = [1, 32], strides = [1, 1]} : vector<6x32xf32> to vector<1x32xf32>
    %8 = vector.extract_strided_slice %2 {offsets = [5, 0], sizes = [1, 32], strides = [1, 1]} : vector<6x32xf32> to vector<1x32xf32>
    %cst = arith.constant dense<0.000000e+00> : vector<16xf32>
    %9 = vector.multi_reduction <add>, %0, %cst [1] : vector<16x32xf32> to vector<16xf32>
    %10 = vector.shape_cast %9 : vector<16xf32> to vector<16x1xf32>
    %cst_5 = arith.constant 3.200000e+01 : f32
    %11 = vector.broadcast %cst_5 : f32 to vector<16x1xf32>
    %12 = arith.divf %10, %11 : vector<16x1xf32>
    %13 = vector.broadcast %12 : vector<16x1xf32> to vector<16x32xf32>
    %14 = arith.subf %0, %13 : vector<16x32xf32>
    %15 = arith.mulf %14, %14 : vector<16x32xf32>
    %cst_6 = arith.constant dense<0.000000e+00> : vector<16xf32>
    %16 = vector.multi_reduction <add>, %15, %cst_6 [1] : vector<16x32xf32> to vector<16xf32>
    %17 = vector.shape_cast %16 : vector<16xf32> to vector<16x1xf32>
    %cst_7 = arith.constant 0.0322580636 : f32
    %18 = vector.broadcast %cst_7 : f32 to vector<16x1xf32>
    %19 = arith.mulf %17, %18 : vector<16x1xf32>
    %20 = math.sqrt %19 : vector<16x1xf32>
    %cst_8 = arith.constant 9.99999997E-7 : f32
    %21 = vector.broadcast %cst_8 : f32 to vector<16x1xf32>
    %22 = arith.addf %20, %21 : vector<16x1xf32>
    %cst_9 = arith.constant 1.000000e+00 : f32
    %23 = vector.broadcast %cst_9 : f32 to vector<16x1xf32>
    %24 = arith.divf %23, %22 : vector<16x1xf32>
    %25 = vector.broadcast %12 : vector<16x1xf32> to vector<16x32xf32>
    %26 = arith.subf %0, %25 : vector<16x32xf32>
    %27 = vector.broadcast %3 : vector<1x32xf32> to vector<16x32xf32>
    %28 = arith.mulf %27, %26 : vector<16x32xf32>
    %29 = vector.broadcast %24 : vector<16x1xf32> to vector<16x32xf32>
    %30 = arith.mulf %28, %29 : vector<16x32xf32>
    %31 = vector.broadcast %4 : vector<1x32xf32> to vector<16x32xf32>
    %32 = arith.addf %30, %31 : vector<16x32xf32>
    %cst_10 = arith.constant dense<0.000000e+00> : vector<16xf32>
    %33 = vector.multi_reduction <add>, %1, %cst_10 [1] : vector<16x32xf32> to vector<16xf32>
    %34 = vector.shape_cast %33 : vector<16xf32> to vector<16x1xf32>
    %cst_11 = arith.constant 3.200000e+01 : f32
    %35 = vector.broadcast %cst_11 : f32 to vector<16x1xf32>
    %36 = arith.divf %34, %35 : vector<16x1xf32>
    %37 = vector.broadcast %36 : vector<16x1xf32> to vector<16x32xf32>
    %38 = arith.subf %1, %37 : vector<16x32xf32>
    %39 = arith.mulf %38, %38 : vector<16x32xf32>
    %cst_12 = arith.constant dense<0.000000e+00> : vector<16xf32>
    %40 = vector.multi_reduction <add>, %39, %cst_12 [1] : vector<16x32xf32> to vector<16xf32>
    %41 = vector.shape_cast %40 : vector<16xf32> to vector<16x1xf32>
    %cst_13 = arith.constant 0.0322580636 : f32
    %42 = vector.broadcast %cst_13 : f32 to vector<16x1xf32>
    %43 = arith.mulf %41, %42 : vector<16x1xf32>
    %44 = math.sqrt %43 : vector<16x1xf32>
    %cst_14 = arith.constant 9.99999997E-7 : f32
    %45 = vector.broadcast %cst_14 : f32 to vector<16x1xf32>
    %46 = arith.addf %44, %45 : vector<16x1xf32>
    %cst_15 = arith.constant 1.000000e+00 : f32
    %47 = vector.broadcast %cst_15 : f32 to vector<16x1xf32>
    %48 = arith.divf %47, %46 : vector<16x1xf32>
    %49 = vector.broadcast %36 : vector<16x1xf32> to vector<16x32xf32>
    %50 = arith.subf %1, %49 : vector<16x32xf32>
    %51 = vector.broadcast %5 : vector<1x32xf32> to vector<16x32xf32>
    %52 = arith.mulf %51, %50 : vector<16x32xf32>
    %53 = vector.broadcast %48 : vector<16x1xf32> to vector<16x32xf32>
    %54 = arith.mulf %52, %53 : vector<16x32xf32>
    %55 = vector.broadcast %6 : vector<1x32xf32> to vector<16x32xf32>
    %56 = arith.addf %54, %55 : vector<16x32xf32>
    %c0_16 = arith.constant 0 : index
    %c0_17 = arith.constant 0 : index
    %57 = vector.load %arg5[%c0_16, %c0_17] : memref<33x32xf32, #tpu.memory_space<vmem>>, vector<32x32xf32>
    %c32 = arith.constant 32 : index
    %c0_18 = arith.constant 0 : index
    %58 = vector.load %arg5[%c32, %c0_18] : memref<33x32xf32, #tpu.memory_space<vmem>>, vector<1x32xf32>
    %cst_19 = arith.constant dense<0.000000e+00> : vector<16x32xf32>
    %59 = tpu.matmul %32, %57, %cst_19 {dimension_numbers = #tpu.dot_dimension_numbers<[1], [0], [0], [1], [0, 0, 1, 1], [], []>, precision = #tpu.contract_precision<fp32>} : vector<16x32xf32>, vector<32x32xf32>, vector<16x32xf32> -> vector<16x32xf32>
    %60 = vector.broadcast %58 : vector<1x32xf32> to vector<16x32xf32>
    %61 = arith.addf %59, %60 : vector<16x32xf32>
    %cst_20 = arith.constant 0.353553385 : f32
    %62 = vector.broadcast %cst_20 : f32 to vector<16x32xf32>
    %63 = arith.mulf %61, %62 : vector<16x32xf32>
    %c0_21 = arith.constant 0 : index
    %c0_22 = arith.constant 0 : index
    %64 = vector.load %arg6[%c0_21, %c0_22] : memref<33x64xf32, #tpu.memory_space<vmem>>, vector<32x64xf32>
    %c32_23 = arith.constant 32 : index
    %c0_24 = arith.constant 0 : index
    %65 = vector.load %arg6[%c32_23, %c0_24] : memref<33x64xf32, #tpu.memory_space<vmem>>, vector<1x64xf32>
    %cst_25 = arith.constant dense<0.000000e+00> : vector<16x64xf32>
    %66 = tpu.matmul %56, %64, %cst_25 {dimension_numbers = #tpu.dot_dimension_numbers<[1], [0], [0], [1], [0, 0, 1, 1], [], []>, precision = #tpu.contract_precision<fp32>} : vector<16x32xf32>, vector<32x64xf32>, vector<16x64xf32> -> vector<16x64xf32>
    %67 = vector.broadcast %65 : vector<1x64xf32> to vector<16x64xf32>
    %68 = arith.addf %66, %67 : vector<16x64xf32>
    %c0_26 = arith.constant 0 : index
    %c0_27 = arith.constant 0 : index
    %69 = vector.load %arg7[%c0_26, %c0_27] : memref<33x32xf32, #tpu.memory_space<vmem>>, vector<32x32xf32>
    %c32_28 = arith.constant 32 : index
    %c0_29 = arith.constant 0 : index
    %70 = vector.load %arg7[%c32_28, %c0_29] : memref<33x32xf32, #tpu.memory_space<vmem>>, vector<1x32xf32>
    %c0_30 = arith.constant 0 : index
    %c0_31 = arith.constant 0 : index
    %c0_32 = arith.constant 0 : index
    %71 = vector.load %arg3[%c0_30, %c0_31, %c0_32] : memref<2x8x8xf32, #tpu.memory_space<vmem>>, vector<2x8x8xf32>
    %cst_33 = arith.constant 5.000000e-01 : f32
    %72 = vector.broadcast %cst_33 : f32 to vector<2x8x8xf32>
    %73 = arith.cmpf ogt, %71, %72 : vector<2x8x8xf32>
    %cst_34 = arith.constant -1.000000e+09 : f32
    %cst_35 = arith.constant 0.000000e+00 : f32
    %74 = vector.broadcast %cst_34 : f32 to vector<2x8x8xf32>
    %75 = vector.broadcast %cst_35 : f32 to vector<2x8x8xf32>
    %76 = arith.select %73, %74, %75 : vector<2x8x8xi1>, vector<2x8x8xf32>
    %77 = vector.extract_strided_slice %76 {offsets = [0, 0, 0], sizes = [1, 8, 8], strides = [1, 1, 1]} : vector<2x8x8xf32> to vector<1x8x8xf32>
    %78 = vector.shape_cast %77 : vector<1x8x8xf32> to vector<8x8xf32>
    %cst_36 = arith.constant 0.000000e+00 : f32
    %79 = vector.broadcast %cst_36 : f32 to vector<8x32xf32>
    %80 = vector.extract_strided_slice %63 {offsets = [0, 0], sizes = [8, 8], strides = [1, 1]} : vector<16x32xf32> to vector<8x8xf32>
    %81 = vector.extract_strided_slice %68 {offsets = [0, 0], sizes = [8, 8], strides = [1, 1]} : vector<16x64xf32> to vector<8x8xf32>
    %82 = vector.extract_strided_slice %68 {offsets = [0, 32], sizes = [8, 8], strides = [1, 1]} : vector<16x64xf32> to vector<8x8xf32>
    %cst_37 = arith.constant dense<0.000000e+00> : vector<8x8xf32>
    %83 = tpu.matmul %80, %81, %cst_37 {dimension_numbers = #tpu.dot_dimension_numbers<[1], [1], [0], [0], [0, 0, 1, 0], [], []>, precision = #tpu.contract_precision<fp32>} : vector<8x8xf32>, vector<8x8xf32>, vector<8x8xf32> -> vector<8x8xf32>
    %84 = arith.addf %83, %78 : vector<8x8xf32>
    %cst_38 = arith.constant dense<0xFF800000> : vector<8xf32>
    %85 = vector.multi_reduction <maximumf>, %84, %cst_38 [1] : vector<8x8xf32> to vector<8xf32>
    %86 = vector.shape_cast %85 : vector<8xf32> to vector<8x1xf32>
    %87 = vector.broadcast %86 : vector<8x1xf32> to vector<8x8xf32>
    %88 = arith.subf %84, %87 : vector<8x8xf32>
    %89 = math.exp %88 : vector<8x8xf32>
    %cst_39 = arith.constant dense<0.000000e+00> : vector<8xf32>
    %90 = vector.multi_reduction <add>, %89, %cst_39 [1] : vector<8x8xf32> to vector<8xf32>
    %91 = vector.shape_cast %90 : vector<8xf32> to vector<8x1xf32>
    %cst_40 = arith.constant 1.000000e+00 : f32
    %92 = vector.broadcast %cst_40 : f32 to vector<8x1xf32>
    %93 = arith.divf %92, %91 : vector<8x1xf32>
    %94 = vector.broadcast %93 : vector<8x1xf32> to vector<8x8xf32>
    %95 = arith.mulf %89, %94 : vector<8x8xf32>
    %cst_41 = arith.constant dense<0.000000e+00> : vector<8x8xf32>
    %96 = tpu.matmul %95, %82, %cst_41 {dimension_numbers = #tpu.dot_dimension_numbers<[1], [0], [0], [1], [0, 0, 1, 1], [], []>, precision = #tpu.contract_precision<fp32>} : vector<8x8xf32>, vector<8x8xf32>, vector<8x8xf32> -> vector<8x8xf32>
    %97 = vector.extract_strided_slice %69 {offsets = [0, 0], sizes = [8, 32], strides = [1, 1]} : vector<32x32xf32> to vector<8x32xf32>
    %cst_42 = arith.constant dense<0.000000e+00> : vector<8x32xf32>
    %98 = tpu.matmul %96, %97, %cst_42 {dimension_numbers = #tpu.dot_dimension_numbers<[1], [0], [0], [1], [0, 0, 1, 1], [], []>, precision = #tpu.contract_precision<fp32>} : vector<8x8xf32>, vector<8x32xf32>, vector<8x32xf32> -> vector<8x32xf32>
    %99 = arith.addf %79, %98 : vector<8x32xf32>
    %100 = vector.extract_strided_slice %63 {offsets = [0, 8], sizes = [8, 8], strides = [1, 1]} : vector<16x32xf32> to vector<8x8xf32>
    %101 = vector.extract_strided_slice %68 {offsets = [0, 8], sizes = [8, 8], strides = [1, 1]} : vector<16x64xf32> to vector<8x8xf32>
    %102 = vector.extract_strided_slice %68 {offsets = [0, 40], sizes = [8, 8], strides = [1, 1]} : vector<16x64xf32> to vector<8x8xf32>
    %cst_43 = arith.constant dense<0.000000e+00> : vector<8x8xf32>
    %103 = tpu.matmul %100, %101, %cst_43 {dimension_numbers = #tpu.dot_dimension_numbers<[1], [1], [0], [0], [0, 0, 1, 0], [], []>, precision = #tpu.contract_precision<fp32>} : vector<8x8xf32>, vector<8x8xf32>, vector<8x8xf32> -> vector<8x8xf32>
    %104 = arith.addf %103, %78 : vector<8x8xf32>
    %cst_44 = arith.constant dense<0xFF800000> : vector<8xf32>
    %105 = vector.multi_reduction <maximumf>, %104, %cst_44 [1] : vector<8x8xf32> to vector<8xf32>
    %106 = vector.shape_cast %105 : vector<8xf32> to vector<8x1xf32>
    %107 = vector.broadcast %106 : vector<8x1xf32> to vector<8x8xf32>
    %108 = arith.subf %104, %107 : vector<8x8xf32>
    %109 = math.exp %108 : vector<8x8xf32>
    %cst_45 = arith.constant dense<0.000000e+00> : vector<8xf32>
    %110 = vector.multi_reduction <add>, %109, %cst_45 [1] : vector<8x8xf32> to vector<8xf32>
    %111 = vector.shape_cast %110 : vector<8xf32> to vector<8x1xf32>
    %cst_46 = arith.constant 1.000000e+00 : f32
    %112 = vector.broadcast %cst_46 : f32 to vector<8x1xf32>
    %113 = arith.divf %112, %111 : vector<8x1xf32>
    %114 = vector.broadcast %113 : vector<8x1xf32> to vector<8x8xf32>
    %115 = arith.mulf %109, %114 : vector<8x8xf32>
    %cst_47 = arith.constant dense<0.000000e+00> : vector<8x8xf32>
    %116 = tpu.matmul %115, %102, %cst_47 {dimension_numbers = #tpu.dot_dimension_numbers<[1], [0], [0], [1], [0, 0, 1, 1], [], []>, precision = #tpu.contract_precision<fp32>} : vector<8x8xf32>, vector<8x8xf32>, vector<8x8xf32> -> vector<8x8xf32>
    %117 = vector.extract_strided_slice %69 {offsets = [8, 0], sizes = [8, 32], strides = [1, 1]} : vector<32x32xf32> to vector<8x32xf32>
    %cst_48 = arith.constant dense<0.000000e+00> : vector<8x32xf32>
    %118 = tpu.matmul %116, %117, %cst_48 {dimension_numbers = #tpu.dot_dimension_numbers<[1], [0], [0], [1], [0, 0, 1, 1], [], []>, precision = #tpu.contract_precision<fp32>} : vector<8x8xf32>, vector<8x32xf32>, vector<8x32xf32> -> vector<8x32xf32>
    %119 = arith.addf %99, %118 : vector<8x32xf32>
    %120 = vector.extract_strided_slice %63 {offsets = [0, 16], sizes = [8, 8], strides = [1, 1]} : vector<16x32xf32> to vector<8x8xf32>
    %121 = vector.extract_strided_slice %68 {offsets = [0, 16], sizes = [8, 8], strides = [1, 1]} : vector<16x64xf32> to vector<8x8xf32>
    %122 = vector.extract_strided_slice %68 {offsets = [0, 48], sizes = [8, 8], strides = [1, 1]} : vector<16x64xf32> to vector<8x8xf32>
    %cst_49 = arith.constant dense<0.000000e+00> : vector<8x8xf32>
    %123 = tpu.matmul %120, %121, %cst_49 {dimension_numbers = #tpu.dot_dimension_numbers<[1], [1], [0], [0], [0, 0, 1, 0], [], []>, precision = #tpu.contract_precision<fp32>} : vector<8x8xf32>, vector<8x8xf32>, vector<8x8xf32> -> vector<8x8xf32>
    %124 = arith.addf %123, %78 : vector<8x8xf32>
    %cst_50 = arith.constant dense<0xFF800000> : vector<8xf32>
    %125 = vector.multi_reduction <maximumf>, %124, %cst_50 [1] : vector<8x8xf32> to vector<8xf32>
    %126 = vector.shape_cast %125 : vector<8xf32> to vector<8x1xf32>
    %127 = vector.broadcast %126 : vector<8x1xf32> to vector<8x8xf32>
    %128 = arith.subf %124, %127 : vector<8x8xf32>
    %129 = math.exp %128 : vector<8x8xf32>
    %cst_51 = arith.constant dense<0.000000e+00> : vector<8xf32>
    %130 = vector.multi_reduction <add>, %129, %cst_51 [1] : vector<8x8xf32> to vector<8xf32>
    %131 = vector.shape_cast %130 : vector<8xf32> to vector<8x1xf32>
    %cst_52 = arith.constant 1.000000e+00 : f32
    %132 = vector.broadcast %cst_52 : f32 to vector<8x1xf32>
    %133 = arith.divf %132, %131 : vector<8x1xf32>
    %134 = vector.broadcast %133 : vector<8x1xf32> to vector<8x8xf32>
    %135 = arith.mulf %129, %134 : vector<8x8xf32>
    %cst_53 = arith.constant dense<0.000000e+00> : vector<8x8xf32>
    %136 = tpu.matmul %135, %122, %cst_53 {dimension_numbers = #tpu.dot_dimension_numbers<[1], [0], [0], [1], [0, 0, 1, 1], [], []>, precision = #tpu.contract_precision<fp32>} : vector<8x8xf32>, vector<8x8xf32>, vector<8x8xf32> -> vector<8x8xf32>
    %137 = vector.extract_strided_slice %69 {offsets = [16, 0], sizes = [8, 32], strides = [1, 1]} : vector<32x32xf32> to vector<8x32xf32>
    %cst_54 = arith.constant dense<0.000000e+00> : vector<8x32xf32>
    %138 = tpu.matmul %136, %137, %cst_54 {dimension_numbers = #tpu.dot_dimension_numbers<[1], [0], [0], [1], [0, 0, 1, 1], [], []>, precision = #tpu.contract_precision<fp32>} : vector<8x8xf32>, vector<8x32xf32>, vector<8x32xf32> -> vector<8x32xf32>
    %139 = arith.addf %119, %138 : vector<8x32xf32>
    %140 = vector.extract_strided_slice %63 {offsets = [0, 24], sizes = [8, 8], strides = [1, 1]} : vector<16x32xf32> to vector<8x8xf32>
    %141 = vector.extract_strided_slice %68 {offsets = [0, 24], sizes = [8, 8], strides = [1, 1]} : vector<16x64xf32> to vector<8x8xf32>
    %142 = vector.extract_strided_slice %68 {offsets = [0, 56], sizes = [8, 8], strides = [1, 1]} : vector<16x64xf32> to vector<8x8xf32>
    %cst_55 = arith.constant dense<0.000000e+00> : vector<8x8xf32>
    %143 = tpu.matmul %140, %141, %cst_55 {dimension_numbers = #tpu.dot_dimension_numbers<[1], [1], [0], [0], [0, 0, 1, 0], [], []>, precision = #tpu.contract_precision<fp32>} : vector<8x8xf32>, vector<8x8xf32>, vector<8x8xf32> -> vector<8x8xf32>
    %144 = arith.addf %143, %78 : vector<8x8xf32>
    %cst_56 = arith.constant dense<0xFF800000> : vector<8xf32>
    %145 = vector.multi_reduction <maximumf>, %144, %cst_56 [1] : vector<8x8xf32> to vector<8xf32>
    %146 = vector.shape_cast %145 : vector<8xf32> to vector<8x1xf32>
    %147 = vector.broadcast %146 : vector<8x1xf32> to vector<8x8xf32>
    %148 = arith.subf %144, %147 : vector<8x8xf32>
    %149 = math.exp %148 : vector<8x8xf32>
    %cst_57 = arith.constant dense<0.000000e+00> : vector<8xf32>
    %150 = vector.multi_reduction <add>, %149, %cst_57 [1] : vector<8x8xf32> to vector<8xf32>
    %151 = vector.shape_cast %150 : vector<8xf32> to vector<8x1xf32>
    %cst_58 = arith.constant 1.000000e+00 : f32
    %152 = vector.broadcast %cst_58 : f32 to vector<8x1xf32>
    %153 = arith.divf %152, %151 : vector<8x1xf32>
    %154 = vector.broadcast %153 : vector<8x1xf32> to vector<8x8xf32>
    %155 = arith.mulf %149, %154 : vector<8x8xf32>
    %cst_59 = arith.constant dense<0.000000e+00> : vector<8x8xf32>
    %156 = tpu.matmul %155, %142, %cst_59 {dimension_numbers = #tpu.dot_dimension_numbers<[1], [0], [0], [1], [0, 0, 1, 1], [], []>, precision = #tpu.contract_precision<fp32>} : vector<8x8xf32>, vector<8x8xf32>, vector<8x8xf32> -> vector<8x8xf32>
    %157 = vector.extract_strided_slice %69 {offsets = [24, 0], sizes = [8, 32], strides = [1, 1]} : vector<32x32xf32> to vector<8x32xf32>
    %cst_60 = arith.constant dense<0.000000e+00> : vector<8x32xf32>
    %158 = tpu.matmul %156, %157, %cst_60 {dimension_numbers = #tpu.dot_dimension_numbers<[1], [0], [0], [1], [0, 0, 1, 1], [], []>, precision = #tpu.contract_precision<fp32>} : vector<8x8xf32>, vector<8x32xf32>, vector<8x32xf32> -> vector<8x32xf32>
    %159 = arith.addf %139, %158 : vector<8x32xf32>
    %160 = vector.extract_strided_slice %76 {offsets = [1, 0, 0], sizes = [1, 8, 8], strides = [1, 1, 1]} : vector<2x8x8xf32> to vector<1x8x8xf32>
    %161 = vector.shape_cast %160 : vector<1x8x8xf32> to vector<8x8xf32>
    %cst_61 = arith.constant 0.000000e+00 : f32
    %162 = vector.broadcast %cst_61 : f32 to vector<8x32xf32>
    %163 = vector.extract_strided_slice %63 {offsets = [8, 0], sizes = [8, 8], strides = [1, 1]} : vector<16x32xf32> to vector<8x8xf32>
    %164 = vector.extract_strided_slice %68 {offsets = [8, 0], sizes = [8, 8], strides = [1, 1]} : vector<16x64xf32> to vector<8x8xf32>
    %165 = vector.extract_strided_slice %68 {offsets = [8, 32], sizes = [8, 8], strides = [1, 1]} : vector<16x64xf32> to vector<8x8xf32>
    %cst_62 = arith.constant dense<0.000000e+00> : vector<8x8xf32>
    %166 = tpu.matmul %163, %164, %cst_62 {dimension_numbers = #tpu.dot_dimension_numbers<[1], [1], [0], [0], [0, 0, 1, 0], [], []>, precision = #tpu.contract_precision<fp32>} : vector<8x8xf32>, vector<8x8xf32>, vector<8x8xf32> -> vector<8x8xf32>
    %167 = arith.addf %166, %161 : vector<8x8xf32>
    %cst_63 = arith.constant dense<0xFF800000> : vector<8xf32>
    %168 = vector.multi_reduction <maximumf>, %167, %cst_63 [1] : vector<8x8xf32> to vector<8xf32>
    %169 = vector.shape_cast %168 : vector<8xf32> to vector<8x1xf32>
    %170 = vector.broadcast %169 : vector<8x1xf32> to vector<8x8xf32>
    %171 = arith.subf %167, %170 : vector<8x8xf32>
    %172 = math.exp %171 : vector<8x8xf32>
    %cst_64 = arith.constant dense<0.000000e+00> : vector<8xf32>
    %173 = vector.multi_reduction <add>, %172, %cst_64 [1] : vector<8x8xf32> to vector<8xf32>
    %174 = vector.shape_cast %173 : vector<8xf32> to vector<8x1xf32>
    %cst_65 = arith.constant 1.000000e+00 : f32
    %175 = vector.broadcast %cst_65 : f32 to vector<8x1xf32>
    %176 = arith.divf %175, %174 : vector<8x1xf32>
    %177 = vector.broadcast %176 : vector<8x1xf32> to vector<8x8xf32>
    %178 = arith.mulf %172, %177 : vector<8x8xf32>
    %cst_66 = arith.constant dense<0.000000e+00> : vector<8x8xf32>
    %179 = tpu.matmul %178, %165, %cst_66 {dimension_numbers = #tpu.dot_dimension_numbers<[1], [0], [0], [1], [0, 0, 1, 1], [], []>, precision = #tpu.contract_precision<fp32>} : vector<8x8xf32>, vector<8x8xf32>, vector<8x8xf32> -> vector<8x8xf32>
    %180 = vector.extract_strided_slice %69 {offsets = [0, 0], sizes = [8, 32], strides = [1, 1]} : vector<32x32xf32> to vector<8x32xf32>
    %cst_67 = arith.constant dense<0.000000e+00> : vector<8x32xf32>
    %181 = tpu.matmul %179, %180, %cst_67 {dimension_numbers = #tpu.dot_dimension_numbers<[1], [0], [0], [1], [0, 0, 1, 1], [], []>, precision = #tpu.contract_precision<fp32>} : vector<8x8xf32>, vector<8x32xf32>, vector<8x32xf32> -> vector<8x32xf32>
    %182 = arith.addf %162, %181 : vector<8x32xf32>
    %183 = vector.extract_strided_slice %63 {offsets = [8, 8], sizes = [8, 8], strides = [1, 1]} : vector<16x32xf32> to vector<8x8xf32>
    %184 = vector.extract_strided_slice %68 {offsets = [8, 8], sizes = [8, 8], strides = [1, 1]} : vector<16x64xf32> to vector<8x8xf32>
    %185 = vector.extract_strided_slice %68 {offsets = [8, 40], sizes = [8, 8], strides = [1, 1]} : vector<16x64xf32> to vector<8x8xf32>
    %cst_68 = arith.constant dense<0.000000e+00> : vector<8x8xf32>
    %186 = tpu.matmul %183, %184, %cst_68 {dimension_numbers = #tpu.dot_dimension_numbers<[1], [1], [0], [0], [0, 0, 1, 0], [], []>, precision = #tpu.contract_precision<fp32>} : vector<8x8xf32>, vector<8x8xf32>, vector<8x8xf32> -> vector<8x8xf32>
    %187 = arith.addf %186, %161 : vector<8x8xf32>
    %cst_69 = arith.constant dense<0xFF800000> : vector<8xf32>
    %188 = vector.multi_reduction <maximumf>, %187, %cst_69 [1] : vector<8x8xf32> to vector<8xf32>
    %189 = vector.shape_cast %188 : vector<8xf32> to vector<8x1xf32>
    %190 = vector.broadcast %189 : vector<8x1xf32> to vector<8x8xf32>
    %191 = arith.subf %187, %190 : vector<8x8xf32>
    %192 = math.exp %191 : vector<8x8xf32>
    %cst_70 = arith.constant dense<0.000000e+00> : vector<8xf32>
    %193 = vector.multi_reduction <add>, %192, %cst_70 [1] : vector<8x8xf32> to vector<8xf32>
    %194 = vector.shape_cast %193 : vector<8xf32> to vector<8x1xf32>
    %cst_71 = arith.constant 1.000000e+00 : f32
    %195 = vector.broadcast %cst_71 : f32 to vector<8x1xf32>
    %196 = arith.divf %195, %194 : vector<8x1xf32>
    %197 = vector.broadcast %196 : vector<8x1xf32> to vector<8x8xf32>
    %198 = arith.mulf %192, %197 : vector<8x8xf32>
    %cst_72 = arith.constant dense<0.000000e+00> : vector<8x8xf32>
    %199 = tpu.matmul %198, %185, %cst_72 {dimension_numbers = #tpu.dot_dimension_numbers<[1], [0], [0], [1], [0, 0, 1, 1], [], []>, precision = #tpu.contract_precision<fp32>} : vector<8x8xf32>, vector<8x8xf32>, vector<8x8xf32> -> vector<8x8xf32>
    %200 = vector.extract_strided_slice %69 {offsets = [8, 0], sizes = [8, 32], strides = [1, 1]} : vector<32x32xf32> to vector<8x32xf32>
    %cst_73 = arith.constant dense<0.000000e+00> : vector<8x32xf32>
    %201 = tpu.matmul %199, %200, %cst_73 {dimension_numbers = #tpu.dot_dimension_numbers<[1], [0], [0], [1], [0, 0, 1, 1], [], []>, precision = #tpu.contract_precision<fp32>} : vector<8x8xf32>, vector<8x32xf32>, vector<8x32xf32> -> vector<8x32xf32>
    %202 = arith.addf %182, %201 : vector<8x32xf32>
    %203 = vector.extract_strided_slice %63 {offsets = [8, 16], sizes = [8, 8], strides = [1, 1]} : vector<16x32xf32> to vector<8x8xf32>
    %204 = vector.extract_strided_slice %68 {offsets = [8, 16], sizes = [8, 8], strides = [1, 1]} : vector<16x64xf32> to vector<8x8xf32>
    %205 = vector.extract_strided_slice %68 {offsets = [8, 48], sizes = [8, 8], strides = [1, 1]} : vector<16x64xf32> to vector<8x8xf32>
    %cst_74 = arith.constant dense<0.000000e+00> : vector<8x8xf32>
    %206 = tpu.matmul %203, %204, %cst_74 {dimension_numbers = #tpu.dot_dimension_numbers<[1], [1], [0], [0], [0, 0, 1, 0], [], []>, precision = #tpu.contract_precision<fp32>} : vector<8x8xf32>, vector<8x8xf32>, vector<8x8xf32> -> vector<8x8xf32>
    %207 = arith.addf %206, %161 : vector<8x8xf32>
    %cst_75 = arith.constant dense<0xFF800000> : vector<8xf32>
    %208 = vector.multi_reduction <maximumf>, %207, %cst_75 [1] : vector<8x8xf32> to vector<8xf32>
    %209 = vector.shape_cast %208 : vector<8xf32> to vector<8x1xf32>
    %210 = vector.broadcast %209 : vector<8x1xf32> to vector<8x8xf32>
    %211 = arith.subf %207, %210 : vector<8x8xf32>
    %212 = math.exp %211 : vector<8x8xf32>
    %cst_76 = arith.constant dense<0.000000e+00> : vector<8xf32>
    %213 = vector.multi_reduction <add>, %212, %cst_76 [1] : vector<8x8xf32> to vector<8xf32>
    %214 = vector.shape_cast %213 : vector<8xf32> to vector<8x1xf32>
    %cst_77 = arith.constant 1.000000e+00 : f32
    %215 = vector.broadcast %cst_77 : f32 to vector<8x1xf32>
    %216 = arith.divf %215, %214 : vector<8x1xf32>
    %217 = vector.broadcast %216 : vector<8x1xf32> to vector<8x8xf32>
    %218 = arith.mulf %212, %217 : vector<8x8xf32>
    %cst_78 = arith.constant dense<0.000000e+00> : vector<8x8xf32>
    %219 = tpu.matmul %218, %205, %cst_78 {dimension_numbers = #tpu.dot_dimension_numbers<[1], [0], [0], [1], [0, 0, 1, 1], [], []>, precision = #tpu.contract_precision<fp32>} : vector<8x8xf32>, vector<8x8xf32>, vector<8x8xf32> -> vector<8x8xf32>
    %220 = vector.extract_strided_slice %69 {offsets = [16, 0], sizes = [8, 32], strides = [1, 1]} : vector<32x32xf32> to vector<8x32xf32>
    %cst_79 = arith.constant dense<0.000000e+00> : vector<8x32xf32>
    %221 = tpu.matmul %219, %220, %cst_79 {dimension_numbers = #tpu.dot_dimension_numbers<[1], [0], [0], [1], [0, 0, 1, 1], [], []>, precision = #tpu.contract_precision<fp32>} : vector<8x8xf32>, vector<8x32xf32>, vector<8x32xf32> -> vector<8x32xf32>
    %222 = arith.addf %202, %221 : vector<8x32xf32>
    %223 = vector.extract_strided_slice %63 {offsets = [8, 24], sizes = [8, 8], strides = [1, 1]} : vector<16x32xf32> to vector<8x8xf32>
    %224 = vector.extract_strided_slice %68 {offsets = [8, 24], sizes = [8, 8], strides = [1, 1]} : vector<16x64xf32> to vector<8x8xf32>
    %225 = vector.extract_strided_slice %68 {offsets = [8, 56], sizes = [8, 8], strides = [1, 1]} : vector<16x64xf32> to vector<8x8xf32>
    %cst_80 = arith.constant dense<0.000000e+00> : vector<8x8xf32>
    %226 = tpu.matmul %223, %224, %cst_80 {dimension_numbers = #tpu.dot_dimension_numbers<[1], [1], [0], [0], [0, 0, 1, 0], [], []>, precision = #tpu.contract_precision<fp32>} : vector<8x8xf32>, vector<8x8xf32>, vector<8x8xf32> -> vector<8x8xf32>
    %227 = arith.addf %226, %161 : vector<8x8xf32>
    %cst_81 = arith.constant dense<0xFF800000> : vector<8xf32>
    %228 = vector.multi_reduction <maximumf>, %227, %cst_81 [1] : vector<8x8xf32> to vector<8xf32>
    %229 = vector.shape_cast %228 : vector<8xf32> to vector<8x1xf32>
    %230 = vector.broadcast %229 : vector<8x1xf32> to vector<8x8xf32>
    %231 = arith.subf %227, %230 : vector<8x8xf32>
    %232 = math.exp %231 : vector<8x8xf32>
    %cst_82 = arith.constant dense<0.000000e+00> : vector<8xf32>
    %233 = vector.multi_reduction <add>, %232, %cst_82 [1] : vector<8x8xf32> to vector<8xf32>
    %234 = vector.shape_cast %233 : vector<8xf32> to vector<8x1xf32>
    %cst_83 = arith.constant 1.000000e+00 : f32
    %235 = vector.broadcast %cst_83 : f32 to vector<8x1xf32>
    %236 = arith.divf %235, %234 : vector<8x1xf32>
    %237 = vector.broadcast %236 : vector<8x1xf32> to vector<8x8xf32>
    %238 = arith.mulf %232, %237 : vector<8x8xf32>
    %cst_84 = arith.constant dense<0.000000e+00> : vector<8x8xf32>
    %239 = tpu.matmul %238, %225, %cst_84 {dimension_numbers = #tpu.dot_dimension_numbers<[1], [0], [0], [1], [0, 0, 1, 1], [], []>, precision = #tpu.contract_precision<fp32>} : vector<8x8xf32>, vector<8x8xf32>, vector<8x8xf32> -> vector<8x8xf32>
    %240 = vector.extract_strided_slice %69 {offsets = [24, 0], sizes = [8, 32], strides = [1, 1]} : vector<32x32xf32> to vector<8x32xf32>
    %cst_85 = arith.constant dense<0.000000e+00> : vector<8x32xf32>
    %241 = tpu.matmul %239, %240, %cst_85 {dimension_numbers = #tpu.dot_dimension_numbers<[1], [0], [0], [1], [0, 0, 1, 1], [], []>, precision = #tpu.contract_precision<fp32>} : vector<8x8xf32>, vector<8x32xf32>, vector<8x32xf32> -> vector<8x32xf32>
    %242 = arith.addf %222, %241 : vector<8x32xf32>
    %243 = tpu.concatenate %159, %242 in 0 : vector<8x32xf32>, vector<8x32xf32> -> vector<16x32xf32>
    %244 = vector.broadcast %70 : vector<1x32xf32> to vector<16x32xf32>
    %245 = arith.addf %243, %244 : vector<16x32xf32>
    %246 = arith.addf %0, %245 : vector<16x32xf32>
    %cst_86 = arith.constant dense<0.000000e+00> : vector<16xf32>
    %247 = vector.multi_reduction <add>, %246, %cst_86 [1] : vector<16x32xf32> to vector<16xf32>
    %248 = vector.shape_cast %247 : vector<16xf32> to vector<16x1xf32>
    %cst_87 = arith.constant 3.200000e+01 : f32
    %249 = vector.broadcast %cst_87 : f32 to vector<16x1xf32>
    %250 = arith.divf %248, %249 : vector<16x1xf32>
    %251 = vector.broadcast %250 : vector<16x1xf32> to vector<16x32xf32>
    %252 = arith.subf %246, %251 : vector<16x32xf32>
    %253 = arith.mulf %252, %252 : vector<16x32xf32>
    %cst_88 = arith.constant dense<0.000000e+00> : vector<16xf32>
    %254 = vector.multi_reduction <add>, %253, %cst_88 [1] : vector<16x32xf32> to vector<16xf32>
    %255 = vector.shape_cast %254 : vector<16xf32> to vector<16x1xf32>
    %cst_89 = arith.constant 0.0322580636 : f32
    %256 = vector.broadcast %cst_89 : f32 to vector<16x1xf32>
    %257 = arith.mulf %255, %256 : vector<16x1xf32>
    %258 = math.sqrt %257 : vector<16x1xf32>
    %cst_90 = arith.constant 9.99999997E-7 : f32
    %259 = vector.broadcast %cst_90 : f32 to vector<16x1xf32>
    %260 = arith.addf %258, %259 : vector<16x1xf32>
    %cst_91 = arith.constant 1.000000e+00 : f32
    %261 = vector.broadcast %cst_91 : f32 to vector<16x1xf32>
    %262 = arith.divf %261, %260 : vector<16x1xf32>
    %263 = vector.broadcast %250 : vector<16x1xf32> to vector<16x32xf32>
    %264 = arith.subf %246, %263 : vector<16x32xf32>
    %265 = vector.broadcast %7 : vector<1x32xf32> to vector<16x32xf32>
    %266 = arith.mulf %265, %264 : vector<16x32xf32>
    %267 = vector.broadcast %262 : vector<16x1xf32> to vector<16x32xf32>
    %268 = arith.mulf %266, %267 : vector<16x32xf32>
    %269 = vector.broadcast %8 : vector<1x32xf32> to vector<16x32xf32>
    %270 = arith.addf %268, %269 : vector<16x32xf32>
    %c0_92 = arith.constant 0 : index
    %c0_93 = arith.constant 0 : index
    %271 = vector.load %arg8[%c0_92, %c0_93] : memref<33x64xf32, #tpu.memory_space<vmem>>, vector<32x64xf32>
    %c32_94 = arith.constant 32 : index
    %c0_95 = arith.constant 0 : index
    %272 = vector.load %arg8[%c32_94, %c0_95] : memref<33x64xf32, #tpu.memory_space<vmem>>, vector<1x64xf32>
    %cst_96 = arith.constant dense<0.000000e+00> : vector<16x64xf32>
    %273 = tpu.matmul %270, %271, %cst_96 {dimension_numbers = #tpu.dot_dimension_numbers<[1], [0], [0], [1], [0, 0, 1, 1], [], []>, precision = #tpu.contract_precision<fp32>} : vector<16x32xf32>, vector<32x64xf32>, vector<16x64xf32> -> vector<16x64xf32>
    %274 = vector.broadcast %272 : vector<1x64xf32> to vector<16x64xf32>
    %275 = arith.addf %273, %274 : vector<16x64xf32>
    %cst_97 = arith.constant 0.000000e+00 : f32
    %276 = vector.broadcast %cst_97 : f32 to vector<16x64xf32>
    %277 = arith.maximumf %275, %276 : vector<16x64xf32>
    %c0_98 = arith.constant 0 : index
    %c0_99 = arith.constant 0 : index
    %278 = vector.load %arg9[%c0_98, %c0_99] : memref<65x32xf32, #tpu.memory_space<vmem>>, vector<64x32xf32>
    %c64 = arith.constant 64 : index
    %c0_100 = arith.constant 0 : index
    %279 = vector.load %arg9[%c64, %c0_100] : memref<65x32xf32, #tpu.memory_space<vmem>>, vector<1x32xf32>
    %cst_101 = arith.constant dense<0.000000e+00> : vector<16x32xf32>
    %280 = tpu.matmul %277, %278, %cst_101 {dimension_numbers = #tpu.dot_dimension_numbers<[1], [0], [0], [1], [0, 0, 1, 1], [], []>, precision = #tpu.contract_precision<fp32>} : vector<16x64xf32>, vector<64x32xf32>, vector<16x32xf32> -> vector<16x32xf32>
    %281 = vector.broadcast %279 : vector<1x32xf32> to vector<16x32xf32>
    %282 = arith.addf %280, %281 : vector<16x32xf32>
    %283 = arith.addf %246, %282 : vector<16x32xf32>
    %c0_102 = arith.constant 0 : index
    %c0_103 = arith.constant 0 : index
    %284 = vector.load %arg10[%c0_102, %c0_103] : memref<16x32xf32, #tpu.memory_space<vmem>>, vector<16x32xf32>
    tpu.vector_store %arg10[%c0_102, %c0_103], %283 {strides = array<i32>} : memref<16x32xf32, #tpu.memory_space<vmem>>, vector<16x32xf32>,
    return
  }
  func.func @transform_0(%arg0: i32) -> (i32, i32) {
    %c0_i32 = arith.constant 0 : i32
    %c0_i32_0 = arith.constant 0 : i32
    return %arg0, %c0_i32 : i32, i32
  }
  func.func @transform_1(%arg0: i32) -> (i32, i32) {
    %c0_i32 = arith.constant 0 : i32
    %c0_i32_0 = arith.constant 0 : i32
    return %arg0, %c0_i32 : i32, i32
  }
  func.func @transform_2(%arg0: i32) -> (i32, i32, i32) {
    %c0_i32 = arith.constant 0 : i32
    %c0_i32_0 = arith.constant 0 : i32
    %c0_i32_1 = arith.constant 0 : i32
    return %arg0, %c0_i32, %c0_i32_0 : i32, i32, i32
  }
  func.func @transform_3(%arg0: i32) -> (i32, i32) {
    %c0_i32 = arith.constant 0 : i32
    %c0_i32_0 = arith.constant 0 : i32
    %c0_i32_1 = arith.constant 0 : i32
    return %c0_i32, %c0_i32_0 : i32, i32
  }
  func.func @transform_4(%arg0: i32) -> (i32, i32) {
    %c0_i32 = arith.constant 0 : i32
    %c0_i32_0 = arith.constant 0 : i32
    %c0_i32_1 = arith.constant 0 : i32
    return %c0_i32, %c0_i32_0 : i32, i32
  }
  func.func @transform_5(%arg0: i32) -> (i32, i32) {
    %c0_i32 = arith.constant 0 : i32
    %c0_i32_0 = arith.constant 0 : i32
    %c0_i32_1 = arith.constant 0 : i32
    return %c0_i32, %c0_i32_0 : i32, i32
  }
  func.func @transform_6(%arg0: i32) -> (i32, i32) {
    %c0_i32 = arith.constant 0 : i32
    %c0_i32_0 = arith.constant 0 : i32
    %c0_i32_1 = arith.constant 0 : i32
    return %c0_i32, %c0_i32_0 : i32, i32
  }
  func.func @transform_7(%arg0: i32) -> (i32, i32) {
    %c0_i32 = arith.constant 0 : i32
    %c0_i32_0 = arith.constant 0 : i32
    %c0_i32_1 = arith.constant 0 : i32
    return %c0_i32, %c0_i32_0 : i32, i32
  }
  func.func @transform_8(%arg0: i32) -> (i32, i32) {
    %c0_i32 = arith.constant 0 : i32
    %c0_i32_0 = arith.constant 0 : i32
    %c0_i32_1 = arith.constant 0 : i32
    return %c0_i32, %c0_i32_0 : i32, i32
  }
  func.func @transform_9(%arg0: i32) -> (i32, i32) {
    %c0_i32 = arith.constant 0 : i32
    %c0_i32_0 = arith.constant 0 : i32
    return %arg0, %c0_i32 : i32, i32
  }
}

</mosaic_0001>

<bundles_post_ra>
// kernel: tpu_custom_call.1
= control target key start
LH: loop header
LB: loop body
LE: loop exit
PB: predicated region body
PF: predicated region fallthrough
CT: control target
= control target key end

     0   :  { %vm38_vm0 = vcmask 261120   ;;  %s16395_s0 = inlined_call_operand.vmem [shape: f32[16,32], index: 0, kind: input, shape index: {}]   ;;  %s16396_s1 = inlined_call_operand.vmem [shape: f32[16,32], index: 1, kind: input, shape index: {}]   ;;  %s16397_s2 = inlined_call_operand.vmem [shape: f32[2,8,8], index: 2, kind: input, shape index: {}]   ;;  %s16398_s3 = inlined_call_operand.vmem [shape: f32[6,32], index: 3, kind: input, shape index: {}]   ;;  %s16399_s4 = inlined_call_operand.vmem [shape: f32[33,32], index: 4, kind: input, shape index: {}]   ;;  %s16400_s5 = inlined_call_operand.vmem [shape: f32[33,64], index: 5, kind: input, shape index: {}]   ;;  %s16401_s6 = inlined_call_operand.vmem [shape: f32[33,32], index: 6, kind: input, shape index: {}]   ;;  %s16402_s7 = inlined_call_operand.vmem [shape: f32[33,64], index: 7, kind: input, shape index: {}]   ;;  %s16403_s8 = inlined_call_operand.vmem [shape: f32[65,32], index: 8, kind: input, shape index: {}]   ;;  %s16404_s9 = inlined_call_operand.hbm [shape: f32[16,32], index: 9, kind: output, shape index: {}]  }
   0x1   :  { %v33_v0 = vld [vmem:[%s16395_s0] sm:$0xff]  ;;  %v34_v2 = vld [vmem:[%s16395_s0 + $0x8] sm:$0xff] }
   0x2   :  { %v35_v1 = vld [vmem:[%s16396_s1] sm:$0xff]  ;;  %v39_v3 = vsel %vm38_vm0, %v33_v0, 0.0  ;;  %v36_v5 = vld [vmem:[%s16396_s1 + $0x8] sm:$0xff] }
   0x3   :  { %v94_v4 = vsel %vm38_vm0, %v35_v1, 0.0  ;;  %40 = vadd.xlane.f32.xlu0 %v39_v3 }
   0x4   :  { %95 = vadd.xlane.f32.xlu1 %v94_v4 }
   0x5   :  { %14 = vsyncpa [#allocation3], 0  ;;  %v42_v6 = vsel %vm38_vm0, %v34_v2, 0.0  ;;  %v97_v7 = vsel %vm38_vm0, %v36_v5, 0.0  ;;  %v151_v28 = vld [vmem:[%s16399_s4 + $0x18] sm:$0xff]  ;;  %v150_v30 = vld [vmem:[%s16399_s4 + $0x10] sm:$0xff] }
   0x6   :  { %v15098_v29 = vand.u32 4294901760, %v151_v28  ;;  %v149_v31 = vld [vmem:[%s16399_s4 + $0x8] sm:$0xff]  ;;  %v15109_v33 = vand.u32 4294901760, %v150_v30  ;;  %v148_v38 = vld [vmem:[%s16399_s4] sm:$0xff]  ;;  %vm14998_vm9 = vmmov 0   ;;  %vm1247_vm10 = vcmask 64512  }
   0x7   :  { %43 = vadd.xlane.f32.xlu0 %v42_v6  ;;  %v15111_v34 = vand.u32 4294901760, %v149_v31  ;;  %v15138_v42 = vand.u32 4294901760, %v148_v38  ;;  %s14999_s1 = smov 96   ;;  %s15000_s17 = smov 120  }
   0x8   :  { %98 = vadd.xlane.f32.xlu1 %v97_v7  ;;  %v15107_v32 = vsub.f32 %v151_v28, %v15098_v29  ;;  %13872 = vmatprep.subr.mxu0 %v15098_v29  ;;  %v15119_v36 = vsub.f32 %v150_v30, %v15109_v33  ;;  %s15001_s18 = smov 112   ;;  %s15002_s19 = smov 88  }
   0x9   :  { %13873 = vmatpush3.msra.mxu0 %v15098_v29  ;;  %v15122_v37 = vsub.f32 %v149_v31, %v15111_v34  ;;  %v15146_v46 = vsub.f32 %v148_v38, %v15138_v42  ;;  %s15003_s24 = smov 80   ;;  %s15004_s25 = smov 104  }
   0xa   :  { %v15116_v35 = vand.u32 4294901760, %v15107_v32  ;;  %13874 = vmatprep.subr.mxu0 %v15109_v33  ;;  %v15132_v40 = vand.u32 4294901760, %v15119_v36  ;;  %s15005_s28 = smov 72  }
   0xb   :  { %13875 = vmatpush3.msra.mxu0 %v15109_v33  ;;  %v15135_v41 = vand.u32 4294901760, %v15122_v37  ;;  %v15151_v49 = vand.u32 4294901760, %v15146_v46 }
   0xc   :  { %v280_v39 = vsub.f32 %v15107_v32, %v15116_v35  ;;  %13876 = vmatprep.subr.mxu0 %v15111_v34  ;;  %v287_v44 = vsub.f32 %v15119_v36, %v15132_v40 }
   0xd   :  { %13877 = vmatpush3.msra.mxu0 %v15111_v34  ;;  %v294_v45 = vsub.f32 %v15122_v37, %v15135_v41  ;;  %v301_v50 = vsub.f32 %v15146_v46, %v15151_v49 }
   0xe   :  { %v281_v43 = vand.u32 4294901760, %v280_v39  ;;  %13878 = vmatprep.subr.mxu0 %v15138_v42  ;;  %v288_v47 = vand.u32 4294901760, %v287_v44 }
   0xf   :  { %v295_v48 = vand.u32 4294901760, %v294_v45  ;;  %13879 = vmatpush3.msra.mxu0 %v15138_v42  ;;  %v302_v51 = vand.u32 4294901760, %v301_v50 }
  0x10   :  { %13883 = vmatprep.subr.mxu1 %v281_v43  ;;  %13894 = vmatprep.subr.mxu0 %v15107_v32 }
  0x11   :  { %13884 = vmatpush3.msra.mxu1 %v281_v43 }
  0x12   :  { %13885 = vmatprep.subr.mxu1 %v288_v47 }
  0x13   :  { %13886 = vmatpush3.msra.mxu1 %v288_v47 }
  0x14   :  { %13887 = vmatprep.subr.mxu1 %v295_v48 }
  0x15   :  { %13888 = vmatpush3.msra.mxu1 %v295_v48 }
  0x16   :  { %13889 = vmatprep.subr.mxu1 %v302_v51 }
  0x17   :  { %13890 = vmatpush3.msra.mxu1 %v302_v51 }
  0x18   :  { %13905 = vmatprep.subr.mxu1 %v15098_v29 }
  0x8c   :  { %v41_v8 = vpop.xlane.xlu0 %40 }
  0x8d   :  { %v96_v9 = vpop.xlane.xlu1 %95  ;;  %v46_v10 = vmul.f32 0.03125, %v41_v8 }
  0x8e   :  { %v100_v11 = vmul.f32 0.03125, %v96_v9 }
  0x8f   :  { %v15075_v12 = vsub.f32 %v33_v0, %v46_v10  ;;  %v80_v0 = vlaneseq }
  0x90   :  { %v15077_v13 = vsub.f32 %v35_v1, %v100_v11  ;;  %v44_v14 = vpop.xlane.xlu0 %43 }
  0x91   :  { %v99_v15 = vpop.xlane.xlu1 %98  ;;  %v47_v16 = vmul.f32 0.03125, %v44_v14  ;;  %v50_v18 = vmul.f32 %v15075_v12, %v15075_v12  ;;  %v15157_v11 = vshrl.u32 %v80_v0, 7 }
  0x92   :  { %v101_v17 = vmul.f32 0.03125, %v99_v15  ;;  %v104_v19 = vmul.f32 %v15077_v13, %v15077_v13 }
  0x93   :  { %v15083_v20 = vsub.f32 %v34_v2, %v47_v16  ;;  %v52_v22 = vsel %vm38_vm0, %v50_v18, 0.0  ;;  %v136_v44 = vsub.s32 2, %v15157_v11 }
  0x94   :  { %v15085_v21 = vsub.f32 %v36_v5, %v101_v17  ;;  %53 = vadd.xlane.f32.xlu0 %v52_v22  ;;  %v106_v25 = vsel %vm38_vm0, %v104_v19, 0.0  ;;  %v82_v19 = vsub.s32 0, %v15157_v11  ;;  %v37_v22 = vld [vmem:[%s16398_s3] sm:$0x3f] }
  0x95   :  { %v51_v23 = vmul.f32 %v15083_v20, %v15083_v20 }
  0x96   :  { %v105_v24 = vmul.f32 %v15085_v21, %v15085_v21 }
  0x97   :  { %v55_v26 = vsel %vm38_vm0, %v51_v23, 0.0 }
  0x98   :  { %56 = vadd.xlane.f32.xlu1 %v55_v26  ;;  %107 = vadd.xlane.f32.xlu0 %v106_v25  ;;  %v109_v27 = vsel %vm38_vm0, %v105_v24, 0.0  ;;  %v83_v26 = vrot.slane %v37_v22, %v82_v19 }
  0x9a   :  { %v84_v30 = vmul.f32 %v83_v26, %v15075_v12  ;;  %v85_v45 = vmul.f32 %v83_v26, %v15083_v20  ;;  %v696_v12 = vld [vmem:[%s16400_s5 + $0x18] sm:$0xff] }
  0x9c   :  { %110 = vadd.xlane.f32.xlu1 %v109_v27  ;;  %v90_v27 = vsub.s32 1, %v15157_v11 }
  0x9e   :  { %v91_v38 = vrot.slane %v37_v22, %v90_v27 }
 0x11d   :  { %v54_v52 = vpop.xlane.xlu0 %53 }
 0x11e   :  { %v58_v53 = vmul.f32 0.032258064, %v54_v52  ;;  %v137_v52 = vrot.slane %v37_v22, %v136_v44 }
 0x120   :  { %14916 = vrsqrt.f32 %v58_v53  ;;  %vm62_vm1 = vcmp.eq.f32.partialorder %v58_v53, inf  ;;  %v65_v62 = vand.u32 2147483648, %v58_v53  ;;  %vm64_vm2 = vcmp.eq.f32.partialorder %v58_v53, 0.0 }
 0x121   :  { %v57_v54 = vpop.xlane.xlu1 %56  ;;  %v108_v56 = vpop.xlane.xlu0 %107 }
 0x122   :  { %v59_v55 = vmul.f32 0.032258064, %v57_v54  ;;  %v112_v57 = vmul.f32 0.032258064, %v108_v56  ;;  %v144_v56 = vsub.s32 3, %v15157_v11 }
 0x124   :  { %14918 = vrsqrt.f32 %v59_v55  ;;  %vm69_vm3 = vcmp.eq.f32.partialorder %v59_v55, inf  ;;  %vm116_vm4 = vcmp.eq.f32.partialorder %v112_v57, inf  ;;  %v72_v6 = vand.u32 2147483648, %v59_v55 }
 0x125   :  { %14920 = vrsqrt.f32 %v112_v57  ;;  %v111_v58 = vpop.xlane.xlu1 %110  ;;  %v119_v8 = vand.u32 2147483648, %v112_v57  ;;  %vm71_vm5 = vcmp.eq.f32.partialorder %v59_v55, 0.0  ;;  %vm118_vm6 = vcmp.eq.f32.partialorder %v112_v57, 0.0 }
 0x126   :  { %v113_v59 = vmul.f32 0.032258064, %v111_v58 }
 0x128   :  { %14922 = vrsqrt.f32 %v113_v59  ;;  %vm123_vm7 = vcmp.eq.f32.partialorder %v113_v59, inf  ;;  %v126_v24 = vand.u32 2147483648, %v113_v59  ;;  %vm125_vm8 = vcmp.eq.f32.partialorder %v113_v59, 0.0 }
 0x12d   :  { %v14917_v60 = vpop.eup %14916 }
 0x12e   :  { %v61_v61 = vmul.f32 %v14917_v60, %v58_v53 }
 0x130   :  { %v63_v1 = vsel %vm62_vm1, %v58_v53, %v61_v61  ;;  %v15180_v61 = vand.u32 4294901760, %v696_v12 }
 0x131   :  { %v14919_v63 = vpop.eup %14918  ;;  %v66_v3 = vsel %vm64_vm2, %v65_v62, %v63_v1  ;;  %v695_v62 = vld [vmem:[%s16400_s5 + $0x10] sm:$0xff]  ;;  %vm12804_vm2 = vcmask 523264  }
 0x132   :  { %v14921_v2 = vpop.eup %14920  ;;  %v68_v4 = vmul.f32 %v14919_v63, %v59_v55  ;;  %v74_v5 = vadd.f32 1e-06, %v66_v3 }
 0x133   :  { %v115_v7 = vmul.f32 %v14921_v2, %v112_v57  ;;  %v145_v2 = vrot.slane %v37_v22, %v144_v56 }
 0x134   :  { %v70_v9 = vsel %vm69_vm3, %v59_v55, %v68_v4  ;;  %14924 = vrcp.f32 %v74_v5  ;;  %v15192_v4 = vand.u32 4294901760, %v695_v62 }
 0x135   :  { %v14923_v10 = vpop.eup %14922  ;;  %v73_v14 = vsel %vm71_vm5, %v72_v6, %v70_v9  ;;  %v117_v15 = vsel %vm116_vm4, %v112_v57, %v115_v7  ;;  %v15196_v6 = vsub.f32 %v696_v12, %v15180_v61  ;;  %v693_v7 = vld [vmem:[%s16400_s5] sm:$0xff] }
 0x136   :  { %v75_v16 = vadd.f32 1e-06, %v73_v14  ;;  %v120_v17 = vsel %vm118_vm6, %v119_v8, %v117_v15  ;;  %v122_v18 = vmul.f32 %v14923_v10, %v113_v59  ;;  %v139_v15 = vmul.f32 %v137_v52, %v15085_v21 }
 0x137   :  { %v128_v23 = vadd.f32 1e-06, %v120_v17  ;;  %v15208_v17 = vsub.f32 %v695_v62, %v15192_v4  ;;  %v15214_v19 = vand.u32 4294901760, %v15196_v6 }
 0x138   :  { %14926 = vrcp.f32 %v75_v16  ;;  %v124_v25 = vsel %vm123_vm7, %v113_v59, %v122_v18  ;;  %v138_v59 = vmul.f32 %v137_v52, %v15077_v13  ;;  %v694_v13 = vld [vmem:[%s16400_s5 + $0x8] sm:$0xff]  ;;  %v15210_v18 = vand.u32 4294901760, %v693_v7 }
 0x139   :  { %14928 = vrcp.f32 %v128_v23  ;;  %v127_v28 = vsel %vm125_vm8, %v126_v24, %v124_v25  ;;  %v15202_v9 = vand.u32 4294901760, %v694_v13  ;;  %v15225_v24 = vand.u32 4294901760, %v15208_v17 }
 0x13a   :  { %v129_v31 = vadd.f32 1e-06, %v127_v28  ;;  %v15228_v25 = vsub.f32 %v693_v7, %v15210_v18  ;;  %v825_v26 = vsub.f32 %v15196_v6, %v15214_v19 }
 0x13b   :  { %v15218_v22 = vsub.f32 %v694_v13, %v15202_v9  ;;  %v832_v28 = vsub.f32 %v15208_v17, %v15225_v24 }
 0x13c   :  { %14930 = vrcp.f32 %v129_v31 }
 0x141   :  { %v14925_v39 = vpop.eup %14924 }
 0x142   :  { %v86_v43 = vmul.f32 %v14925_v39, %v84_v30  ;;  %v15247_v30 = vand.u32 4294901760, %v15228_v25 }
 0x144   :  { %v92_v48 = vadd.f32 %v91_v38, %v86_v43 }
 0x145   :  { %v14927_v47 = vpop.eup %14926 }
 0x146   :  { %v87_v50 = vmul.f32 %v14927_v47, %v85_v45  ;;  %v158_v51 = vsel %vm38_vm0, %v92_v48, 0  ;;  %v14929_v57 = vpop.eup %14928  ;;  %v14997_v47 = vmov 0.0   ;;  %v13411_v48 = vld [vmem:[%s16399_s4 + $0x20] ss:$0 sm:$0xff] }
 0x147   :  { %v15168_v53 = vand.u32 4294901760, %v158_v51  ;;  %v140_v1 = vmul.f32 %v14929_v57, %v138_v59 }
 0x148   :  { %v93_v54 = vadd.f32 %v91_v38, %v87_v50  ;;  %v846_v38 = vsub.f32 %v15228_v25, %v15247_v30 }
 0x149   :  { %13891 = vmatprep.mubr.f32.mxu1 %v15168_v53  ;;  %v233_v20 = vsub.f32 %v158_v51, %v15168_v53  ;;  %v14931_v10 = vpop.eup %14930  ;;  %v146_v14 = vadd.f32 %v145_v2, %v140_v1 }
 0x14a   :  { %v161_v55 = vsel %vm38_vm0, %v93_v54, 0  ;;  %v141_v21 = vmul.f32 %v14931_v10, %v139_v15 }
 0x14b   :  { %v15177_v58 = vand.u32 4294901760, %v161_v55  ;;  %v234_v60 = vand.u32 4294901760, %v233_v20  ;;  %v703_v23 = vsel %vm38_vm0, %v146_v14, 0 }
 0x14c   :  { %v147_v27 = vadd.f32 %v145_v2, %v141_v21 }
 0x14d   :  { %v243_v63 = vsub.f32 %v161_v55, %v15177_v58  ;;  %13892 = vmatmul.mubr.f32.vlgmr.msra.gmra.mxu1 %v15177_v58  ;;  %v235_v0 = vsub.f32 %v233_v20, %v234_v60 }
 0x14e   :  { %13906 = vmatpush3.msra.mxu1 %v15098_v29  ;;  %13913 = vmatprep.mubr.f32.mxu1 %v234_v60 }
 0x14f   :  { %13907 = vmatprep.subr.mxu1 %v15109_v33  ;;  %v244_v3 = vand.u32 4294901760, %v243_v63  ;;  %v236_v5 = vand.u32 4294901760, %v235_v0 }
 0x150   :  { %13908 = vmatpush3.msra.mxu1 %v15109_v33 }
 0x151   :  { %13909 = vmatprep.subr.mxu1 %v15111_v34  ;;  %v245_v8 = vsub.f32 %v243_v63, %v244_v3  ;;  %13880 = vmatprep.mubr.f32.mxu0 %v236_v5 }
 0x152   :  { %13910 = vmatpush3.msra.mxu1 %v15111_v34 }
 0x153   :  { %13911 = vmatprep.subr.mxu1 %v15138_v42  ;;  %v246_v16 = vand.u32 4294901760, %v245_v8 }
 0x154   :  { %13912 = vmatpush3.msra.mxu1 %v15138_v42 }
 0x155   :  { %13914 = vmatmul.mubr.f32.vlgmr.msra.gmra.mxu1 %v244_v3  ;;  %13927 = vmatprep.subr.mxu1 %v15098_v29 }
 0x156   :  { %13881 = vmatmul.mubr.f32.vlgmr.msra.gmra.mxu0 %v246_v16  ;;  %13928 = vmatpush3.msra.mxu1 %v15098_v29  ;;  %v15235_v29 = vand.u32 4294901760, %v703_v23 }
 0x157   :  { %13895 = vmatpush3.msra.mxu0 %v15107_v32  ;;  %13935 = vmatprep.mubr.f32.mxu1 %v15168_v53  ;;  %v15238_v32 = vand.u32 4294901760, %v15218_v22 }
 0x158   :  { %13896 = vmatprep.subr.mxu0 %v15119_v36  ;;  %13902 = vmatprep.mubr.f32.mxu0 %v233_v20  ;;  %v778_v31 = vsub.f32 %v703_v23, %v15235_v29 }
 0x159   :  { %13929 = vmatprep.subr.mxu1 %v15109_v33  ;;  %13897 = vmatpush3.msra.mxu0 %v15119_v36  ;;  %v826_v36 = vand.u32 4294901760, %v825_v26 }
 0x15a   :  { %13930 = vmatpush3.msra.mxu1 %v15109_v33  ;;  %13898 = vmatprep.subr.mxu0 %v15122_v37  ;;  %v839_v33 = vsub.f32 %v15218_v22, %v15238_v32  ;;  %v779_v43 = vand.u32 4294901760, %v778_v31 }
 0x15b   :  { %13931 = vmatprep.subr.mxu1 %v15111_v34  ;;  %13899 = vmatpush3.msra.mxu0 %v15122_v37  ;;  %v706_v37 = vsel %vm38_vm0, %v147_v27, 0 }
 0x15c   :  { %13932 = vmatpush3.msra.mxu1 %v15111_v34  ;;  %13900 = vmatprep.subr.mxu0 %v15146_v46  ;;  %v833_v34 = vand.u32 4294901760, %v832_v28  ;;  %v840_v39 = vand.u32 4294901760, %v839_v33  ;;  %v780_v44 = vsub.f32 %v778_v31, %v779_v43 }
 0x15d   :  { %13933 = vmatprep.subr.mxu1 %v15138_v42  ;;  %13901 = vmatpush3.msra.mxu0 %v15146_v46  ;;  %v15263_v46 = vand.u32 4294901760, %v706_v37 }
 0x15e   :  { %13934 = vmatpush3.msra.mxu1 %v15138_v42  ;;  %13903 = vmatmul.mubr.f32.vlgmr.msra.gmra.mxu0 %v243_v63  ;;  %v847_v42 = vand.u32 4294901760, %v846_v38  ;;  %v781_v45 = vand.u32 4294901760, %v780_v44 }
 0x15f   :  { %13916 = vmatprep.subr.mxu0 %v15116_v35  ;;  %13936 = vmatmul.mubr.f32.vlgmr.msra.gmra.mxu1 %v15177_v58 }
 0x160   :  { %13949 = vmatprep.subr.mxu1 %v826_v36  ;;  %13917 = vmatpush3.msra.mxu0 %v15116_v35  ;;  %v788_v35 = vsub.f32 %v706_v37, %v15263_v46 }
 0x161   :  { %13924 = vmatprep.mubr.f32.mxu0 %v15168_v53  ;;  %13950 = vmatpush3.msra.mxu1 %v826_v36 }
 0x162   :  { %13957 = vmatprep.mubr.f32.mxu1 %v15235_v29  ;;  %13918 = vmatprep.subr.mxu0 %v15132_v40 }
 0x163   :  { %13951 = vmatprep.subr.mxu1 %v833_v34  ;;  %13919 = vmatpush3.msra.mxu0 %v15132_v40  ;;  %v789_v40 = vand.u32 4294901760, %v788_v35 }
 0x164   :  { %13952 = vmatpush3.msra.mxu1 %v833_v34  ;;  %13920 = vmatprep.subr.mxu0 %v15135_v41 }
 0x165   :  { %13953 = vmatprep.subr.mxu1 %v840_v39  ;;  %13921 = vmatpush3.msra.mxu0 %v15135_v41  ;;  %v790_v41 = vsub.f32 %v788_v35, %v789_v40 }
 0x166   :  { %13954 = vmatpush3.msra.mxu1 %v840_v39  ;;  %13922 = vmatprep.subr.mxu0 %v15151_v49 }
 0x167   :  { %13955 = vmatprep.subr.mxu1 %v847_v42  ;;  %13923 = vmatpush3.msra.mxu0 %v15151_v49  ;;  %v791_v49 = vand.u32 4294901760, %v790_v41 }
 0x168   :  { %13956 = vmatpush3.msra.mxu1 %v847_v42  ;;  %13925 = vmatmul.mubr.f32.vlgmr.msra.gmra.mxu0 %v15177_v58 }
 0x169   :  { %13938 = vmatprep.subr.mxu0 %v15180_v61  ;;  %13958 = vmatmul.mubr.f32.vlgmr.msra.gmra.mxu1 %v15263_v46 }
 0x16a   :  { %13971 = vmatprep.subr.mxu1 %v15180_v61  ;;  %13939 = vmatpush3.msra.mxu0 %v15180_v61 }
 0x16b   :  { %13946 = vmatprep.mubr.f32.mxu0 %v781_v45  ;;  %13972 = vmatpush3.msra.mxu1 %v15180_v61 }
 0x16c   :  { %13979 = vmatprep.mubr.f32.mxu1 %v779_v43  ;;  %13940 = vmatprep.subr.mxu0 %v15192_v4 }
 0x16d   :  { %13973 = vmatprep.subr.mxu1 %v15192_v4  ;;  %13941 = vmatpush3.msra.mxu0 %v15192_v4 }
 0x16e   :  { %13974 = vmatpush3.msra.mxu1 %v15192_v4  ;;  %13942 = vmatprep.subr.mxu0 %v15202_v9 }
 0x16f   :  { %13975 = vmatprep.subr.mxu1 %v15202_v9  ;;  %13943 = vmatpush3.msra.mxu0 %v15202_v9 }
 0x170   :  { %13976 = vmatpush3.msra.mxu1 %v15202_v9  ;;  %13944 = vmatprep.subr.mxu0 %v15210_v18 }
 0x171   :  { %13977 = vmatprep.subr.mxu1 %v15210_v18  ;;  %13945 = vmatpush3.msra.mxu0 %v15210_v18 }
 0x172   :  { %13978 = vmatpush3.msra.mxu1 %v15210_v18  ;;  %13947 = vmatmul.mubr.f32.vlgmr.msra.gmra.mxu0 %v791_v49 }
 0x173   :  { %13960 = vmatprep.subr.mxu0 %v15196_v6  ;;  %13980 = vmatmul.mubr.f32.vlgmr.msra.gmra.mxu1 %v789_v40 }
 0x174   :  { %13993 = vmatprep.subr.mxu1 %v15180_v61  ;;  %13961 = vmatpush3.msra.mxu0 %v15196_v6 }
 0x175   :  { %13968 = vmatprep.mubr.f32.mxu0 %v778_v31  ;;  %13994 = vmatpush3.msra.mxu1 %v15180_v61 }
 0x176   :  { %14001 = vmatprep.mubr.f32.mxu1 %v15235_v29  ;;  %13962 = vmatprep.subr.mxu0 %v15208_v17 }
 0x177   :  { %13995 = vmatprep.subr.mxu1 %v15192_v4  ;;  %13963 = vmatpush3.msra.mxu0 %v15208_v17 }
 0x178   :  { %13996 = vmatpush3.msra.mxu1 %v15192_v4  ;;  %13964 = vmatprep.subr.mxu0 %v15218_v22  ;;  %v13412_v4 = vld [vmem:[%s16400_s5 + $0x20] ss:$0 sm:$0xff] }
 0x179   :  { %13997 = vmatprep.subr.mxu1 %v15202_v9  ;;  %13965 = vmatpush3.msra.mxu0 %v15218_v22 }
 0x17a   :  { %13998 = vmatpush3.msra.mxu1 %v15202_v9  ;;  %13966 = vmatprep.subr.mxu0 %v15228_v25 }
 0x17b   :  { %13999 = vmatprep.subr.mxu1 %v15210_v18  ;;  %13967 = vmatpush3.msra.mxu0 %v15228_v25 }
 0x17c   :  { %14000 = vmatpush3.msra.mxu1 %v15210_v18  ;;  %13969 = vmatmul.mubr.f32.vlgmr.msra.gmra.mxu0 %v788_v35 }
 0x17d   :  { %13982 = vmatprep.subr.mxu0 %v15214_v19  ;;  %14002 = vmatmul.mubr.f32.vlgmr.msra.gmra.mxu1 %v15263_v46 }
 0x17e   :  { %13983 = vmatpush3.msra.mxu0 %v15214_v19  ;;  %13990 = vmatprep.mubr.f32.mxu0 %v15235_v29 }
 0x17f   :  { %13984 = vmatprep.subr.mxu0 %v15225_v24  ;;  %14009 = vmatprep.subr.mxu1 %v14997_v47 }
 0x180   :  { %13985 = vmatpush3.msra.mxu0 %v15225_v24  ;;  %14011 = vmatprep.mubr.msk.f32.mxu1 %vm14998_vm9, %v14997_v47 }
 0x181   :  { %13986 = vmatprep.subr.mxu0 %v15238_v32 }
 0x182   :  { %13987 = vmatpush3.msra.mxu0 %v15238_v32 }
 0x183   :  { %13988 = vmatprep.subr.mxu0 %v15247_v30 }
 0x184   :  { %13989 = vmatpush3.msra.mxu0 %v15247_v30 }
 0x185   :  { %13991 = vmatmul.mubr.f32.vlgmr.msra.gmra.mxu0 %v15263_v46  ;;  %14004 = vmatprep.subr.mxu0 %v14997_v47 }
 0x186   :  { %14006 = vmatprep.mubr.msk.f32.mxu0 %vm14998_vm9, %v14997_v47 }
 0x20d   :  { %v13893_v52 = vpop.f32.mrf.mxu1 }
 0x20f   :  { %v339_v12 = vpop.f32.mrf.mxu1 }
 0x215   :  { %v13915_v56 = vpop.f32.mrf.mxu1 }
 0x216   :  { %v13882_v50 = vpop.f32.mrf.mxu0 }
 0x217   :  { %v249_v51 = vadd.f32 %v13882_v50, %v13411_v48  ;;  %v509_v60 = vpop.f32.mrf.mxu1  ;;  %v1241_v50 = vld [vmem:[%s16397_s2] sm:$0xff] }
 0x218   :  { %v238_v54 = vpop.f32.mrf.mxu0  ;;  %vm1243_vm11 = vcmp.gt.f32.partialorder %v1241_v50, 0.5 }
 0x219   :  { %v346_v53 = vadd.f32 %v13893_v52, %v249_v51  ;;  %v239_v58 = vadd.f32 %v13411_v48, %v238_v54 }
 0x21b   :  { %v340_v62 = vadd.f32 %v339_v12, %v239_v58 }
 0x21e   :  { %v13904_v55 = vpop.f32.mrf.mxu0 }
 0x21f   :  { %v433_v20 = vadd.f32 %v13904_v55, %v346_v53  ;;  %v13937_v0 = vpop.f32.mrf.mxu1  ;;  %v15366_v53 = vsel %vm1243_vm11, -1e+09, %v14997_v47 }
 0x220   :  { %v425_v59 = vpop.f32.mrf.mxu0 }
 0x221   :  { %v518_v57 = vadd.f32 %v13915_v56, %v433_v20  ;;  %v426_v1 = vadd.f32 %v425_v59, %v340_v62  ;;  %v681_v6 = vpop.f32.mrf.mxu1 }
 0x223   :  { %v510_v3 = vadd.f32 %v509_v60, %v426_v1 }
 0x228   :  { %v13926_v61 = vpop.f32.mrf.mxu0 }
 0x229   :  { %v607_v63 = vadd.f32 %v13926_v61, %v518_v57  ;;  %v13959_v9 = vpop.f32.mrf.mxu1 }
 0x22a   :  { %v600_v13 = vpop.f32.mrf.mxu0 }
 0x22b   :  { %v15329_v2 = vadd.f32 %v13937_v0, %v607_v63  ;;  %v601_v5 = vadd.f32 %v600_v13, %v510_v3  ;;  %v884_v17 = vpop.f32.mrf.mxu1 }
 0x22d   :  { %v682_v10 = vadd.f32 %v681_v6, %v601_v5 }
 0x22f   :  { %v15334_v15 = vmul.f32 0.35355338, %v682_v10 }
 0x231   :  { %v1249_v22 = vsel %vm1247_vm10, %v15334_v15, 0 }
 0x232   :  { %v13948_v7 = vpop.f32.mrf.mxu0  ;;  %v1320_v26 = vand.u32 4294901760, %v1249_v22 }
 0x233   :  { %v794_v8 = vadd.f32 %v13948_v7, %v13412_v4  ;;  %v13981_v23 = vpop.f32.mrf.mxu1 }
 0x234   :  { %v783_v16 = vpop.f32.mrf.mxu0  ;;  %v1321_v28 = vsub.f32 %v1249_v22, %v1320_v26 }
 0x235   :  { %v891_v14 = vadd.f32 %v13959_v9, %v794_v8  ;;  %v784_v18 = vadd.f32 %v13412_v4, %v783_v16  ;;  %v1054_v27 = vpop.f32.mrf.mxu1 }
 0x236   :  { %v1322_v46 = vand.u32 4294901760, %v1321_v28 }
 0x237   :  { %v885_v29 = vadd.f32 %v884_v17, %v784_v18 }
 0x238   :  { %v1323_v35 = vsub.f32 %v1321_v28, %v1322_v46 }
 0x23a   :  { %v1324_v45 = vand.u32 4294901760, %v1323_v35 }
 0x23c   :  { %v13970_v19 = vpop.f32.mrf.mxu0 }
 0x23d   :  { %v978_v21 = vadd.f32 %v13970_v19, %v891_v14  ;;  %v14003_v30 = vpop.f32.mrf.mxu1 }
 0x23e   :  { %v970_v24 = vpop.f32.mrf.mxu0 }
 0x23f   :  { %v1063_v25 = vadd.f32 %v13981_v23, %v978_v21  ;;  %v971_v32 = vadd.f32 %v970_v24, %v885_v29  ;;  %v1226_v39 = vpop.f32.mrf.mxu1 }
 0x241   :  { %v1055_v37 = vadd.f32 %v1054_v27, %v971_v32 }
 0x245   :  { %v13992_v36 = vpop.f32.mrf.mxu0 }
 0x246   :  { %v1152_v33 = vadd.f32 %v13992_v36, %v1063_v25 }
 0x247   :  { %v1145_v31 = vpop.f32.mrf.mxu0 }
 0x248   :  { %v15338_v34 = vadd.f32 %v14003_v30, %v1152_v33  ;;  %v1146_v38 = vadd.f32 %v1145_v31, %v1055_v37 }
 0x24a   :  { %v15340_v43 = vadd.f32 %v1226_v39, %v1146_v38 }
 0x24c   :  { %v1252_v42 = vsel %vm1247_vm10, %v15340_v43, 0 }
 0x24d   :  { %v1285_v44 = vand.u32 4294901760, %v1252_v42 }
 0x24f   :  { %14005 = vmatpush3.xpose.msra.mxu0 %v1285_v44  ;;  %v1362_v40 = vsub.f32 %v1252_v42, %v1285_v44 }
 0x250   :  { %14014 = vmatprep.subr.mxu0 %v14997_v47 }
 0x251   :  { %v1363_v41 = vand.u32 4294901760, %v1362_v40 }
 0x252   :  { %14007 = vmatmul.mubr.f32.vlgmr.msra.gmra.mxu0 %v1324_v45 }
 0x253   :  { %14015 = vmatpush3.xpose.msra.mxu0 %v1362_v40  ;;  %14016 = vmatprep.mubr.msk.f32.mxu0 %vm14998_vm9, %v14997_v47  ;;  %v1364_v49 = vsub.f32 %v1362_v40, %v1363_v41 }
 0x254   :  { %14024 = vmatprep.subr.mxu0 %v14997_v47 }
 0x255   :  { %v1365_v48 = vand.u32 4294901760, %v1364_v49 }
 0x256   :  { %14017 = vmatmul.mubr.f32.vlgmr.msra.gmra.mxu0 %v1321_v28 }
 0x257   :  { %14010 = vmatpush3.xpose.msra.mxu1 %v1365_v48  ;;  %14025 = vmatpush3.xpose.msra.mxu0 %v1363_v41 }
 0x258   :  { %14026 = vmatprep.mubr.msk.f32.mxu0 %vm14998_vm9, %v14997_v47  ;;  %14019 = vmatprep.subr.mxu1 %v14997_v47 }
 0x259   :  { %14034 = vmatprep.subr.mxu0 %v14997_v47 }
 0x25a   :  { %14012 = vmatmul.mubr.f32.vlgmr.msra.gmra.mxu1 %v1320_v26  ;;  %14027 = vmatmul.mubr.f32.vlgmr.msra.gmra.mxu0 %v1320_v26 }
 0x25b   :  { %14020 = vmatpush3.xpose.msra.mxu1 %v1285_v44  ;;  %14021 = vmatprep.mubr.msk.f32.mxu1 %vm14998_vm9, %v14997_v47 }
 0x25c   :  { %14029 = vmatprep.subr.mxu1 %v14997_v47  ;;  %14036 = vmatprep.mubr.msk.f32.mxu0 %vm14998_vm9, %v14997_v47 }
 0x25e   :  { %14022 = vmatmul.mubr.f32.vlgmr.msra.gmra.mxu1 %v1322_v46 }
 0x25f   :  { %14030 = vmatpush3.xpose.msra.mxu1 %v1285_v44  ;;  %14031 = vmatprep.mubr.msk.f32.mxu1 %vm14998_vm9, %v14997_v47 }
 0x260   :  { %14039 = vmatprep.subr.mxu1 %v14997_v47 }
 0x262   :  { %14032 = vmatmul.mubr.f32.vlgmr.msra.gmra.mxu1 %v1320_v26 }
 0x263   :  { %14041 = vmatprep.mubr.msk.f32.mxu1 %vm14998_vm9, %v14997_v47 }
 0x312   :  { %v1326_v51 = vpop.f32.mrf.mxu0 }
 0x313   :  { %v1327_v55 = vadd.f32 %v1326_v51, %v15366_v53 }
 0x314   :  { %v14008_v52 = vpop.f32.mrf.mxu0 }
 0x316   :  { %v1476_v54 = vpop.f32.mrf.mxu0 }
 0x318   :  { %v14018_v12 = vpop.f32.mrf.mxu0 }
 0x31a   :  { %v1402_v20 = vpop.f32.mrf.mxu1  ;;  %v1624_v56 = vpop.f32.mrf.mxu0 }
 0x31b   :  { %v1403_v57 = vadd.f32 %v1402_v20, %v1327_v55 }
 0x31c   :  { %v14013_v58 = vpop.f32.mrf.mxu1  ;;  %v14028_v59 = vpop.f32.mrf.mxu0 }
 0x31d   :  { %v1477_v60 = vadd.f32 %v1476_v54, %v1403_v57 }
 0x31e   :  { %v1550_v61 = vpop.f32.mrf.mxu1 }
 0x31f   :  { %v1551_v62 = vadd.f32 %v1550_v61, %v1477_v60 }
 0x320   :  { %v14023_v63 = vpop.f32.mrf.mxu1 }
 0x321   :  { %v1625_v0 = vadd.f32 %v1624_v56, %v1551_v62 }
 0x322   :  { %v1696_v1 = vpop.f32.mrf.mxu1 }
 0x323   :  { %v1697_v13 = vadd.f32 %v1696_v1, %v1625_v0 }
 0x324   :  { %v14033_v3 = vpop.f32.mrf.mxu1 }
 0x325   :  { %v1700_v4 = vsel %vm1247_vm10, %v1697_v13, -inf }
 0x326   :  { %1701 = vmax.xlane.f32.xlu0 %v1700_v4 }
 0x33c   :  { %1712 = vrot.lane.b32.xlu0 %v15340_v43, %s14999_s1 }
 0x3af   :  { %v1702_v5 = vpop.xlane.xlu0 %1701 }
 0x3b0   :  { %v1703_v6 = vsub.f32 %v1697_v13, %v1702_v5 }
 0x3b2   :  { %v1704_v7 = vmul.f32 1.442695, %v1703_v6 }
 0x3b3   :  { %v1713_v8 = vpop.permute.xlu0 %1712 }
 0x3b4   :  { %14932 = vpow2.f32 %v1704_v7  ;;  %v1749_v9 = vand.u32 4294901760, %v1713_v8 }
 0x3b6   :  { %v1826_v10 = vsub.f32 %v1713_v8, %v1749_v9  ;;  %14035 = vmatpush3.msra.mxu0 %v1749_v9 }
 0x3b7   :  { %14044 = vmatprep.subr.mxu0 %v14997_v47 }
 0x3b8   :  { %v1827_v14 = vand.u32 4294901760, %v1826_v10 }
 0x3ba   :  { %v1828_v16 = vsub.f32 %v1826_v10, %v1827_v14 }
 0x3bc   :  { %v1829_v17 = vand.u32 4294901760, %v1828_v16 }
 0x3be   :  { %14040 = vmatpush3.msra.mxu1 %v1829_v17 }
 0x3bf   :  { %14049 = vmatprep.subr.mxu1 %v14997_v47 }
 0x3c1   :  { %v14933_v18 = vpop.eup %14932 }
 0x3c2   :  { %v1706_v19 = vsel %vm1247_vm10, %v14933_v18, 0.0 }
 0x3c3   :  { %1707 = vadd.xlane.f32.xlu1 %v1706_v19 }
 0x3d4   :  { %2166 = vrot.lane.b32.xlu1 %v15340_v43, %s15000_s17 }
 0x3d8   :  { %2164 = vrot.lane.b32.xlu1 %v15334_v15, %s15000_s17 }
 0x44c   :  { %v1708_v22 = vpop.xlane.xlu1 %1707 }
 0x44d   :  { %14934 = vrcp.f32 %v1708_v22 }
 0x450   :  { %v2167_v21 = vpop.permute.xlu1 %2166 }
 0x451   :  { %v2170_v23 = vsel %vm1247_vm10, %v2167_v21, 0 }
 0x452   :  { %v2203_v24 = vand.u32 4294901760, %v2170_v23 }
 0x454   :  { %v2280_v26 = vsub.f32 %v2170_v23, %v2203_v24  ;;  %v2165_v32 = vpop.permute.xlu1 %2164 }
 0x455   :  { %v2168_v36 = vsel %vm1247_vm10, %v2165_v32, 0 }
 0x456   :  { %v2281_v30 = vand.u32 4294901760, %v2280_v26  ;;  %v2238_v37 = vand.u32 4294901760, %v2168_v36 }
 0x458   :  { %v2282_v38 = vsub.f32 %v2280_v26, %v2281_v30  ;;  %v2239_v39 = vsub.f32 %v2168_v36, %v2238_v37 }
 0x45a   :  { %v14935_v25 = vpop.eup %14934  ;;  %v2283_v35 = vand.u32 4294901760, %v2282_v38  ;;  %v2240_v44 = vand.u32 4294901760, %v2239_v39 }
 0x45b   :  { %v1711_v29 = vmul.f32 %v14935_v25, %v14933_v18 }
 0x45c   :  { %v2241_v40 = vsub.f32 %v2239_v39, %v2240_v44 }
 0x45d   :  { %v1716_v27 = vsel %vm1247_vm10, %v1711_v29, 0 }
 0x45e   :  { %v1784_v28 = vand.u32 4294901760, %v1716_v27  ;;  %v2242_v45 = vand.u32 4294901760, %v2241_v40 }
 0x460   :  { %v1785_v33 = vsub.f32 %v1716_v27, %v1784_v28  ;;  %14042 = vmatmul.mubr.f32.vlgmr.msra.gmra.mxu1 %v1784_v28 }
 0x461   :  { %14050 = vmatpush3.msra.mxu1 %v1749_v9  ;;  %14051 = vmatprep.mubr.msk.f32.mxu1 %vm14998_vm9, %v14997_v47 }
 0x462   :  { %14059 = vmatprep.subr.mxu1 %v14997_v47  ;;  %v1786_v31 = vand.u32 4294901760, %v1785_v33 }
 0x464   :  { %14052 = vmatmul.mubr.f32.vlgmr.msra.gmra.mxu1 %v1786_v31  ;;  %v1787_v46 = vsub.f32 %v1785_v33, %v1786_v31 }
 0x465   :  { %14060 = vmatpush3.msra.mxu1 %v1749_v9  ;;  %14061 = vmatprep.mubr.msk.f32.mxu1 %vm14998_vm9, %v14997_v47 }
 0x466   :  { %14069 = vmatprep.subr.mxu1 %v14997_v47  ;;  %v1788_v42 = vand.u32 4294901760, %v1787_v46 }
 0x468   :  { %14037 = vmatmul.mubr.f32.vlgmr.msra.gmra.mxu0 %v1788_v42  ;;  %14062 = vmatmul.mubr.f32.vlgmr.msra.gmra.mxu1 %v1784_v28 }
 0x469   :  { %14045 = vmatpush3.msra.mxu0 %v1826_v10  ;;  %14070 = vmatpush3.xpose.msra.mxu1 %v2283_v35 }
 0x46a   :  { %14046 = vmatprep.mubr.msk.f32.mxu0 %vm14998_vm9, %v14997_v47  ;;  %14054 = vmatprep.subr.mxu0 %v14997_v47 }
 0x46b   :  { %14071 = vmatprep.mubr.msk.f32.mxu1 %vm14998_vm9, %v14997_v47  ;;  %14079 = vmatprep.subr.mxu1 %v14997_v47 }
 0x46c   :  { %14047 = vmatmul.mubr.f32.vlgmr.msra.gmra.mxu0 %v1785_v33  ;;  %14072 = vmatmul.mubr.f32.vlgmr.msra.gmra.mxu1 %v2238_v37 }
 0x46d   :  { %14055 = vmatpush3.msra.mxu0 %v1827_v14  ;;  %14080 = vmatpush3.xpose.msra.mxu1 %v2203_v24 }
 0x46e   :  { %14056 = vmatprep.mubr.msk.f32.mxu0 %vm14998_vm9, %v14997_v47  ;;  %14064 = vmatprep.subr.mxu0 %v14997_v47 }
 0x46f   :  { %14081 = vmatprep.mubr.msk.f32.mxu1 %vm14998_vm9, %v14997_v47  ;;  %14089 = vmatprep.subr.mxu1 %v14997_v47 }
 0x470   :  { %14057 = vmatmul.mubr.f32.vlgmr.msra.gmra.mxu0 %v1784_v28  ;;  %14082 = vmatmul.mubr.f32.vlgmr.msra.gmra.mxu1 %v2240_v44 }
 0x471   :  { %14065 = vmatpush3.xpose.msra.mxu0 %v2203_v24  ;;  %14090 = vmatpush3.xpose.msra.mxu1 %v2203_v24 }
 0x472   :  { %14066 = vmatprep.mubr.msk.f32.mxu0 %vm14998_vm9, %v14997_v47  ;;  %14074 = vmatprep.subr.mxu0 %v14997_v47 }
 0x473   :  { %14091 = vmatprep.mubr.msk.f32.mxu1 %vm14998_vm9, %v14997_v47  ;;  %14099 = vmatprep.subr.mxu1 %v14997_v47 }
 0x474   :  { %14067 = vmatmul.mubr.f32.vlgmr.msra.gmra.mxu0 %v2242_v45  ;;  %14092 = vmatmul.mubr.f32.vlgmr.msra.gmra.mxu1 %v2238_v37  ;;  %v1237_v45 = vld [vmem:[%s16401_s6 + $0x8] sm:$0xff] }
 0x475   :  { %14075 = vmatpush3.xpose.msra.mxu0 %v2280_v26  ;;  %14076 = vmatprep.mubr.msk.f32.mxu0 %vm14998_vm9, %v14997_v47 }
 0x476   :  { %14084 = vmatprep.subr.mxu0 %v14997_v47  ;;  %14101 = vmatprep.mubr.msk.f32.mxu1 %vm14998_vm9, %v14997_v47 }
 0x478   :  { %14077 = vmatmul.mubr.f32.vlgmr.msra.gmra.mxu0 %v2239_v39 }
 0x479   :  { %14085 = vmatpush3.xpose.msra.mxu0 %v2281_v30  ;;  %14086 = vmatprep.mubr.msk.f32.mxu0 %vm14998_vm9, %v14997_v47 }
 0x47a   :  { %14094 = vmatprep.subr.mxu0 %v14997_v47 }
 0x47c   :  { %14087 = vmatmul.mubr.f32.vlgmr.msra.gmra.mxu0 %v2238_v37 }
 0x47d   :  { %14096 = vmatprep.mubr.msk.f32.mxu0 %vm14998_vm9, %v14997_v47 }
 0x520   :  { %v1866_v41 = vpop.f32.mrf.mxu1 }
 0x522   :  { %v14043_v49 = vpop.f32.mrf.mxu1 }
 0x524   :  { %v2014_v48 = vpop.f32.mrf.mxu1 }
 0x526   :  { %v14053_v50 = vpop.f32.mrf.mxu1 }
 0x528   :  { %v1790_v51 = vpop.f32.mrf.mxu0  ;;  %v2160_v52 = vpop.f32.mrf.mxu1 }
 0x529   :  { %v1867_v54 = vadd.f32 %v1866_v41, %v1790_v51  ;;  %v15449_v41 = vand.u32 4294901760, %v1237_v45 }
 0x52a   :  { %v14038_v12 = vpop.f32.mrf.mxu0  ;;  %v14063_v55 = vpop.f32.mrf.mxu1 }
 0x52b   :  { %v15452_v49 = vsub.f32 %v1237_v45, %v15449_v41 }
 0x52c   :  { %v1940_v20 = vpop.f32.mrf.mxu0  ;;  %v2320_v56 = vpop.f32.mrf.mxu1 }
 0x52d   :  { %v1941_v57 = vadd.f32 %v1940_v20, %v1867_v54 }
 0x52e   :  { %v14048_v58 = vpop.f32.mrf.mxu0  ;;  %v14073_v59 = vpop.f32.mrf.mxu1 }
 0x52f   :  { %v2015_v60 = vadd.f32 %v2014_v48, %v1941_v57  ;;  %v15457_v48 = vand.u32 4294901760, %v15452_v49 }
 0x530   :  { %v2088_v61 = vpop.f32.mrf.mxu0  ;;  %v2468_v62 = vpop.f32.mrf.mxu1 }
 0x531   :  { %v2089_v63 = vadd.f32 %v2088_v61, %v2015_v60  ;;  %v3195_v50 = vsub.f32 %v15452_v49, %v15457_v48  ;;  %v1236_v60 = vld [vmem:[%s16401_s6] sm:$0xff] }
 0x532   :  { %v14058_v0 = vpop.f32.mrf.mxu0  ;;  %v14083_v1 = vpop.f32.mrf.mxu1 }
 0x533   :  { %v15416_v13 = vadd.f32 %v2160_v52, %v2089_v63  ;;  %v15461_v51 = vand.u32 4294901760, %v3195_v50  ;;  %v15468_v0 = vand.u32 4294901760, %v1236_v60 }
 0x534   :  { %v2244_v3 = vpop.f32.mrf.mxu0  ;;  %v2614_v4 = vpop.f32.mrf.mxu1 }
 0x535   :  { %v2245_v5 = vadd.f32 %v2244_v3, %v15366_v53 }
 0x536   :  { %v14068_v6 = vpop.f32.mrf.mxu0  ;;  %v14093_v7 = vpop.f32.mrf.mxu1 }
 0x537   :  { %v2321_v8 = vadd.f32 %v2320_v56, %v2245_v5  ;;  %v15471_v6 = vsub.f32 %v1236_v60, %v15468_v0 }
 0x538   :  { %v2394_v9 = vpop.f32.mrf.mxu0 }
 0x539   :  { %v2395_v10 = vadd.f32 %v2394_v9, %v2321_v8 }
 0x53a   :  { %v14078_v14 = vpop.f32.mrf.mxu0 }
 0x53b   :  { %v2469_v16 = vadd.f32 %v2468_v62, %v2395_v10  ;;  %v15475_v14 = vand.u32 4294901760, %v15471_v6 }
 0x53c   :  { %v2542_v17 = vpop.f32.mrf.mxu0 }
 0x53d   :  { %v2543_v18 = vadd.f32 %v2542_v17, %v2469_v16  ;;  %v3532_v16 = vsel %vm1247_vm10, %v15416_v13, 0 }
 0x53e   :  { %v14088_v19 = vpop.f32.mrf.mxu0 }
 0x53f   :  { %v2615_v22 = vadd.f32 %v2614_v4, %v2543_v18  ;;  %v15483_v19 = vand.u32 4294901760, %v3532_v16 }
 0x541   :  { %v2618_v21 = vsel %vm1247_vm10, %v2615_v22, -inf }
 0x542   :  { %2619 = vmax.xlane.f32.xlu1 %v2618_v21  ;;  %v3644_v21 = vsub.f32 %v15471_v6, %v15475_v14 }
 0x553   :  { %3982 = vrot.lane.b32.xlu1 %v15340_v43, %s15001_s18 }
 0x557   :  { %3980 = vrot.lane.b32.xlu1 %v15334_v15, %s15001_s18 }
 0x5cb   :  { %v2620_v23 = vpop.xlane.xlu1 %2619 }
 0x5cc   :  { %v2621_v24 = vsub.f32 %v2615_v22, %v2620_v23 }
 0x5ce   :  { %v2622_v25 = vmul.f32 1.442695, %v2621_v24  ;;  %v3601_v24 = vsub.f32 %v3532_v16, %v15483_v19 }
 0x5cf   :  { %v3983_v8 = vpop.permute.xlu1 %3982 }
 0x5d0   :  { %14936 = vpow2.f32 %v2622_v25  ;;  %v3986_v17 = vsel %vm1247_vm10, %v3983_v8, 0 }
 0x5d1   :  { %v15488_v23 = vand.u32 4294901760, %v3986_v17 }
 0x5dd   :  { %v14937_v26 = vpop.eup %14936 }
 0x5de   :  { %v2624_v29 = vsel %vm1247_vm10, %v14937_v26, 0.0 }
 0x5df   :  { %2625 = vadd.xlane.f32.xlu0 %v2624_v29  ;;  %v15498_v29 = vsub.f32 %v3986_v17, %v15488_v23 }
 0x5f5   :  { %2630 = vrot.lane.b32.xlu0 %v15340_v43, %s15002_s19 }
 0x668   :  { %v2626_v32 = vpop.xlane.xlu0 %2625 }
 0x669   :  { %14938 = vrcp.f32 %v2626_v32  ;;  %v3981_v32 = vpop.permute.xlu1 %3980 }
 0x66c   :  { %v2631_v27 = vpop.permute.xlu0 %2630 }
 0x66d   :  { %v2667_v28 = vand.u32 4294901760, %v2631_v27 }
 0x66f   :  { %v2744_v30 = vsub.f32 %v2631_v27, %v2667_v28  ;;  %14095 = vmatpush3.msra.mxu0 %v2667_v28  ;;  %v3602_v27 = vand.u32 4294901760, %v3601_v24 }
 0x670   :  { %14104 = vmatprep.subr.mxu0 %v14997_v47 }
 0x671   :  { %v2745_v36 = vand.u32 4294901760, %v2744_v30 }
 0x673   :  { %v2746_v33 = vsub.f32 %v2744_v30, %v2745_v36 }
 0x675   :  { %v2747_v37 = vand.u32 4294901760, %v2746_v33  ;;  %v3603_v33 = vsub.f32 %v3601_v24, %v3602_v27 }
 0x676   :  { %v14939_v31 = vpop.eup %14938 }
 0x677   :  { %14100 = vmatpush3.msra.mxu1 %v2747_v37  ;;  %v2629_v38 = vmul.f32 %v14939_v31, %v14937_v26  ;;  %v15495_v26 = vand.u32 4294901760, %v3644_v21 }
 0x678   :  { %14109 = vmatprep.subr.mxu1 %v14997_v47 }
 0x679   :  { %v2634_v46 = vsel %vm1247_vm10, %v2629_v38, 0  ;;  %v3604_v38 = vand.u32 4294901760, %v3603_v33 }
 0x67a   :  { %v2702_v39 = vand.u32 4294901760, %v2634_v46 }
 0x67c   :  { %v2703_v42 = vsub.f32 %v2634_v46, %v2702_v39  ;;  %14102 = vmatmul.mubr.f32.vlgmr.msra.gmra.mxu1 %v2702_v39 }
 0x67d   :  { %14110 = vmatpush3.msra.mxu1 %v2667_v28  ;;  %14111 = vmatprep.mubr.msk.f32.mxu1 %vm14998_vm9, %v14997_v47 }
 0x67e   :  { %14119 = vmatprep.subr.mxu1 %v14997_v47  ;;  %v2704_v35 = vand.u32 4294901760, %v2703_v42 }
 0x680   :  { %14112 = vmatmul.mubr.f32.vlgmr.msra.gmra.mxu1 %v2704_v35  ;;  %v2705_v44 = vsub.f32 %v2703_v42, %v2704_v35 }
 0x681   :  { %14120 = vmatpush3.msra.mxu1 %v2667_v28  ;;  %14121 = vmatprep.mubr.msk.f32.mxu1 %vm14998_vm9, %v14997_v47  ;;  %v4097_v28 = vand.u32 4294901760, %v15498_v29 }
 0x682   :  { %v2706_v40 = vand.u32 4294901760, %v2705_v44  ;;  %14129 = vmatprep.subr.mxu1 %v14997_v47 }
 0x683   :  { %v4098_v37 = vsub.f32 %v15498_v29, %v4097_v28 }
 0x684   :  { %14097 = vmatmul.mubr.f32.vlgmr.msra.gmra.mxu0 %v2706_v40  ;;  %14122 = vmatmul.mubr.f32.vlgmr.msra.gmra.mxu1 %v2702_v39 }
 0x685   :  { %14105 = vmatpush3.msra.mxu0 %v2744_v30  ;;  %14106 = vmatprep.mubr.msk.f32.mxu0 %vm14998_vm9, %v14997_v47  ;;  %v3984_v30 = vsel %vm1247_vm10, %v3981_v32, 0  ;;  %v4099_v46 = vand.u32 4294901760, %v4098_v37 }
 0x686   :  { %14114 = vmatprep.subr.mxu0 %v14997_v47  ;;  %14131 = vmatprep.mubr.msk.f32.mxu1 %vm14998_vm9, %v14997_v47 }
 0x687   :  { %14130 = vmatpush3.msra.mxu1 %v15461_v51 }
 0x688   :  { %14107 = vmatmul.mubr.f32.vlgmr.msra.gmra.mxu0 %v2703_v42  ;;  %14139 = vmatprep.subr.mxu1 %v14997_v47 }
 0x689   :  { %14115 = vmatpush3.msra.mxu0 %v2745_v36  ;;  %14116 = vmatprep.mubr.msk.f32.mxu0 %vm14998_vm9, %v14997_v47  ;;  %v4054_v36 = vand.u32 4294901760, %v3984_v30 }
 0x68a   :  { %14124 = vmatprep.subr.mxu0 %v14997_v47 }
 0x68b   :  { %v4055_v31 = vsub.f32 %v3984_v30, %v4054_v36 }
 0x68c   :  { %14117 = vmatmul.mubr.f32.vlgmr.msra.gmra.mxu0 %v2702_v39 }
 0x68d   :  { %14126 = vmatprep.mubr.msk.f32.mxu0 %vm14998_vm9, %v14997_v47  ;;  %14125 = vmatpush3.msra.mxu0 %v15449_v41  ;;  %v4056_v39 = vand.u32 4294901760, %v4055_v31 }
 0x68e   :  { %14134 = vmatprep.subr.mxu0 %v14997_v47 }
 0x68f   :  { %v4057_v42 = vsub.f32 %v4055_v31, %v4056_v39 }
 0x691   :  { %v4058_v35 = vand.u32 4294901760, %v4057_v42 }
 0x73c   :  { %v2784_v52 = vpop.f32.mrf.mxu1 }
 0x73e   :  { %v14103_v54 = vpop.f32.mrf.mxu1 }
 0x740   :  { %v2932_v12 = vpop.f32.mrf.mxu1 }
 0x742   :  { %v14113_v55 = vpop.f32.mrf.mxu1 }
 0x744   :  { %v2708_v20 = vpop.f32.mrf.mxu0  ;;  %v3078_v56 = vpop.f32.mrf.mxu1 }
 0x745   :  { %v2785_v59 = vadd.f32 %v2784_v52, %v2708_v20 }
 0x746   :  { %v14098_v57 = vpop.f32.mrf.mxu0  ;;  %v14123_v58 = vpop.f32.mrf.mxu1 }
 0x748   :  { %v2858_v61 = vpop.f32.mrf.mxu0 }
 0x749   :  { %v2859_v62 = vadd.f32 %v2858_v61, %v2785_v59 }
 0x74a   :  { %v14108_v63 = vpop.f32.mrf.mxu0 }
 0x74b   :  { %v2933_v1 = vadd.f32 %v2932_v12, %v2859_v62 }
 0x74c   :  { %v3006_v3 = vpop.f32.mrf.mxu0 }
 0x74d   :  { %v3007_v4 = vadd.f32 %v3006_v3, %v2933_v1 }
 0x74e   :  { %v14118_v5 = vpop.f32.mrf.mxu0 }
 0x74f   :  { %v3079_v7 = vadd.f32 %v3078_v56, %v3007_v4 }
 0x751   :  { %v3083_v9 = vsel %vm1247_vm10, %v3079_v7, 0 }
 0x752   :  { %v3151_v10 = vand.u32 4294901760, %v3083_v9 }
 0x754   :  { %v3152_v18 = vsub.f32 %v3083_v9, %v3151_v10  ;;  %14132 = vmatmul.mubr.f32.vlgmr.msra.gmra.mxu1 %v3151_v10 }
 0x755   :  { %14140 = vmatpush3.msra.mxu1 %v15449_v41  ;;  %14141 = vmatprep.mubr.msk.f32.mxu1 %vm14998_vm9, %v14997_v47 }
 0x756   :  { %v3153_v22 = vand.u32 4294901760, %v3152_v18  ;;  %14149 = vmatprep.subr.mxu1 %v14997_v47 }
 0x758   :  { %14142 = vmatmul.mubr.f32.vlgmr.msra.gmra.mxu1 %v3153_v22  ;;  %v3154_v13 = vsub.f32 %v3152_v18, %v3153_v22 }
 0x759   :  { %14150 = vmatpush3.msra.mxu1 %v15449_v41  ;;  %14151 = vmatprep.mubr.msk.f32.mxu1 %vm14998_vm9, %v14997_v47 }
 0x75a   :  { %v3155_v25 = vand.u32 4294901760, %v3154_v13  ;;  %14159 = vmatprep.subr.mxu1 %v14997_v47 }
 0x75c   :  { %14127 = vmatmul.mubr.f32.vlgmr.msra.gmra.mxu0 %v3155_v25  ;;  %14152 = vmatmul.mubr.f32.vlgmr.msra.gmra.mxu1 %v3151_v10 }
 0x75d   :  { %14135 = vmatpush3.msra.mxu0 %v15452_v49  ;;  %14136 = vmatprep.mubr.msk.f32.mxu0 %vm14998_vm9, %v14997_v47 }
 0x75e   :  { %14160 = vmatpush3.msra.mxu1 %v15495_v26  ;;  %14161 = vmatprep.mubr.msk.f32.mxu1 %vm14998_vm9, %v14997_v47 }
 0x75f   :  { %14144 = vmatprep.subr.mxu0 %v14997_v47  ;;  %14169 = vmatprep.subr.mxu1 %v14997_v47 }
 0x760   :  { %14137 = vmatmul.mubr.f32.vlgmr.msra.gmra.mxu0 %v3152_v18  ;;  %14162 = vmatmul.mubr.f32.vlgmr.msra.gmra.mxu1 %v15483_v19 }
 0x761   :  { %14145 = vmatpush3.msra.mxu0 %v15457_v48  ;;  %14146 = vmatprep.mubr.msk.f32.mxu0 %vm14998_vm9, %v14997_v47 }
 0x762   :  { %14170 = vmatpush3.msra.mxu1 %v15468_v0  ;;  %14171 = vmatprep.mubr.msk.f32.mxu1 %vm14998_vm9, %v14997_v47 }
 0x763   :  { %14154 = vmatprep.subr.mxu0 %v14997_v47  ;;  %14179 = vmatprep.subr.mxu1 %v14997_v47 }
 0x764   :  { %14147 = vmatmul.mubr.f32.vlgmr.msra.gmra.mxu0 %v3151_v10  ;;  %14172 = vmatmul.mubr.f32.vlgmr.msra.gmra.mxu1 %v3602_v27 }
 0x765   :  { %14155 = vmatpush3.msra.mxu0 %v15468_v0  ;;  %14180 = vmatpush3.msra.mxu1 %v15468_v0 }
 0x766   :  { %14156 = vmatprep.mubr.msk.f32.mxu0 %vm14998_vm9, %v14997_v47  ;;  %14181 = vmatprep.mubr.msk.f32.mxu1 %vm14998_vm9, %v14997_v47 }
 0x767   :  { %14189 = vmatprep.subr.mxu1 %v14997_v47  ;;  %14164 = vmatprep.subr.mxu0 %v14997_v47 }
 0x768   :  { %14157 = vmatmul.mubr.f32.vlgmr.msra.gmra.mxu0 %v3604_v38  ;;  %14182 = vmatmul.mubr.f32.vlgmr.msra.gmra.mxu1 %v15483_v19 }
 0x769   :  { %14190 = vmatpush3.xpose.msra.mxu1 %v4099_v46  ;;  %14165 = vmatpush3.msra.mxu0 %v15471_v6 }
 0x76a   :  { %14166 = vmatprep.mubr.msk.f32.mxu0 %vm14998_vm9, %v14997_v47  ;;  %14191 = vmatprep.mubr.msk.f32.mxu1 %vm14998_vm9, %v14997_v47 }
 0x76b   :  { %14199 = vmatprep.subr.mxu1 %v14997_v47  ;;  %14174 = vmatprep.subr.mxu0 %v14997_v47 }
 0x76c   :  { %14167 = vmatmul.mubr.f32.vlgmr.msra.gmra.mxu0 %v3601_v24  ;;  %14192 = vmatmul.mubr.f32.vlgmr.msra.gmra.mxu1 %v4054_v36 }
 0x76d   :  { %14200 = vmatpush3.xpose.msra.mxu1 %v15488_v23  ;;  %14175 = vmatpush3.msra.mxu0 %v15475_v14 }
 0x76e   :  { %14176 = vmatprep.mubr.msk.f32.mxu0 %vm14998_vm9, %v14997_v47  ;;  %14184 = vmatprep.subr.mxu0 %v14997_v47 }
 0x76f   :  { %14201 = vmatprep.mubr.msk.f32.mxu1 %vm14998_vm9, %v14997_v47  ;;  %14209 = vmatprep.subr.mxu1 %v14997_v47 }
 0x770   :  { %14177 = vmatmul.mubr.f32.vlgmr.msra.gmra.mxu0 %v15483_v19  ;;  %14202 = vmatmul.mubr.f32.vlgmr.msra.gmra.mxu1 %v4056_v39 }
 0x771   :  { %14185 = vmatpush3.xpose.msra.mxu0 %v15488_v23  ;;  %14210 = vmatpush3.xpose.msra.mxu1 %v15488_v23 }
 0x772   :  { %14186 = vmatprep.mubr.msk.f32.mxu0 %vm14998_vm9, %v14997_v47  ;;  %14194 = vmatprep.subr.mxu0 %v14997_v47 }
 0x773   :  { %14211 = vmatprep.mubr.msk.f32.mxu1 %vm14998_vm9, %v14997_v47  ;;  %14219 = vmatprep.subr.mxu1 %v14997_v47 }
 0x774   :  { %14187 = vmatmul.mubr.f32.vlgmr.msra.gmra.mxu0 %v4058_v35  ;;  %14212 = vmatmul.mubr.f32.vlgmr.msra.gmra.mxu1 %v4054_v36 }
 0x775   :  { %14195 = vmatpush3.xpose.msra.mxu0 %v15498_v29  ;;  %14196 = vmatprep.mubr.msk.f32.mxu0 %vm14998_vm9, %v14997_v47 }
 0x776   :  { %14204 = vmatprep.subr.mxu0 %v14997_v47  ;;  %14221 = vmatprep.mubr.msk.f32.mxu1 %vm14998_vm9, %v14997_v47 }
 0x778   :  { %14197 = vmatmul.mubr.f32.vlgmr.msra.gmra.mxu0 %v4055_v31 }
 0x779   :  { %14205 = vmatpush3.xpose.msra.mxu0 %v4097_v28  ;;  %14206 = vmatprep.mubr.msk.f32.mxu0 %vm14998_vm9, %v14997_v47 }
 0x77a   :  { %14214 = vmatprep.subr.mxu0 %v14997_v47 }
 0x77c   :  { %14207 = vmatmul.mubr.f32.vlgmr.msra.gmra.mxu0 %v4054_v36 }
 0x77d   :  { %14216 = vmatprep.mubr.msk.f32.mxu0 %vm14998_vm9, %v14997_v47 }
 0x814   :  { %v3233_v44 = vpop.f32.mrf.mxu1 }
 0x816   :  { %v14133_v40 = vpop.f32.mrf.mxu1 }
 0x818   :  { %v3381_v45 = vpop.f32.mrf.mxu1 }
 0x81a   :  { %v14143_v50 = vpop.f32.mrf.mxu1 }
 0x81c   :  { %v3157_v52 = vpop.f32.mrf.mxu0  ;;  %v3527_v54 = vpop.f32.mrf.mxu1 }
 0x81d   :  { %v3234_v12 = vadd.f32 %v3233_v44, %v3157_v52 }
 0x81e   :  { %v14128_v55 = vpop.f32.mrf.mxu0  ;;  %v14153_v20 = vpop.f32.mrf.mxu1 }
 0x820   :  { %v3307_v56 = vpop.f32.mrf.mxu0  ;;  %v3682_v57 = vpop.f32.mrf.mxu1 }
 0x821   :  { %v3308_v58 = vadd.f32 %v3307_v56, %v3234_v12 }
 0x822   :  { %v14138_v59 = vpop.f32.mrf.mxu0  ;;  %v14163_v60 = vpop.f32.mrf.mxu1 }
 0x823   :  { %v3382_v61 = vadd.f32 %v3381_v45, %v3308_v58 }
 0x824   :  { %v3455_v62 = vpop.f32.mrf.mxu0  ;;  %v3830_v63 = vpop.f32.mrf.mxu1 }
 0x825   :  { %v3456_v1 = vadd.f32 %v3455_v62, %v3382_v61 }
 0x826   :  { %v14148_v3 = vpop.f32.mrf.mxu0  ;;  %v14173_v4 = vpop.f32.mrf.mxu1 }
 0x827   :  { %v3528_v5 = vadd.f32 %v3527_v54, %v3456_v1 }
 0x828   :  { %v3606_v7 = vpop.f32.mrf.mxu0  ;;  %v3976_v8 = vpop.f32.mrf.mxu1 }
 0x829   :  { %v3607_v9 = vadd.f32 %v3606_v7, %v3528_v5 }
 0x82a   :  { %v14158_v10 = vpop.f32.mrf.mxu0  ;;  %v14183_v16 = vpop.f32.mrf.mxu1 }
 0x82b   :  { %v3683_v17 = vadd.f32 %v3682_v57, %v3607_v9  ;;  %v1238_v10 = vld [vmem:[%s16401_s6 + $0x10] sm:$0xff] }
 0x82c   :  { %v3756_v18 = vpop.f32.mrf.mxu0  ;;  %v4136_v19 = vpop.f32.mrf.mxu1  ;;  %v15597_v16 = vand.u32 4294901760, %v1238_v10 }
 0x82d   :  { %v3757_v22 = vadd.f32 %v3756_v18, %v3683_v17 }
 0x82e   :  { %v14168_v21 = vpop.f32.mrf.mxu0  ;;  %v14193_v23 = vpop.f32.mrf.mxu1  ;;  %v15600_v17 = vsub.f32 %v1238_v10, %v15597_v16 }
 0x82f   :  { %v3831_v13 = vadd.f32 %v3830_v63, %v3757_v22 }
 0x830   :  { %v3904_v24 = vpop.f32.mrf.mxu0  ;;  %v4284_v25 = vpop.f32.mrf.mxu1  ;;  %v15605_v18 = vand.u32 4294901760, %v15600_v17 }
 0x831   :  { %v3905_v29 = vadd.f32 %v3904_v24, %v3831_v13 }
 0x832   :  { %v14178_v32 = vpop.f32.mrf.mxu0  ;;  %v14203_v27 = vpop.f32.mrf.mxu1 }
 0x833   :  { %v15564_v28 = vadd.f32 %v3976_v8, %v3905_v29 }
 0x834   :  { %v4060_v30 = vpop.f32.mrf.mxu0  ;;  %v4430_v36 = vpop.f32.mrf.mxu1 }
 0x835   :  { %v4061_v33 = vadd.f32 %v4060_v30, %v15366_v53 }
 0x836   :  { %v14188_v37 = vpop.f32.mrf.mxu0  ;;  %v14213_v31 = vpop.f32.mrf.mxu1 }
 0x837   :  { %v4137_v38 = vadd.f32 %v4136_v19, %v4061_v33  ;;  %v5011_v19 = vsub.f32 %v15600_v17, %v15605_v18 }
 0x838   :  { %v4210_v46 = vpop.f32.mrf.mxu0 }
 0x839   :  { %v4211_v39 = vadd.f32 %v4210_v46, %v4137_v38  ;;  %v15609_v22 = vand.u32 4294901760, %v5011_v19 }
 0x83a   :  { %v14198_v42 = vpop.f32.mrf.mxu0 }
 0x83b   :  { %v4285_v35 = vadd.f32 %v4284_v25, %v4211_v39 }
 0x83c   :  { %v4358_v44 = vpop.f32.mrf.mxu0 }
 0x83d   :  { %v4359_v40 = vadd.f32 %v4358_v44, %v4285_v35 }
 0x83e   :  { %v14208_v45 = vpop.f32.mrf.mxu0 }
 0x83f   :  { %v4431_v50 = vadd.f32 %v4430_v36, %v4359_v40 }
 0x841   :  { %v4434_v52 = vsel %vm1247_vm10, %v4431_v50, -inf }
 0x842   :  { %4435 = vmax.xlane.f32.xlu0 %v4434_v52 }
 0x858   :  { %4446 = vrot.lane.b32.xlu0 %v15340_v43, %s15003_s24 }
 0x85c   :  { %5348 = vrot.lane.b32.xlu0 %v15334_v15, %s15004_s25 }
 0x8cb   :  { %v4436_v54 = vpop.xlane.xlu0 %4435 }
 0x8cc   :  { %v4437_v12 = vsub.f32 %v4431_v50, %v4436_v54 }
 0x8ce   :  { %v4438_v55 = vmul.f32 1.442695, %v4437_v12 }
 0x8cf   :  { %v4447_v20 = vpop.permute.xlu0 %4446 }
 0x8d0   :  { %14940 = vpow2.f32 %v4438_v55  ;;  %v4483_v56 = vand.u32 4294901760, %v4447_v20 }
 0x8d2   :  { %v4560_v57 = vsub.f32 %v4447_v20, %v4483_v56  ;;  %14215 = vmatpush3.msra.mxu0 %v4483_v56 }
 0x8d3   :  { %14224 = vmatprep.subr.mxu0 %v14997_v47  ;;  %v5349_v50 = vpop.permute.xlu0 %5348 }
 0x8d4   :  { %v4561_v58 = vand.u32 4294901760, %v4560_v57  ;;  %v5352_v12 = vsel %vm1247_vm10, %v5349_v50, 0 }
 0x8d6   :  { %v4562_v59 = vsub.f32 %v4560_v57, %v4561_v58 }
 0x8d8   :  { %v4563_v60 = vand.u32 4294901760, %v4562_v59 }
 0x8da   :  { %14220 = vmatpush3.msra.mxu1 %v4563_v60 }
 0x8db   :  { %14229 = vmatprep.subr.mxu1 %v14997_v47 }
 0x8dd   :  { %v14941_v61 = vpop.eup %14940 }
 0x8de   :  { %v4440_v62 = vsel %vm1247_vm10, %v14941_v61, 0.0 }
 0x8df   :  { %4441 = vadd.xlane.f32.xlu1 %v4440_v62 }
 0x8f0   :  { %5350 = vrot.lane.b32.xlu1 %v15340_v43, %s15004_s25 }
 0x968   :  { %v4442_v15 = vpop.xlane.xlu1 %4441 }
 0x969   :  { %14942 = vrcp.f32 %v4442_v15 }
 0x96c   :  { %v5351_v32 = vpop.permute.xlu1 %5350 }
 0x96d   :  { %v5354_v33 = vsel %vm1247_vm10, %v5351_v32, 0 }
 0x96e   :  { %v5387_v46 = vand.u32 4294901760, %v5354_v33 }
 0x970   :  { %v5464_v40 = vsub.f32 %v5354_v33, %v5387_v46 }
 0x972   :  { %v5465_v55 = vand.u32 4294901760, %v5464_v40 }
 0x976   :  { %v14943_v63 = vpop.eup %14942 }
 0x977   :  { %v4445_v1 = vmul.f32 %v14943_v63, %v14941_v61 }
 0x979   :  { %v4450_v3 = vsel %vm1247_vm10, %v4445_v1, 0 }
 0x97a   :  { %v4518_v4 = vand.u32 4294901760, %v4450_v3 }
 0x97c   :  { %v4519_v5 = vsub.f32 %v4450_v3, %v4518_v4  ;;  %14222 = vmatmul.mubr.f32.vlgmr.msra.gmra.mxu1 %v4518_v4 }
 0x97d   :  { %14230 = vmatpush3.msra.mxu1 %v4483_v56  ;;  %14231 = vmatprep.mubr.msk.f32.mxu1 %vm14998_vm9, %v14997_v47 }
 0x97e   :  { %14239 = vmatprep.subr.mxu1 %v14997_v47  ;;  %v4520_v7 = vand.u32 4294901760, %v4519_v5 }
 0x980   :  { %14232 = vmatmul.mubr.f32.vlgmr.msra.gmra.mxu1 %v4520_v7  ;;  %v4521_v8 = vsub.f32 %v4519_v5, %v4520_v7 }
 0x981   :  { %14240 = vmatpush3.msra.mxu1 %v4483_v56  ;;  %14241 = vmatprep.mubr.msk.f32.mxu1 %vm14998_vm9, %v14997_v47  ;;  %v5422_v56 = vand.u32 4294901760, %v5352_v12 }
 0x982   :  { %v4522_v9 = vand.u32 4294901760, %v4521_v8  ;;  %14249 = vmatprep.subr.mxu1 %v14997_v47 }
 0x983   :  { %v5423_v60 = vsub.f32 %v5352_v12, %v5422_v56 }
 0x984   :  { %14217 = vmatmul.mubr.f32.vlgmr.msra.gmra.mxu0 %v4522_v9  ;;  %14242 = vmatmul.mubr.f32.vlgmr.msra.gmra.mxu1 %v4518_v4 }
 0x985   :  { %14225 = vmatpush3.msra.mxu0 %v4560_v57  ;;  %14226 = vmatprep.mubr.msk.f32.mxu0 %vm14998_vm9, %v14997_v47  ;;  %v5424_v15 = vand.u32 4294901760, %v5423_v60 }
 0x986   :  { %14234 = vmatprep.subr.mxu0 %v14997_v47  ;;  %14251 = vmatprep.mubr.msk.f32.mxu1 %vm14998_vm9, %v14997_v47 }
 0x987   :  { %14250 = vmatpush3.msra.mxu1 %v15609_v22  ;;  %v5425_v63 = vsub.f32 %v5423_v60, %v5424_v15 }
 0x988   :  { %14227 = vmatmul.mubr.f32.vlgmr.msra.gmra.mxu0 %v4519_v5  ;;  %14259 = vmatprep.subr.mxu1 %v14997_v47 }
 0x989   :  { %14235 = vmatpush3.msra.mxu0 %v4561_v58  ;;  %14236 = vmatprep.mubr.msk.f32.mxu0 %vm14998_vm9, %v14997_v47  ;;  %v5466_v58 = vsub.f32 %v5464_v40, %v5465_v55  ;;  %v5426_v1 = vand.u32 4294901760, %v5425_v63 }
 0x98a   :  { %14244 = vmatprep.subr.mxu0 %v14997_v47 }
 0x98b   :  { %v5467_v62 = vand.u32 4294901760, %v5466_v58 }
 0x98c   :  { %14237 = vmatmul.mubr.f32.vlgmr.msra.gmra.mxu0 %v4518_v4 }
 0x98d   :  { %14246 = vmatprep.mubr.msk.f32.mxu0 %vm14998_vm9, %v14997_v47  ;;  %14245 = vmatpush3.msra.mxu0 %v15597_v16 }
 0x98e   :  { %14254 = vmatprep.subr.mxu0 %v14997_v47 }
 0xa3c   :  { %v4600_v21 = vpop.f32.mrf.mxu1 }
 0xa3e   :  { %v14223_v23 = vpop.f32.mrf.mxu1 }
 0xa40   :  { %v4748_v13 = vpop.f32.mrf.mxu1 }
 0xa42   :  { %v14233_v24 = vpop.f32.mrf.mxu1 }
 0xa44   :  { %v4524_v25 = vpop.f32.mrf.mxu0  ;;  %v4894_v29 = vpop.f32.mrf.mxu1 }
 0xa45   :  { %v4601_v36 = vadd.f32 %v4600_v21, %v4524_v25 }
 0xa46   :  { %v14218_v27 = vpop.f32.mrf.mxu0  ;;  %v14243_v30 = vpop.f32.mrf.mxu1 }
 0xa48   :  { %v4674_v37 = vpop.f32.mrf.mxu0 }
 0xa49   :  { %v4675_v31 = vadd.f32 %v4674_v37, %v4601_v36 }
 0xa4a   :  { %v14228_v38 = vpop.f32.mrf.mxu0 }
 0xa4b   :  { %v4749_v39 = vadd.f32 %v4748_v13, %v4675_v31 }
 0xa4c   :  { %v4822_v42 = vpop.f32.mrf.mxu0 }
 0xa4d   :  { %v4823_v35 = vadd.f32 %v4822_v42, %v4749_v39 }
 0xa4e   :  { %v14238_v44 = vpop.f32.mrf.mxu0 }
 0xa4f   :  { %v4895_v45 = vadd.f32 %v4894_v29, %v4823_v35 }
 0xa51   :  { %v4899_v52 = vsel %vm1247_vm10, %v4895_v45, 0 }
 0xa52   :  { %v4967_v54 = vand.u32 4294901760, %v4899_v52 }
 0xa54   :  { %v4968_v20 = vsub.f32 %v4899_v52, %v4967_v54  ;;  %14252 = vmatmul.mubr.f32.vlgmr.msra.gmra.mxu1 %v4967_v54 }
 0xa55   :  { %14260 = vmatpush3.msra.mxu1 %v15597_v16  ;;  %14261 = vmatprep.mubr.msk.f32.mxu1 %vm14998_vm9, %v14997_v47 }
 0xa56   :  { %v4969_v57 = vand.u32 4294901760, %v4968_v20  ;;  %14269 = vmatprep.subr.mxu1 %v14997_v47 }
 0xa58   :  { %14262 = vmatmul.mubr.f32.vlgmr.msra.gmra.mxu1 %v4969_v57  ;;  %v4970_v59 = vsub.f32 %v4968_v20, %v4969_v57 }
 0xa59   :  { %14270 = vmatpush3.msra.mxu1 %v15597_v16  ;;  %14271 = vmatprep.mubr.msk.f32.mxu1 %vm14998_vm9, %v14997_v47 }
 0xa5a   :  { %14279 = vmatprep.subr.mxu1 %v14997_v47  ;;  %v4971_v61 = vand.u32 4294901760, %v4970_v59 }
 0xa5c   :  { %14247 = vmatmul.mubr.f32.vlgmr.msra.gmra.mxu0 %v4971_v61  ;;  %14272 = vmatmul.mubr.f32.vlgmr.msra.gmra.mxu1 %v4967_v54  ;;  %v15665_v61 = vmul.f32 0.35355338, %v15329_v2 }
 0xa5d   :  { %14280 = vmatpush3.xpose.msra.mxu1 %v5467_v62  ;;  %14255 = vmatpush3.msra.mxu0 %v15600_v17 }
 0xa5e   :  { %14256 = vmatprep.mubr.msk.f32.mxu0 %vm14998_vm9, %v14997_v47  ;;  %14281 = vmatprep.mubr.msk.f32.mxu1 %vm14998_vm9, %v14997_v47 }
 0xa5f   :  { %14289 = vmatprep.subr.mxu1 %v14997_v47  ;;  %14264 = vmatprep.subr.mxu0 %v14997_v47 }
 0xa60   :  { %14257 = vmatmul.mubr.f32.vlgmr.msra.gmra.mxu0 %v4968_v20  ;;  %14282 = vmatmul.mubr.f32.vlgmr.msra.gmra.mxu1 %v5422_v56 }
 0xa61   :  { %14290 = vmatpush3.xpose.msra.mxu1 %v5387_v46  ;;  %14265 = vmatpush3.msra.mxu0 %v15605_v18 }
 0xa62   :  { %14266 = vmatprep.mubr.msk.f32.mxu0 %vm14998_vm9, %v14997_v47  ;;  %14274 = vmatprep.subr.mxu0 %v14997_v47 }
 0xa63   :  { %14291 = vmatprep.mubr.msk.f32.mxu1 %vm14998_vm9, %v14997_v47  ;;  %14299 = vmatprep.subr.mxu1 %v14997_v47 }
 0xa64   :  { %14267 = vmatmul.mubr.f32.vlgmr.msra.gmra.mxu0 %v4967_v54  ;;  %14292 = vmatmul.mubr.f32.vlgmr.msra.gmra.mxu1 %v5424_v15 }
 0xa65   :  { %14275 = vmatpush3.xpose.msra.mxu0 %v5387_v46  ;;  %14300 = vmatpush3.xpose.msra.mxu1 %v5387_v46 }
 0xa66   :  { %14276 = vmatprep.mubr.msk.f32.mxu0 %vm14998_vm9, %v14997_v47  ;;  %14284 = vmatprep.subr.mxu0 %v14997_v47 }
 0xa67   :  { %14301 = vmatprep.mubr.msk.f32.mxu1 %vm14998_vm9, %v14997_v47  ;;  %14309 = vmatprep.subr.mxu1 %v14997_v47 }
 0xa68   :  { %14277 = vmatmul.mubr.f32.vlgmr.msra.gmra.mxu0 %v5426_v1  ;;  %14302 = vmatmul.mubr.f32.vlgmr.msra.gmra.mxu1 %v5422_v56 }
 0xa69   :  { %14285 = vmatpush3.xpose.msra.mxu0 %v5464_v40  ;;  %14286 = vmatprep.mubr.msk.f32.mxu0 %vm14998_vm9, %v14997_v47 }
 0xa6a   :  { %14294 = vmatprep.subr.mxu0 %v14997_v47  ;;  %14311 = vmatprep.mubr.msk.f32.mxu1 %vm14998_vm9, %v14997_v47 }
 0xa6c   :  { %14287 = vmatmul.mubr.f32.vlgmr.msra.gmra.mxu0 %v5423_v60 }
 0xa6d   :  { %14295 = vmatpush3.xpose.msra.mxu0 %v5465_v55  ;;  %14296 = vmatprep.mubr.msk.f32.mxu0 %vm14998_vm9, %v14997_v47 }
 0xa6e   :  { %14304 = vmatprep.subr.mxu0 %v14997_v47 }
 0xa70   :  { %14297 = vmatmul.mubr.f32.vlgmr.msra.gmra.mxu0 %v5422_v56 }
 0xa71   :  { %14306 = vmatprep.mubr.msk.f32.mxu0 %vm14998_vm9, %v14997_v47 }
 0xb14   :  { %v5049_v3 = vpop.f32.mrf.mxu1 }
 0xb16   :  { %v14253_v4 = vpop.f32.mrf.mxu1 }
 0xb18   :  { %v5197_v5 = vpop.f32.mrf.mxu1 }
 0xb1a   :  { %v14263_v7 = vpop.f32.mrf.mxu1 }
 0xb1c   :  { %v4973_v8 = vpop.f32.mrf.mxu0  ;;  %v5343_v9 = vpop.f32.mrf.mxu1 }
 0xb1d   :  { %v5050_v10 = vadd.f32 %v5049_v3, %v4973_v8 }
 0xb1e   :  { %v14248_v19 = vpop.f32.mrf.mxu0  ;;  %v14273_v21 = vpop.f32.mrf.mxu1 }
 0xb20   :  { %v5123_v23 = vpop.f32.mrf.mxu0  ;;  %v5504_v13 = vpop.f32.mrf.mxu1 }
 0xb21   :  { %v5124_v24 = vadd.f32 %v5123_v23, %v5050_v10  ;;  %v1239_v23 = vld [vmem:[%s16401_s6 + $0x18] sm:$0xff] }
 0xb22   :  { %v14258_v25 = vpop.f32.mrf.mxu0  ;;  %v14283_v29 = vpop.f32.mrf.mxu1 }
 0xb23   :  { %v5198_v32 = vadd.f32 %v5197_v5, %v5124_v24 }
 0xb24   :  { %v5271_v27 = vpop.f32.mrf.mxu0  ;;  %v5652_v30 = vpop.f32.mrf.mxu1 }
 0xb25   :  { %v5272_v36 = vadd.f32 %v5271_v27, %v5198_v32 }
 0xb26   :  { %v14268_v33 = vpop.f32.mrf.mxu0  ;;  %v14293_v37 = vpop.f32.mrf.mxu1 }
 0xb27   :  { %v5344_v31 = vadd.f32 %v5343_v9, %v5272_v36 }
 0xb28   :  { %v5428_v38 = vpop.f32.mrf.mxu0  ;;  %v5798_v46 = vpop.f32.mrf.mxu1 }
 0xb29   :  { %v15655_v39 = vadd.f32 %v5344_v31, %v15564_v28  ;;  %v5429_v42 = vadd.f32 %v5428_v38, %v15366_v53 }
 0xb2a   :  { %v14278_v35 = vpop.f32.mrf.mxu0  ;;  %v14303_v44 = vpop.f32.mrf.mxu1 }
 0xb2b   :  { %v5505_v40 = vadd.f32 %v5504_v13, %v5429_v42  ;;  %v15691_v13 = vand.u32 4294901760, %v1239_v23  ;;  %v6720_v44 = vsel %vm1247_vm10, %v15338_v34, 0 }
 0xb2c   :  { %v5578_v45 = vpop.f32.mrf.mxu0 }
 0xb2d   :  { %v5579_v50 = vadd.f32 %v5578_v45, %v5505_v40  ;;  %v15694_v24 = vsub.f32 %v1239_v23, %v15691_v13 }
 0xb2e   :  { %v14288_v52 = vpop.f32.mrf.mxu0 }
 0xb2f   :  { %v5653_v54 = vadd.f32 %v5652_v30, %v5579_v50  ;;  %v15699_v25 = vand.u32 4294901760, %v15694_v24  ;;  %v6753_v52 = vand.u32 4294901760, %v6720_v44 }
 0xb30   :  { %v5726_v12 = vpop.f32.mrf.mxu0 }
 0xb31   :  { %v5727_v55 = vadd.f32 %v5726_v12, %v5653_v54  ;;  %v6379_v29 = vsub.f32 %v15694_v24, %v15699_v25 }
 0xb32   :  { %v14298_v20 = vpop.f32.mrf.mxu0 }
 0xb33   :  { %v5799_v56 = vadd.f32 %v5798_v46, %v5727_v55  ;;  %v15703_v32 = vand.u32 4294901760, %v6379_v29 }
 0xb35   :  { %v5802_v57 = vsel %vm1247_vm10, %v5799_v56, -inf }
 0xb36   :  { %5803 = vmax.xlane.f32.xlu1 %v5802_v57 }
 0xbbf   :  { %v5804_v58 = vpop.xlane.xlu1 %5803 }
 0xbc0   :  { %v5805_v59 = vsub.f32 %v5799_v56, %v5804_v58  ;;  %v6830_v56 = vsub.f32 %v6720_v44, %v6753_v52 }
 0xbc2   :  { %v5806_v28 = vmul.f32 1.442695, %v5805_v59  ;;  %v6831_v59 = vand.u32 4294901760, %v6830_v56 }
 0xbc4   :  { %14944 = vpow2.f32 %v5806_v28  ;;  %v6717_v28 = vsel %vm1247_vm10, %v15665_v61, 0 }
 0xbd1   :  { %v14945_v60 = vpop.eup %14944 }
 0xbd2   :  { %v5808_v53 = vsel %vm1247_vm10, %v14945_v60, 0.0 }
 0xbd3   :  { %5809 = vadd.xlane.f32.xlu0 %v5808_v53 }
 0xbe9   :  { %5814 = vrot.lane.b32.xlu0 %v15340_v43, %s15005_s28 }
 0xbed   :  { %7634 = vrot.lane.b32.xlu0 %v15338_v34, %s15000_s17 }
 0xbf1   :  { %7632 = vrot.lane.b32.xlu0 %v15665_v61, %s15000_s17 }
 0xc5c   :  { %v5810_v62 = vpop.xlane.xlu0 %5809 }
 0xc5d   :  { %14946 = vrcp.f32 %v5810_v62  ;;  %v6788_v62 = vand.u32 4294901760, %v6717_v28 }
 0xc60   :  { %v5815_v15 = vpop.permute.xlu0 %5814 }
 0xc61   :  { %v5851_v63 = vand.u32 4294901760, %v5815_v15 }
 0xc63   :  { %v5928_v1 = vsub.f32 %v5815_v15, %v5851_v63  ;;  %14305 = vmatpush3.msra.mxu0 %v5851_v63  ;;  %v6832_v15 = vsub.f32 %v6830_v56, %v6831_v59 }
 0xc64   :  { %14314 = vmatprep.subr.mxu0 %v14997_v47 }
 0xc65   :  { %v5929_v3 = vand.u32 4294901760, %v5928_v1 }
 0xc67   :  { %v5930_v4 = vsub.f32 %v5928_v1, %v5929_v3 }
 0xc69   :  { %v5931_v43 = vand.u32 4294901760, %v5930_v4  ;;  %v6833_v4 = vand.u32 4294901760, %v6832_v15 }
 0xc6a   :  { %v14947_v5 = vpop.eup %14946 }
 0xc6b   :  { %14310 = vmatpush3.msra.mxu1 %v5931_v43  ;;  %v5813_v7 = vmul.f32 %v14947_v5, %v14945_v60 }
 0xc6c   :  { %14319 = vmatprep.subr.mxu1 %v14997_v47 }
 0xc6d   :  { %v5818_v2 = vsel %vm1247_vm10, %v5813_v7, 0 }
 0xc6e   :  { %v5886_v8 = vand.u32 4294901760, %v5818_v2 }
 0xc70   :  { %v5887_v9 = vsub.f32 %v5818_v2, %v5886_v8  ;;  %14312 = vmatmul.mubr.f32.vlgmr.msra.gmra.mxu1 %v5886_v8 }
 0xc71   :  { %14320 = vmatpush3.msra.mxu1 %v5851_v63  ;;  %14321 = vmatprep.mubr.msk.f32.mxu1 %vm14998_vm9, %v14997_v47 }
 0xc72   :  { %14329 = vmatprep.subr.mxu1 %v14997_v47  ;;  %v5888_v10 = vand.u32 4294901760, %v5887_v9 }
 0xc74   :  { %14322 = vmatmul.mubr.f32.vlgmr.msra.gmra.mxu1 %v5888_v10  ;;  %v5889_v19 = vsub.f32 %v5887_v9, %v5888_v10 }
 0xc75   :  { %14330 = vmatpush3.msra.mxu1 %v5851_v63  ;;  %14331 = vmatprep.mubr.msk.f32.mxu1 %vm14998_vm9, %v14997_v47 }
 0xc76   :  { %v5890_v21 = vand.u32 4294901760, %v5889_v19  ;;  %14339 = vmatprep.subr.mxu1 %v14997_v47 }
 0xc78   :  { %14307 = vmatmul.mubr.f32.vlgmr.msra.gmra.mxu0 %v5890_v21  ;;  %14332 = vmatmul.mubr.f32.vlgmr.msra.gmra.mxu1 %v5886_v8 }
 0xc79   :  { %14315 = vmatpush3.msra.mxu0 %v5928_v1  ;;  %14316 = vmatprep.mubr.msk.f32.mxu0 %vm14998_vm9, %v14997_v47 }
 0xc7a   :  { %14324 = vmatprep.subr.mxu0 %v14997_v47  ;;  %14341 = vmatprep.mubr.msk.f32.mxu1 %vm14998_vm9, %v14997_v47 }
 0xc7b   :  { %14340 = vmatpush3.msra.mxu1 %v15703_v32 }
 0xc7c   :  { %14317 = vmatmul.mubr.f32.vlgmr.msra.gmra.mxu0 %v5887_v9  ;;  %14349 = vmatprep.subr.mxu1 %v14997_v47 }
 0xc7d   :  { %14325 = vmatpush3.msra.mxu0 %v5929_v3  ;;  %14326 = vmatprep.mubr.msk.f32.mxu0 %vm14998_vm9, %v14997_v47  ;;  %v6789_v3 = vsub.f32 %v6717_v28, %v6788_v62 }
 0xc7e   :  { %14334 = vmatprep.subr.mxu0 %v14997_v47 }
 0xc7f   :  { %v6790_v43 = vand.u32 4294901760, %v6789_v3 }
 0xc80   :  { %14327 = vmatmul.mubr.f32.vlgmr.msra.gmra.mxu0 %v5886_v8 }
 0xc81   :  { %14336 = vmatprep.mubr.msk.f32.mxu0 %vm14998_vm9, %v14997_v47  ;;  %14335 = vmatpush3.msra.mxu0 %v15691_v13  ;;  %v6791_v5 = vsub.f32 %v6789_v3, %v6790_v43 }
 0xc82   :  { %14344 = vmatprep.subr.mxu0 %v14997_v47 }
 0xc83   :  { %v6792_v7 = vand.u32 4294901760, %v6791_v5 }
 0xd30   :  { %v5968_v27 = vpop.f32.mrf.mxu1 }
 0xd32   :  { %v14313_v30 = vpop.f32.mrf.mxu1 }
 0xd34   :  { %v6116_v36 = vpop.f32.mrf.mxu1 }
 0xd36   :  { %v14323_v33 = vpop.f32.mrf.mxu1 }
 0xd37   :  { %v1242_v33 = vld [vmem:[%s16397_s2 + $0x8] sm:$0xff] }
 0xd38   :  { %v5892_v37 = vpop.f32.mrf.mxu0  ;;  %v6262_v31 = vpop.f32.mrf.mxu1  ;;  %vm1244_vm12 = vcmp.gt.f32.partialorder %v1242_v33, 0.5 }
 0xd39   :  { %v5969_v42 = vadd.f32 %v5968_v27, %v5892_v37 }
 0xd3a   :  { %v14308_v38 = vpop.f32.mrf.mxu0  ;;  %v14333_v46 = vpop.f32.mrf.mxu1 }
 0xd3c   :  { %v6042_v35 = vpop.f32.mrf.mxu0 }
 0xd3d   :  { %v6043_v40 = vadd.f32 %v6042_v35, %v5969_v42 }
 0xd3e   :  { %v14318_v45 = vpop.f32.mrf.mxu0 }
 0xd3f   :  { %v6117_v50 = vadd.f32 %v6116_v36, %v6043_v40 }
 0xd40   :  { %v6190_v54 = vpop.f32.mrf.mxu0 }
 0xd41   :  { %v6191_v12 = vadd.f32 %v6190_v54, %v6117_v50  ;;  %v15754_v50 = vsel %vm1244_vm12, -1e+09, %v14997_v47 }
 0xd42   :  { %v14328_v55 = vpop.f32.mrf.mxu0 }
 0xd43   :  { %v6263_v20 = vadd.f32 %v6262_v31, %v6191_v12 }
 0xd45   :  { %v6267_v57 = vsel %vm1247_vm10, %v6263_v20, 0 }
 0xd46   :  { %v6335_v58 = vand.u32 4294901760, %v6267_v57 }
 0xd48   :  { %v6336_v60 = vsub.f32 %v6267_v57, %v6335_v58  ;;  %14342 = vmatmul.mubr.f32.vlgmr.msra.gmra.mxu1 %v6335_v58 }
 0xd49   :  { %14350 = vmatpush3.msra.mxu1 %v15691_v13  ;;  %14351 = vmatprep.mubr.msk.f32.mxu1 %vm14998_vm9, %v14997_v47 }
 0xd4a   :  { %v6337_v53 = vand.u32 4294901760, %v6336_v60  ;;  %14359 = vmatprep.subr.mxu1 %v14997_v47 }
 0xd4c   :  { %14352 = vmatmul.mubr.f32.vlgmr.msra.gmra.mxu1 %v6337_v53  ;;  %v6338_v63 = vsub.f32 %v6336_v60, %v6337_v53 }
 0xd4d   :  { %14360 = vmatpush3.msra.mxu1 %v15691_v13  ;;  %14361 = vmatprep.mubr.msk.f32.mxu1 %vm14998_vm9, %v14997_v47 }
 0xd4e   :  { %14369 = vmatprep.subr.mxu1 %v14997_v47  ;;  %v6339_v1 = vand.u32 4294901760, %v6338_v63 }
 0xd50   :  { %14337 = vmatmul.mubr.f32.vlgmr.msra.gmra.mxu0 %v6339_v1  ;;  %14362 = vmatmul.mubr.f32.vlgmr.msra.gmra.mxu1 %v6335_v58 }
 0xd51   :  { %14370 = vmatpush3.xpose.msra.mxu1 %v6833_v4  ;;  %14345 = vmatpush3.msra.mxu0 %v15694_v24 }
 0xd52   :  { %14346 = vmatprep.mubr.msk.f32.mxu0 %vm14998_vm9, %v14997_v47  ;;  %14371 = vmatprep.mubr.msk.f32.mxu1 %vm14998_vm9, %v14997_v47 }
 0xd53   :  { %14379 = vmatprep.subr.mxu1 %v14997_v47  ;;  %14354 = vmatprep.subr.mxu0 %v14997_v47 }
 0xd54   :  { %14347 = vmatmul.mubr.f32.vlgmr.msra.gmra.mxu0 %v6336_v60  ;;  %14372 = vmatmul.mubr.f32.vlgmr.msra.gmra.mxu1 %v6788_v62 }
 0xd55   :  { %14380 = vmatpush3.xpose.msra.mxu1 %v6753_v52  ;;  %14355 = vmatpush3.msra.mxu0 %v15699_v25 }
 0xd56   :  { %14356 = vmatprep.mubr.msk.f32.mxu0 %vm14998_vm9, %v14997_v47  ;;  %14364 = vmatprep.subr.mxu0 %v14997_v47 }
 0xd57   :  { %14381 = vmatprep.mubr.msk.f32.mxu1 %vm14998_vm9, %v14997_v47  ;;  %14389 = vmatprep.subr.mxu1 %v14997_v47 }
 0xd58   :  { %14357 = vmatmul.mubr.f32.vlgmr.msra.gmra.mxu0 %v6335_v58  ;;  %14382 = vmatmul.mubr.f32.vlgmr.msra.gmra.mxu1 %v6790_v43 }
 0xd59   :  { %14365 = vmatpush3.xpose.msra.mxu0 %v6753_v52  ;;  %14390 = vmatpush3.xpose.msra.mxu1 %v6753_v52 }
 0xd5a   :  { %14366 = vmatprep.mubr.msk.f32.mxu0 %vm14998_vm9, %v14997_v47  ;;  %14374 = vmatprep.subr.mxu0 %v14997_v47 }
 0xd5b   :  { %14391 = vmatprep.mubr.msk.f32.mxu1 %vm14998_vm9, %v14997_v47  ;;  %14399 = vmatprep.subr.mxu1 %v14997_v47 }
 0xd5c   :  { %14367 = vmatmul.mubr.f32.vlgmr.msra.gmra.mxu0 %v6792_v7  ;;  %14392 = vmatmul.mubr.f32.vlgmr.msra.gmra.mxu1 %v6788_v62 }
 0xd5d   :  { %14375 = vmatpush3.xpose.msra.mxu0 %v6830_v56  ;;  %14376 = vmatprep.mubr.msk.f32.mxu0 %vm14998_vm9, %v14997_v47 }
 0xd5e   :  { %14384 = vmatprep.subr.mxu0 %v14997_v47  ;;  %14401 = vmatprep.mubr.msk.f32.mxu1 %vm14998_vm9, %v14997_v47 }
 0xd60   :  { %14377 = vmatmul.mubr.f32.vlgmr.msra.gmra.mxu0 %v6789_v3 }
 0xd61   :  { %14385 = vmatpush3.xpose.msra.mxu0 %v6831_v59  ;;  %14386 = vmatprep.mubr.msk.f32.mxu0 %vm14998_vm9, %v14997_v47 }
 0xd62   :  { %14394 = vmatprep.subr.mxu0 %v14997_v47 }
 0xd64   :  { %14387 = vmatmul.mubr.f32.vlgmr.msra.gmra.mxu0 %v6788_v62 }
 0xd65   :  { %14396 = vmatprep.mubr.msk.f32.mxu0 %vm14998_vm9, %v14997_v47 }
 0xe08   :  { %v6417_v2 = vpop.f32.mrf.mxu1 }
 0xe0a   :  { %v14343_v8 = vpop.f32.mrf.mxu1 }
 0xe0c   :  { %v6565_v9 = vpop.f32.mrf.mxu1 }
 0xe0e   :  { %v14353_v10 = vpop.f32.mrf.mxu1 }
 0xe10   :  { %v6341_v19 = vpop.f32.mrf.mxu0  ;;  %v6711_v21 = vpop.f32.mrf.mxu1 }
 0xe11   :  { %v6418_v23 = vadd.f32 %v6417_v2, %v6341_v19 }
 0xe12   :  { %v14338_v29 = vpop.f32.mrf.mxu0  ;;  %v14363_v27 = vpop.f32.mrf.mxu1 }
 0xe14   :  { %v6491_v30 = vpop.f32.mrf.mxu0  ;;  %v6870_v36 = vpop.f32.mrf.mxu1 }
 0xe15   :  { %v6492_v37 = vadd.f32 %v6491_v30, %v6418_v23 }
 0xe16   :  { %v14348_v31 = vpop.f32.mrf.mxu0  ;;  %v14373_v38 = vpop.f32.mrf.mxu1 }
 0xe17   :  { %v6566_v46 = vadd.f32 %v6565_v9, %v6492_v37  ;;  %v7635_v9 = vpop.permute.xlu0 %7634 }
 0xe18   :  { %v6639_v42 = vpop.f32.mrf.mxu0  ;;  %v7018_v35 = vpop.f32.mrf.mxu1 }
 0xe19   :  { %v6640_v44 = vadd.f32 %v6639_v42, %v6566_v46 }
 0xe1a   :  { %v14358_v40 = vpop.f32.mrf.mxu0  ;;  %v14383_v45 = vpop.f32.mrf.mxu1 }
 0xe1b   :  { %v6712_v52 = vadd.f32 %v6711_v21, %v6640_v44  ;;  %v7638_v21 = vsel %vm1247_vm10, %v7635_v9, 0  ;;  %v7633_v31 = vpop.permute.xlu0 %7632 }
 0xe1c   :  { %v6794_v54 = vpop.f32.mrf.mxu0  ;;  %v7164_v12 = vpop.f32.mrf.mxu1  ;;  %v7671_v29 = vand.u32 4294901760, %v7638_v21 }
 0xe1d   :  { %v15757_v55 = vadd.f32 %v6712_v52, %v15655_v39  ;;  %v6795_v20 = vadd.f32 %v6794_v54, %v15754_v50 }
 0xe1e   :  { %v14368_v56 = vpop.f32.mrf.mxu0  ;;  %v14393_v57 = vpop.f32.mrf.mxu1  ;;  %v7748_v33 = vsub.f32 %v7638_v21, %v7671_v29 }
 0xe1f   :  { %v6871_v58 = vadd.f32 %v6870_v36, %v6795_v20 }
 0xe20   :  { %v6944_v59 = vpop.f32.mrf.mxu0  ;;  %v7749_v42 = vand.u32 4294901760, %v7748_v33 }
 0xe21   :  { %v6945_v28 = vadd.f32 %v6944_v59, %v6871_v58 }
 0xe22   :  { %v14378_v60 = vpop.f32.mrf.mxu0  ;;  %v7750_v52 = vsub.f32 %v7748_v33, %v7749_v42 }
 0xe23   :  { %v7019_v53 = vadd.f32 %v7018_v35, %v6945_v28  ;;  %v7636_v35 = vsel %vm1247_vm10, %v7633_v31, 0 }
 0xe24   :  { %v7092_v62 = vpop.f32.mrf.mxu0  ;;  %v7706_v40 = vand.u32 4294901760, %v7636_v35  ;;  %v7751_v56 = vand.u32 4294901760, %v7750_v52 }
 0xe25   :  { %v7093_v15 = vadd.f32 %v7092_v62, %v7019_v53 }
 0xe26   :  { %v14388_v63 = vpop.f32.mrf.mxu0 }
 0xe27   :  { %v7165_v1 = vadd.f32 %v7164_v12, %v7093_v15  ;;  %v7707_v12 = vsub.f32 %v7636_v35, %v7706_v40 }
 0xe29   :  { %v7168_v3 = vsel %vm1247_vm10, %v7165_v1, -inf  ;;  %v7708_v57 = vand.u32 4294901760, %v7707_v12 }
 0xe2a   :  { %7169 = vmax.xlane.f32.xlu1 %v7168_v3 }
 0xe2b   :  { %v7709_v58 = vsub.f32 %v7707_v12, %v7708_v57 }
 0xe2d   :  { %v7710_v59 = vand.u32 4294901760, %v7709_v58 }
 0xeb3   :  { %v7170_v4 = vpop.xlane.xlu1 %7169 }
 0xeb4   :  { %v7171_v43 = vsub.f32 %v7165_v1, %v7170_v4 }
 0xeb6   :  { %v7172_v39 = vmul.f32 1.442695, %v7171_v43 }
 0xeb8   :  { %14948 = vpow2.f32 %v7172_v39 }
 0xec5   :  { %v14949_v5 = vpop.eup %14948 }
 0xec6   :  { %v7174_v7 = vsel %vm1247_vm10, %v14949_v5, 0.0 }
 0xec7   :  { %7175 = vadd.xlane.f32.xlu1 %v7174_v7 }
 0xed8   :  { %7180 = vrot.lane.b32.xlu1 %v15338_v34, %s14999_s1 }
 0xf50   :  { %v7176_v2 = vpop.xlane.xlu1 %7175 }
 0xf51   :  { %14950 = vrcp.f32 %v7176_v2 }
 0xf54   :  { %v7181_v8 = vpop.permute.xlu1 %7180 }
 0xf55   :  { %v7217_v10 = vand.u32 4294901760, %v7181_v8 }
 0xf57   :  { %v7294_v19 = vsub.f32 %v7181_v8, %v7217_v10  ;;  %14395 = vmatpush3.msra.mxu0 %v7217_v10 }
 0xf58   :  { %14404 = vmatprep.subr.mxu0 %v14997_v47 }
 0xf59   :  { %v7295_v23 = vand.u32 4294901760, %v7294_v19 }
 0xf5b   :  { %v7296_v27 = vsub.f32 %v7294_v19, %v7295_v23 }
 0xf5d   :  { %v7297_v30 = vand.u32 4294901760, %v7296_v27 }
 0xf5e   :  { %v14951_v36 = vpop.eup %14950 }
 0xf5f   :  { %14400 = vmatpush3.msra.mxu1 %v7297_v30  ;;  %v7179_v37 = vmul.f32 %v14951_v36, %v14949_v5 }
 0xf60   :  { %14409 = vmatprep.subr.mxu1 %v14997_v47 }
 0xf61   :  { %v7184_v38 = vsel %vm1247_vm10, %v7179_v37, 0 }
 0xf62   :  { %v7252_v46 = vand.u32 4294901760, %v7184_v38 }
 0xf64   :  { %v7253_v44 = vsub.f32 %v7184_v38, %v7252_v46  ;;  %14402 = vmatmul.mubr.f32.vlgmr.msra.gmra.mxu1 %v7252_v46 }
 0xf65   :  { %14410 = vmatpush3.msra.mxu1 %v7217_v10  ;;  %14411 = vmatprep.mubr.msk.f32.mxu1 %vm14998_vm9, %v14997_v47 }
 0xf66   :  { %14419 = vmatprep.subr.mxu1 %v14997_v47  ;;  %v7254_v45 = vand.u32 4294901760, %v7253_v44 }
 0xf68   :  { %14412 = vmatmul.mubr.f32.vlgmr.msra.gmra.mxu1 %v7254_v45  ;;  %v7255_v54 = vsub.f32 %v7253_v44, %v7254_v45 }
 0xf69   :  { %14420 = vmatpush3.msra.mxu1 %v7217_v10  ;;  %14421 = vmatprep.mubr.msk.f32.mxu1 %vm14998_vm9, %v14997_v47 }
 0xf6a   :  { %14429 = vmatprep.subr.mxu1 %v14997_v47  ;;  %v7256_v20 = vand.u32 4294901760, %v7255_v54 }
 0xf6c   :  { %14397 = vmatmul.mubr.f32.vlgmr.msra.gmra.mxu0 %v7256_v20  ;;  %14422 = vmatmul.mubr.f32.vlgmr.msra.gmra.mxu1 %v7252_v46 }
 0xf6d   :  { %14405 = vmatpush3.msra.mxu0 %v7294_v19  ;;  %14430 = vmatpush3.xpose.msra.mxu1 %v7751_v56 }
 0xf6e   :  { %14406 = vmatprep.mubr.msk.f32.mxu0 %vm14998_vm9, %v14997_v47  ;;  %14414 = vmatprep.subr.mxu0 %v14997_v47 }
 0xf6f   :  { %14431 = vmatprep.mubr.msk.f32.mxu1 %vm14998_vm9, %v14997_v47  ;;  %14439 = vmatprep.subr.mxu1 %v14997_v47 }
 0xf70   :  { %14407 = vmatmul.mubr.f32.vlgmr.msra.gmra.mxu0 %v7253_v44  ;;  %14432 = vmatmul.mubr.f32.vlgmr.msra.gmra.mxu1 %v7706_v40 }
 0xf71   :  { %14415 = vmatpush3.msra.mxu0 %v7295_v23  ;;  %14440 = vmatpush3.xpose.msra.mxu1 %v7671_v29 }
 0xf72   :  { %14416 = vmatprep.mubr.msk.f32.mxu0 %vm14998_vm9, %v14997_v47  ;;  %14424 = vmatprep.subr.mxu0 %v14997_v47 }
 0xf73   :  { %14441 = vmatprep.mubr.msk.f32.mxu1 %vm14998_vm9, %v14997_v47  ;;  %14449 = vmatprep.subr.mxu1 %v14997_v47 }
 0xf74   :  { %14417 = vmatmul.mubr.f32.vlgmr.msra.gmra.mxu0 %v7252_v46  ;;  %14442 = vmatmul.mubr.f32.vlgmr.msra.gmra.mxu1 %v7708_v57 }
 0xf75   :  { %14425 = vmatpush3.xpose.msra.mxu0 %v7671_v29  ;;  %14450 = vmatpush3.xpose.msra.mxu1 %v7671_v29 }
 0xf76   :  { %14426 = vmatprep.mubr.msk.f32.mxu0 %vm14998_vm9, %v14997_v47  ;;  %14434 = vmatprep.subr.mxu0 %v14997_v47 }
 0xf77   :  { %14451 = vmatprep.mubr.msk.f32.mxu1 %vm14998_vm9, %v14997_v47  ;;  %14459 = vmatprep.subr.mxu1 %v14997_v47 }
 0xf78   :  { %14427 = vmatmul.mubr.f32.vlgmr.msra.gmra.mxu0 %v7710_v59  ;;  %14452 = vmatmul.mubr.f32.vlgmr.msra.gmra.mxu1 %v7706_v40 }
 0xf79   :  { %14435 = vmatpush3.xpose.msra.mxu0 %v7748_v33  ;;  %14436 = vmatprep.mubr.msk.f32.mxu0 %vm14998_vm9, %v14997_v47 }
 0xf7a   :  { %14444 = vmatprep.subr.mxu0 %v14997_v47  ;;  %14461 = vmatprep.mubr.msk.f32.mxu1 %vm14998_vm9, %v14997_v47 }
 0xf7c   :  { %14437 = vmatmul.mubr.f32.vlgmr.msra.gmra.mxu0 %v7707_v12 }
 0xf7d   :  { %14445 = vmatpush3.xpose.msra.mxu0 %v7749_v42  ;;  %14446 = vmatprep.mubr.msk.f32.mxu0 %vm14998_vm9, %v14997_v47 }
 0xf7e   :  { %14454 = vmatprep.subr.mxu0 %v14997_v47 }
 0xf80   :  { %14447 = vmatmul.mubr.f32.vlgmr.msra.gmra.mxu0 %v7706_v40 }
 0xf81   :  { %14456 = vmatprep.mubr.msk.f32.mxu0 %vm14998_vm9, %v14997_v47 }
0x1024   :  { %v7334_v28 = vpop.f32.mrf.mxu1 }
0x1026   :  { %v14403_v60 = vpop.f32.mrf.mxu1 }
0x1028   :  { %v7482_v53 = vpop.f32.mrf.mxu1 }
0x102a   :  { %v14413_v62 = vpop.f32.mrf.mxu1 }
0x102c   :  { %v7258_v15 = vpop.f32.mrf.mxu0  ;;  %v7628_v63 = vpop.f32.mrf.mxu1 }
0x102d   :  { %v7335_v1 = vadd.f32 %v7334_v28, %v7258_v15 }
0x102e   :  { %v14398_v3 = vpop.f32.mrf.mxu0  ;;  %v14423_v4 = vpop.f32.mrf.mxu1 }
0x1030   :  { %v7408_v43 = vpop.f32.mrf.mxu0  ;;  %v7788_v39 = vpop.f32.mrf.mxu1 }
0x1031   :  { %v7409_v5 = vadd.f32 %v7408_v43, %v7335_v1 }
0x1032   :  { %v14408_v7 = vpop.f32.mrf.mxu0  ;;  %v14433_v2 = vpop.f32.mrf.mxu1 }
0x1033   :  { %v7483_v8 = vadd.f32 %v7482_v53, %v7409_v5 }
0x1034   :  { %v7556_v9 = vpop.f32.mrf.mxu0  ;;  %v7936_v10 = vpop.f32.mrf.mxu1 }
0x1035   :  { %v7557_v19 = vadd.f32 %v7556_v9, %v7483_v8 }
0x1036   :  { %v14418_v21 = vpop.f32.mrf.mxu0  ;;  %v14443_v23 = vpop.f32.mrf.mxu1 }
0x1037   :  { %v15803_v29 = vadd.f32 %v7628_v63, %v7557_v19 }
0x1038   :  { %v7712_v27 = vpop.f32.mrf.mxu0  ;;  %v8082_v30 = vpop.f32.mrf.mxu1 }
0x1039   :  { %v7713_v36 = vadd.f32 %v7712_v27, %v15754_v50 }
0x103a   :  { %v14428_v33 = vpop.f32.mrf.mxu0  ;;  %v14453_v37 = vpop.f32.mrf.mxu1 }
0x103b   :  { %v7789_v31 = vadd.f32 %v7788_v39, %v7713_v36 }
0x103c   :  { %v7862_v38 = vpop.f32.mrf.mxu0 }
0x103d   :  { %v7863_v46 = vadd.f32 %v7862_v38, %v7789_v31 }
0x103e   :  { %v14438_v42 = vpop.f32.mrf.mxu0 }
0x103f   :  { %v7937_v35 = vadd.f32 %v7936_v10, %v7863_v46 }
0x1040   :  { %v8010_v44 = vpop.f32.mrf.mxu0 }
0x1041   :  { %v8011_v40 = vadd.f32 %v8010_v44, %v7937_v35 }
0x1042   :  { %v14448_v45 = vpop.f32.mrf.mxu0 }
0x1043   :  { %v8083_v52 = vadd.f32 %v8082_v30, %v8011_v40 }
0x1045   :  { %v8086_v54 = vsel %vm1247_vm10, %v8083_v52, -inf }
0x1046   :  { %8087 = vmax.xlane.f32.xlu1 %v8086_v54 }
0x1057   :  { %9450 = vrot.lane.b32.xlu1 %v15338_v34, %s15001_s18 }
0x105b   :  { %9448 = vrot.lane.b32.xlu1 %v15665_v61, %s15001_s18 }
0x10cf   :  { %v8088_v12 = vpop.xlane.xlu1 %8087 }
0x10d0   :  { %v8089_v20 = vsub.f32 %v8083_v52, %v8088_v12  ;;  %v9000_v52 = vsel %vm1247_vm10, %v15803_v29, 0 }
0x10d2   :  { %v8090_v56 = vmul.f32 1.442695, %v8089_v20  ;;  %v15844_v20 = vand.u32 4294901760, %v9000_v52 }
0x10d3   :  { %v9451_v44 = vpop.permute.xlu1 %9450 }
0x10d4   :  { %14952 = vpow2.f32 %v8090_v56  ;;  %v9454_v54 = vsel %vm1247_vm10, %v9451_v44, 0  ;;  %v9069_v29 = vsub.f32 %v9000_v52, %v15844_v20 }
0x10e1   :  { %v14953_v57 = vpop.eup %14952 }
0x10e2   :  { %v8092_v58 = vsel %vm1247_vm10, %v14953_v57, 0.0 }
0x10e3   :  { %8093 = vadd.xlane.f32.xlu0 %v8092_v58 }
0x10f9   :  { %8098 = vrot.lane.b32.xlu0 %v15338_v34, %s15002_s19 }
0x116c   :  { %v8094_v59 = vpop.xlane.xlu0 %8093 }
0x116d   :  { %14954 = vrcp.f32 %v8094_v59 }
0x1170   :  { %v8099_v28 = vpop.permute.xlu0 %8098 }
0x1171   :  { %v8135_v60 = vand.u32 4294901760, %v8099_v28 }
0x1173   :  { %v8212_v53 = vsub.f32 %v8099_v28, %v8135_v60  ;;  %14455 = vmatpush3.msra.mxu0 %v8135_v60 }
0x1174   :  { %14464 = vmatprep.subr.mxu0 %v14997_v47 }
0x1175   :  { %v8213_v62 = vand.u32 4294901760, %v8212_v53 }
0x1177   :  { %v8214_v15 = vsub.f32 %v8212_v53, %v8213_v62 }
0x1179   :  { %v8215_v63 = vand.u32 4294901760, %v8214_v15 }
0x117a   :  { %v14955_v1 = vpop.eup %14954 }
0x117b   :  { %14460 = vmatpush3.msra.mxu1 %v8215_v63  ;;  %v8097_v3 = vmul.f32 %v14955_v1, %v14953_v57  ;;  %v15847_v57 = vand.u32 4294901760, %v9454_v54 }
0x117c   :  { %14469 = vmatprep.subr.mxu1 %v14997_v47 }
0x117d   :  { %v8102_v4 = vsel %vm1247_vm10, %v8097_v3, 0  ;;  %v15855_v28 = vsub.f32 %v9454_v54, %v15847_v57 }
0x117e   :  { %v8170_v43 = vand.u32 4294901760, %v8102_v4 }
0x1180   :  { %v8171_v39 = vsub.f32 %v8102_v4, %v8170_v43  ;;  %14462 = vmatmul.mubr.f32.vlgmr.msra.gmra.mxu1 %v8170_v43 }
0x1181   :  { %14470 = vmatpush3.msra.mxu1 %v8135_v60  ;;  %14471 = vmatprep.mubr.msk.f32.mxu1 %vm14998_vm9, %v14997_v47 }
0x1182   :  { %14479 = vmatprep.subr.mxu1 %v14997_v47  ;;  %v8172_v5 = vand.u32 4294901760, %v8171_v39 }
0x1184   :  { %14472 = vmatmul.mubr.f32.vlgmr.msra.gmra.mxu1 %v8172_v5  ;;  %v8173_v7 = vsub.f32 %v8171_v39, %v8172_v5 }
0x1185   :  { %14480 = vmatpush3.msra.mxu1 %v8135_v60  ;;  %14481 = vmatprep.mubr.msk.f32.mxu1 %vm14998_vm9, %v14997_v47  ;;  %v9449_v60 = vpop.permute.xlu1 %9448 }
0x1186   :  { %v8174_v2 = vand.u32 4294901760, %v8173_v7  ;;  %14489 = vmatprep.subr.mxu1 %v14997_v47 }
0x1188   :  { %14457 = vmatmul.mubr.f32.vlgmr.msra.gmra.mxu0 %v8174_v2  ;;  %14482 = vmatmul.mubr.f32.vlgmr.msra.gmra.mxu1 %v8170_v43 }
0x1189   :  { %14465 = vmatpush3.msra.mxu0 %v8212_v53  ;;  %14466 = vmatprep.mubr.msk.f32.mxu0 %vm14998_vm9, %v14997_v47  ;;  %v9565_v53 = vand.u32 4294901760, %v15855_v28 }
0x118a   :  { %14474 = vmatprep.subr.mxu0 %v14997_v47  ;;  %14490 = vmatpush3.msra.mxu1 %v15461_v51 }
0x118b   :  { %14491 = vmatprep.mubr.msk.f32.mxu1 %vm14998_vm9, %v14997_v47  ;;  %14499 = vmatprep.subr.mxu1 %v14997_v47  ;;  %v9566_v15 = vsub.f32 %v15855_v28, %v9565_v53 }
0x118c   :  { %14467 = vmatmul.mubr.f32.vlgmr.msra.gmra.mxu0 %v8171_v39 }
0x118d   :  { %14475 = vmatpush3.msra.mxu0 %v8213_v62  ;;  %14476 = vmatprep.mubr.msk.f32.mxu0 %vm14998_vm9, %v14997_v47  ;;  %v9452_v62 = vsel %vm1247_vm10, %v9449_v60, 0  ;;  %v9567_v1 = vand.u32 4294901760, %v9566_v15 }
0x118e   :  { %14484 = vmatprep.subr.mxu0 %v14997_v47 }
0x1190   :  { %14477 = vmatmul.mubr.f32.vlgmr.msra.gmra.mxu0 %v8170_v43 }
0x1191   :  { %14485 = vmatpush3.msra.mxu0 %v15449_v41  ;;  %14486 = vmatprep.mubr.msk.f32.mxu0 %vm14998_vm9, %v14997_v47 }
0x1192   :  { %14494 = vmatprep.subr.mxu0 %v14997_v47 }
0x1240   :  { %v8252_v51 = vpop.f32.mrf.mxu1 }
0x1242   :  { %v14463_v8 = vpop.f32.mrf.mxu1 }
0x1244   :  { %v8400_v9 = vpop.f32.mrf.mxu1 }
0x1246   :  { %v14473_v10 = vpop.f32.mrf.mxu1 }
0x1248   :  { %v8176_v19 = vpop.f32.mrf.mxu0  ;;  %v8546_v21 = vpop.f32.mrf.mxu1 }
0x1249   :  { %v8253_v30 = vadd.f32 %v8252_v51, %v8176_v19 }
0x124a   :  { %v14458_v23 = vpop.f32.mrf.mxu0  ;;  %v14483_v27 = vpop.f32.mrf.mxu1 }
0x124c   :  { %v8326_v36 = vpop.f32.mrf.mxu0 }
0x124d   :  { %v8327_v33 = vadd.f32 %v8326_v36, %v8253_v30 }
0x124e   :  { %v14468_v37 = vpop.f32.mrf.mxu0 }
0x124f   :  { %v8401_v31 = vadd.f32 %v8400_v9, %v8327_v33 }
0x1250   :  { %v8474_v38 = vpop.f32.mrf.mxu0 }
0x1251   :  { %v8475_v46 = vadd.f32 %v8474_v38, %v8401_v31 }
0x1252   :  { %v14478_v42 = vpop.f32.mrf.mxu0 }
0x1253   :  { %v8547_v35 = vadd.f32 %v8546_v21, %v8475_v46 }
0x1255   :  { %v8551_v40 = vsel %vm1247_vm10, %v8547_v35, 0 }
0x1256   :  { %v8619_v45 = vand.u32 4294901760, %v8551_v40 }
0x1258   :  { %v8620_v12 = vsub.f32 %v8551_v40, %v8619_v45  ;;  %14492 = vmatmul.mubr.f32.vlgmr.msra.gmra.mxu1 %v8619_v45 }
0x1259   :  { %14500 = vmatpush3.msra.mxu1 %v15449_v41  ;;  %14501 = vmatprep.mubr.msk.f32.mxu1 %vm14998_vm9, %v14997_v47 }
0x125a   :  { %v8621_v56 = vand.u32 4294901760, %v8620_v12  ;;  %14509 = vmatprep.subr.mxu1 %v14997_v47 }
0x125c   :  { %14502 = vmatmul.mubr.f32.vlgmr.msra.gmra.mxu1 %v8621_v56  ;;  %v8622_v58 = vsub.f32 %v8620_v12, %v8621_v56 }
0x125d   :  { %14510 = vmatpush3.msra.mxu1 %v15449_v41  ;;  %14511 = vmatprep.mubr.msk.f32.mxu1 %vm14998_vm9, %v14997_v47  ;;  %v9070_v41 = vand.u32 4294901760, %v9069_v29 }
0x125e   :  { %v8623_v59 = vand.u32 4294901760, %v8622_v58  ;;  %14519 = vmatprep.subr.mxu1 %v14997_v47 }
0x1260   :  { %14487 = vmatmul.mubr.f32.vlgmr.msra.gmra.mxu0 %v8623_v59  ;;  %14512 = vmatmul.mubr.f32.vlgmr.msra.gmra.mxu1 %v8619_v45 }
0x1261   :  { %14495 = vmatpush3.msra.mxu0 %v15452_v49  ;;  %14496 = vmatprep.mubr.msk.f32.mxu0 %vm14998_vm9, %v14997_v47  ;;  %v9071_v49 = vsub.f32 %v9069_v29, %v9070_v41 }
0x1262   :  { %14520 = vmatpush3.msra.mxu1 %v15495_v26  ;;  %14521 = vmatprep.mubr.msk.f32.mxu1 %vm14998_vm9, %v14997_v47  ;;  %v9522_v26 = vand.u32 4294901760, %v9452_v62 }
0x1263   :  { %14504 = vmatprep.subr.mxu0 %v14997_v47  ;;  %14529 = vmatprep.subr.mxu1 %v14997_v47 }
0x1264   :  { %14497 = vmatmul.mubr.f32.vlgmr.msra.gmra.mxu0 %v8620_v12  ;;  %14522 = vmatmul.mubr.f32.vlgmr.msra.gmra.mxu1 %v15844_v20  ;;  %v9523_v63 = vsub.f32 %v9452_v62, %v9522_v26 }
0x1265   :  { %14505 = vmatpush3.msra.mxu0 %v15457_v48  ;;  %14506 = vmatprep.mubr.msk.f32.mxu0 %vm14998_vm9, %v14997_v47  ;;  %v9072_v48 = vand.u32 4294901760, %v9071_v49 }
0x1266   :  { %14530 = vmatpush3.msra.mxu1 %v15468_v0  ;;  %14531 = vmatprep.mubr.msk.f32.mxu1 %vm14998_vm9, %v14997_v47 }
0x1267   :  { %14514 = vmatprep.subr.mxu0 %v14997_v47  ;;  %14539 = vmatprep.subr.mxu1 %v14997_v47 }
0x1268   :  { %14507 = vmatmul.mubr.f32.vlgmr.msra.gmra.mxu0 %v8619_v45  ;;  %14532 = vmatmul.mubr.f32.vlgmr.msra.gmra.mxu1 %v9070_v41 }
0x1269   :  { %14515 = vmatpush3.msra.mxu0 %v15468_v0  ;;  %14540 = vmatpush3.msra.mxu1 %v15468_v0  ;;  %v9524_v0 = vand.u32 4294901760, %v9523_v63 }
0x126a   :  { %14516 = vmatprep.mubr.msk.f32.mxu0 %vm14998_vm9, %v14997_v47  ;;  %14541 = vmatprep.mubr.msk.f32.mxu1 %vm14998_vm9, %v14997_v47 }
0x126b   :  { %14549 = vmatprep.subr.mxu1 %v14997_v47  ;;  %14524 = vmatprep.subr.mxu0 %v14997_v47  ;;  %v9525_v3 = vsub.f32 %v9523_v63, %v9524_v0 }
0x126c   :  { %14517 = vmatmul.mubr.f32.vlgmr.msra.gmra.mxu0 %v9072_v48  ;;  %14542 = vmatmul.mubr.f32.vlgmr.msra.gmra.mxu1 %v15844_v20 }
0x126d   :  { %14550 = vmatpush3.xpose.msra.mxu1 %v9567_v1  ;;  %14525 = vmatpush3.msra.mxu0 %v15471_v6  ;;  %v9526_v6 = vand.u32 4294901760, %v9525_v3 }
0x126e   :  { %14526 = vmatprep.mubr.msk.f32.mxu0 %vm14998_vm9, %v14997_v47  ;;  %14551 = vmatprep.mubr.msk.f32.mxu1 %vm14998_vm9, %v14997_v47 }
0x126f   :  { %14559 = vmatprep.subr.mxu1 %v14997_v47  ;;  %14534 = vmatprep.subr.mxu0 %v14997_v47 }
0x1270   :  { %14527 = vmatmul.mubr.f32.vlgmr.msra.gmra.mxu0 %v9069_v29  ;;  %14552 = vmatmul.mubr.f32.vlgmr.msra.gmra.mxu1 %v9522_v26 }
0x1271   :  { %14560 = vmatpush3.xpose.msra.mxu1 %v15847_v57  ;;  %14535 = vmatpush3.msra.mxu0 %v15475_v14 }
0x1272   :  { %14536 = vmatprep.mubr.msk.f32.mxu0 %vm14998_vm9, %v14997_v47  ;;  %14544 = vmatprep.subr.mxu0 %v14997_v47 }
0x1273   :  { %14561 = vmatprep.mubr.msk.f32.mxu1 %vm14998_vm9, %v14997_v47  ;;  %14569 = vmatprep.subr.mxu1 %v14997_v47 }
0x1274   :  { %14537 = vmatmul.mubr.f32.vlgmr.msra.gmra.mxu0 %v15844_v20  ;;  %14562 = vmatmul.mubr.f32.vlgmr.msra.gmra.mxu1 %v9524_v0 }
0x1275   :  { %14545 = vmatpush3.xpose.msra.mxu0 %v15847_v57  ;;  %14570 = vmatpush3.xpose.msra.mxu1 %v15847_v57 }
0x1276   :  { %14546 = vmatprep.mubr.msk.f32.mxu0 %vm14998_vm9, %v14997_v47  ;;  %14554 = vmatprep.subr.mxu0 %v14997_v47 }
0x1277   :  { %14571 = vmatprep.mubr.msk.f32.mxu1 %vm14998_vm9, %v14997_v47  ;;  %14579 = vmatprep.subr.mxu1 %v14997_v47 }
0x1278   :  { %14547 = vmatmul.mubr.f32.vlgmr.msra.gmra.mxu0 %v9526_v6  ;;  %14572 = vmatmul.mubr.f32.vlgmr.msra.gmra.mxu1 %v9522_v26 }
0x1279   :  { %14555 = vmatpush3.xpose.msra.mxu0 %v15855_v28  ;;  %14556 = vmatprep.mubr.msk.f32.mxu0 %vm14998_vm9, %v14997_v47 }
0x127a   :  { %14564 = vmatprep.subr.mxu0 %v14997_v47  ;;  %14581 = vmatprep.mubr.msk.f32.mxu1 %vm14998_vm9, %v14997_v47 }
0x127c   :  { %14557 = vmatmul.mubr.f32.vlgmr.msra.gmra.mxu0 %v9523_v63 }
0x127d   :  { %14565 = vmatpush3.xpose.msra.mxu0 %v9565_v53  ;;  %14566 = vmatprep.mubr.msk.f32.mxu0 %vm14998_vm9, %v14997_v47 }
0x127e   :  { %14574 = vmatprep.subr.mxu0 %v14997_v47 }
0x1280   :  { %14567 = vmatmul.mubr.f32.vlgmr.msra.gmra.mxu0 %v9522_v26 }
0x1281   :  { %14576 = vmatprep.mubr.msk.f32.mxu0 %vm14998_vm9, %v14997_v47 }
0x1318   :  { %v8701_v14 = vpop.f32.mrf.mxu1 }
0x131a   :  { %v14493_v4 = vpop.f32.mrf.mxu1 }
0x131c   :  { %v8849_v43 = vpop.f32.mrf.mxu1 }
0x131e   :  { %v14503_v39 = vpop.f32.mrf.mxu1 }
0x1320   :  { %v8625_v5 = vpop.f32.mrf.mxu0  ;;  %v8995_v7 = vpop.f32.mrf.mxu1 }
0x1321   :  { %v8702_v2 = vadd.f32 %v8701_v14, %v8625_v5 }
0x1322   :  { %v14488_v51 = vpop.f32.mrf.mxu0  ;;  %v14513_v8 = vpop.f32.mrf.mxu1 }
0x1324   :  { %v8775_v9 = vpop.f32.mrf.mxu0  ;;  %v9150_v10 = vpop.f32.mrf.mxu1 }
0x1325   :  { %v8776_v19 = vadd.f32 %v8775_v9, %v8702_v2 }
0x1326   :  { %v14498_v21 = vpop.f32.mrf.mxu0  ;;  %v14523_v23 = vpop.f32.mrf.mxu1 }
0x1327   :  { %v8850_v27 = vadd.f32 %v8849_v43, %v8776_v19 }
0x1328   :  { %v8923_v30 = vpop.f32.mrf.mxu0  ;;  %v9298_v36 = vpop.f32.mrf.mxu1 }
0x1329   :  { %v8924_v33 = vadd.f32 %v8923_v30, %v8850_v27 }
0x132a   :  { %v14508_v37 = vpop.f32.mrf.mxu0  ;;  %v14533_v31 = vpop.f32.mrf.mxu1 }
0x132b   :  { %v8996_v38 = vadd.f32 %v8995_v7, %v8924_v33 }
0x132c   :  { %v9074_v46 = vpop.f32.mrf.mxu0  ;;  %v9444_v42 = vpop.f32.mrf.mxu1 }
0x132d   :  { %v9075_v35 = vadd.f32 %v9074_v46, %v8996_v38 }
0x132e   :  { %v14518_v44 = vpop.f32.mrf.mxu0  ;;  %v14543_v40 = vpop.f32.mrf.mxu1 }
0x132f   :  { %v9151_v45 = vadd.f32 %v9150_v10, %v9075_v35 }
0x1330   :  { %v9224_v52 = vpop.f32.mrf.mxu0  ;;  %v9604_v54 = vpop.f32.mrf.mxu1 }
0x1331   :  { %v9225_v12 = vadd.f32 %v9224_v52, %v9151_v45 }
0x1332   :  { %v14528_v20 = vpop.f32.mrf.mxu0  ;;  %v14553_v56 = vpop.f32.mrf.mxu1 }
0x1333   :  { %v9299_v57 = vadd.f32 %v9298_v36, %v9225_v12 }
0x1334   :  { %v9372_v58 = vpop.f32.mrf.mxu0  ;;  %v9752_v29 = vpop.f32.mrf.mxu1 }
0x1335   :  { %v9373_v59 = vadd.f32 %v9372_v58, %v9299_v57 }
0x1336   :  { %v14538_v28 = vpop.f32.mrf.mxu0  ;;  %v14563_v60 = vpop.f32.mrf.mxu1 }
0x1337   :  { %v15921_v41 = vadd.f32 %v9444_v42, %v9373_v59 }
0x1338   :  { %v9528_v53 = vpop.f32.mrf.mxu0  ;;  %v9898_v62 = vpop.f32.mrf.mxu1 }
0x1339   :  { %v9529_v49 = vadd.f32 %v9528_v53, %v15754_v50 }
0x133a   :  { %v14548_v26 = vpop.f32.mrf.mxu0  ;;  %v14573_v15 = vpop.f32.mrf.mxu1 }
0x133b   :  { %v9605_v48 = vadd.f32 %v9604_v54, %v9529_v49 }
0x133c   :  { %v9678_v63 = vpop.f32.mrf.mxu0 }
0x133d   :  { %v9679_v1 = vadd.f32 %v9678_v63, %v9605_v48 }
0x133e   :  { %v14558_v0 = vpop.f32.mrf.mxu0 }
0x133f   :  { %v9753_v3 = vadd.f32 %v9752_v29, %v9679_v1 }
0x1340   :  { %v9826_v6 = vpop.f32.mrf.mxu0 }
0x1341   :  { %v9827_v14 = vadd.f32 %v9826_v6, %v9753_v3 }
0x1342   :  { %v14568_v4 = vpop.f32.mrf.mxu0 }
0x1343   :  { %v9899_v43 = vadd.f32 %v9898_v62, %v9827_v14 }
0x1345   :  { %v9902_v39 = vsel %vm1247_vm10, %v9899_v43, -inf }
0x1346   :  { %9903 = vmax.xlane.f32.xlu0 %v9902_v39 }
0x135c   :  { %9914 = vrot.lane.b32.xlu0 %v15338_v34, %s15003_s24 }
0x1360   :  { %10816 = vrot.lane.b32.xlu0 %v15665_v61, %s15004_s25 }
0x13cf   :  { %v9904_v5 = vpop.xlane.xlu0 %9903 }
0x13d0   :  { %v9905_v7 = vsub.f32 %v9899_v43, %v9904_v5 }
0x13d2   :  { %v9906_v2 = vmul.f32 1.442695, %v9905_v7 }
0x13d3   :  { %v9915_v51 = vpop.permute.xlu0 %9914 }
0x13d4   :  { %14956 = vpow2.f32 %v9906_v2  ;;  %v9951_v8 = vand.u32 4294901760, %v9915_v51 }
0x13d6   :  { %v10028_v9 = vsub.f32 %v9915_v51, %v9951_v8  ;;  %14575 = vmatpush3.msra.mxu0 %v9951_v8 }
0x13d7   :  { %14584 = vmatprep.subr.mxu0 %v14997_v47  ;;  %v10817_v48 = vpop.permute.xlu0 %10816 }
0x13d8   :  { %v10029_v10 = vand.u32 4294901760, %v10028_v9  ;;  %v10820_v0 = vsel %vm1247_vm10, %v10817_v48, 0 }
0x13d9   :  { %v10890_v14 = vand.u32 4294901760, %v10820_v0 }
0x13da   :  { %v10030_v19 = vsub.f32 %v10028_v9, %v10029_v10 }
0x13db   :  { %v10891_v5 = vsub.f32 %v10820_v0, %v10890_v14 }
0x13dc   :  { %v10031_v21 = vand.u32 4294901760, %v10030_v19 }
0x13dd   :  { %v10892_v51 = vand.u32 4294901760, %v10891_v5 }
0x13de   :  { %14580 = vmatpush3.msra.mxu1 %v10031_v21 }
0x13df   :  { %14589 = vmatprep.subr.mxu1 %v14997_v47 }
0x13e1   :  { %v14957_v23 = vpop.eup %14956 }
0x13e2   :  { %v9908_v27 = vsel %vm1247_vm10, %v14957_v23, 0.0 }
0x13e3   :  { %9909 = vadd.xlane.f32.xlu1 %v9908_v27 }
0x13f4   :  { %10818 = vrot.lane.b32.xlu1 %v15338_v34, %s15004_s25 }
0x146c   :  { %v9910_v61 = vpop.xlane.xlu1 %9909 }
0x146d   :  { %14958 = vrcp.f32 %v9910_v61 }
0x1470   :  { %v10819_v54 = vpop.permute.xlu1 %10818 }
0x1471   :  { %v10822_v57 = vsel %vm1247_vm10, %v10819_v54, 0 }
0x1472   :  { %v10855_v28 = vand.u32 4294901760, %v10822_v57 }
0x1474   :  { %v10932_v26 = vsub.f32 %v10822_v57, %v10855_v28 }
0x1476   :  { %v10933_v3 = vand.u32 4294901760, %v10932_v26 }
0x1478   :  { %v10934_v43 = vsub.f32 %v10932_v26, %v10933_v3 }
0x147a   :  { %v14959_v30 = vpop.eup %14958  ;;  %v10935_v2 = vand.u32 4294901760, %v10934_v43 }
0x147b   :  { %v9913_v36 = vmul.f32 %v14959_v30, %v14957_v23 }
0x147d   :  { %v9918_v33 = vsel %vm1247_vm10, %v9913_v36, 0 }
0x147e   :  { %v9986_v37 = vand.u32 4294901760, %v9918_v33 }
0x1480   :  { %v9987_v31 = vsub.f32 %v9918_v33, %v9986_v37  ;;  %14582 = vmatmul.mubr.f32.vlgmr.msra.gmra.mxu1 %v9986_v37 }
0x1481   :  { %14590 = vmatpush3.msra.mxu1 %v9951_v8  ;;  %14591 = vmatprep.mubr.msk.f32.mxu1 %vm14998_vm9, %v14997_v47 }
0x1482   :  { %14599 = vmatprep.subr.mxu1 %v14997_v47  ;;  %v9988_v38 = vand.u32 4294901760, %v9987_v31 }
0x1484   :  { %14592 = vmatmul.mubr.f32.vlgmr.msra.gmra.mxu1 %v9988_v38  ;;  %v9989_v46 = vsub.f32 %v9987_v31, %v9988_v38 }
0x1485   :  { %14600 = vmatpush3.msra.mxu1 %v9951_v8  ;;  %14601 = vmatprep.mubr.msk.f32.mxu1 %vm14998_vm9, %v14997_v47 }
0x1486   :  { %v9990_v42 = vand.u32 4294901760, %v9989_v46  ;;  %14609 = vmatprep.subr.mxu1 %v14997_v47 }
0x1488   :  { %14577 = vmatmul.mubr.f32.vlgmr.msra.gmra.mxu0 %v9990_v42  ;;  %14602 = vmatmul.mubr.f32.vlgmr.msra.gmra.mxu1 %v9986_v37 }
0x1489   :  { %14585 = vmatpush3.msra.mxu0 %v10028_v9  ;;  %14586 = vmatprep.mubr.msk.f32.mxu0 %vm14998_vm9, %v14997_v47 }
0x148a   :  { %14594 = vmatprep.subr.mxu0 %v14997_v47  ;;  %14610 = vmatpush3.msra.mxu1 %v15609_v22 }
0x148b   :  { %14611 = vmatprep.mubr.msk.f32.mxu1 %vm14998_vm9, %v14997_v47  ;;  %14619 = vmatprep.subr.mxu1 %v14997_v47 }
0x148c   :  { %14587 = vmatmul.mubr.f32.vlgmr.msra.gmra.mxu0 %v9987_v31 }
0x148d   :  { %14595 = vmatpush3.msra.mxu0 %v10029_v10  ;;  %14596 = vmatprep.mubr.msk.f32.mxu0 %vm14998_vm9, %v14997_v47 }
0x148e   :  { %14604 = vmatprep.subr.mxu0 %v14997_v47 }
0x1490   :  { %14597 = vmatmul.mubr.f32.vlgmr.msra.gmra.mxu0 %v9986_v37 }
0x1491   :  { %14605 = vmatpush3.msra.mxu0 %v15597_v16  ;;  %14606 = vmatprep.mubr.msk.f32.mxu0 %vm14998_vm9, %v14997_v47 }
0x1492   :  { %14614 = vmatprep.subr.mxu0 %v14997_v47 }
0x1540   :  { %v10068_v22 = vpop.f32.mrf.mxu1 }
0x1542   :  { %v14583_v35 = vpop.f32.mrf.mxu1 }
0x1544   :  { %v10216_v44 = vpop.f32.mrf.mxu1 }
0x1546   :  { %v14593_v40 = vpop.f32.mrf.mxu1 }
0x1548   :  { %v9992_v45 = vpop.f32.mrf.mxu0  ;;  %v10362_v52 = vpop.f32.mrf.mxu1 }
0x1549   :  { %v10069_v56 = vadd.f32 %v10068_v22, %v9992_v45 }
0x154a   :  { %v14578_v12 = vpop.f32.mrf.mxu0  ;;  %v14603_v20 = vpop.f32.mrf.mxu1 }
0x154c   :  { %v10142_v58 = vpop.f32.mrf.mxu0 }
0x154d   :  { %v10143_v29 = vadd.f32 %v10142_v58, %v10069_v56 }
0x154e   :  { %v14588_v59 = vpop.f32.mrf.mxu0 }
0x154f   :  { %v10217_v60 = vadd.f32 %v10216_v44, %v10143_v29  ;;  %v16003_v59 = vld [vmem:[%s16401_s6 + $0x20] ss:$0 sm:$0xff] }
0x1550   :  { %v10290_v53 = vpop.f32.mrf.mxu0 }
0x1551   :  { %v10291_v62 = vadd.f32 %v10290_v53, %v10217_v60 }
0x1552   :  { %v14598_v49 = vpop.f32.mrf.mxu0 }
0x1553   :  { %v10363_v15 = vadd.f32 %v10362_v52, %v10291_v62  ;;  %v12188_v62 = vadd.f32 %v16003_v59, %v15757_v55 }
0x1555   :  { %v10367_v63 = vsel %vm1247_vm10, %v10363_v15, 0  ;;  %v14972_v15 = vld [vmem:[%s16395_s0] sm:$0xff] }
0x1556   :  { %v10435_v1 = vand.u32 4294901760, %v10367_v63  ;;  %v16011_v48 = vadd.f32 %v14972_v15, %v12188_v62 }
0x1558   :  { %v10436_v6 = vsub.f32 %v10367_v63, %v10435_v1  ;;  %14612 = vmatmul.mubr.f32.vlgmr.msra.gmra.mxu1 %v10435_v1  ;;  %v12192_v63 = vsel %vm38_vm0, %v16011_v48, 0.0 }
0x1559   :  { %14620 = vmatpush3.msra.mxu1 %v15597_v16  ;;  %14621 = vmatprep.mubr.msk.f32.mxu1 %vm14998_vm9, %v14997_v47 }
0x155a   :  { %v10437_v4 = vand.u32 4294901760, %v10436_v6  ;;  %14629 = vmatprep.subr.mxu1 %v14997_v47 }
0x155c   :  { %v10438_v39 = vsub.f32 %v10436_v6, %v10437_v4  ;;  %14622 = vmatmul.mubr.f32.vlgmr.msra.gmra.mxu1 %v10437_v4 }
0x155d   :  { %14630 = vmatpush3.msra.mxu1 %v15597_v16  ;;  %14631 = vmatprep.mubr.msk.f32.mxu1 %vm14998_vm9, %v14997_v47  ;;  %v10893_v16 = vsub.f32 %v10891_v5, %v10892_v51 }
0x155e   :  { %v10439_v7 = vand.u32 4294901760, %v10438_v39  ;;  %14639 = vmatprep.subr.mxu1 %v14997_v47 }
0x1560   :  { %14607 = vmatmul.mubr.f32.vlgmr.msra.gmra.mxu0 %v10439_v7  ;;  %14632 = vmatmul.mubr.f32.vlgmr.msra.gmra.mxu1 %v10435_v1 }
0x1561   :  { %14640 = vmatpush3.xpose.msra.mxu1 %v10935_v2  ;;  %14615 = vmatpush3.msra.mxu0 %v15600_v17  ;;  %v10894_v17 = vand.u32 4294901760, %v10893_v16 }
0x1562   :  { %14616 = vmatprep.mubr.msk.f32.mxu0 %vm14998_vm9, %v14997_v47  ;;  %14641 = vmatprep.mubr.msk.f32.mxu1 %vm14998_vm9, %v14997_v47 }
0x1563   :  { %14649 = vmatprep.subr.mxu1 %v14997_v47  ;;  %14624 = vmatprep.subr.mxu0 %v14997_v47 }
0x1564   :  { %14617 = vmatmul.mubr.f32.vlgmr.msra.gmra.mxu0 %v10436_v6  ;;  %14642 = vmatmul.mubr.f32.vlgmr.msra.gmra.mxu1 %v10890_v14 }
0x1565   :  { %14650 = vmatpush3.xpose.msra.mxu1 %v10855_v28  ;;  %14625 = vmatpush3.msra.mxu0 %v15605_v18 }
0x1566   :  { %14626 = vmatprep.mubr.msk.f32.mxu0 %vm14998_vm9, %v14997_v47  ;;  %14634 = vmatprep.subr.mxu0 %v14997_v47 }
0x1567   :  { %14651 = vmatprep.mubr.msk.f32.mxu1 %vm14998_vm9, %v14997_v47  ;;  %14659 = vmatprep.subr.mxu1 %v14997_v47 }
0x1568   :  { %14627 = vmatmul.mubr.f32.vlgmr.msra.gmra.mxu0 %v10435_v1  ;;  %14652 = vmatmul.mubr.f32.vlgmr.msra.gmra.mxu1 %v10892_v51 }
0x1569   :  { %14635 = vmatpush3.xpose.msra.mxu0 %v10855_v28  ;;  %14660 = vmatpush3.xpose.msra.mxu1 %v10855_v28 }
0x156a   :  { %14636 = vmatprep.mubr.msk.f32.mxu0 %vm14998_vm9, %v14997_v47  ;;  %14644 = vmatprep.subr.mxu0 %v14997_v47 }
0x156b   :  { %14661 = vmatprep.mubr.msk.f32.mxu1 %vm14998_vm9, %v14997_v47  ;;  %14669 = vmatprep.subr.mxu1 %v14997_v47 }
0x156c   :  { %14637 = vmatmul.mubr.f32.vlgmr.msra.gmra.mxu0 %v10894_v17  ;;  %14662 = vmatmul.mubr.f32.vlgmr.msra.gmra.mxu1 %v10890_v14 }
0x156d   :  { %14645 = vmatpush3.xpose.msra.mxu0 %v10932_v26  ;;  %14646 = vmatprep.mubr.msk.f32.mxu0 %vm14998_vm9, %v14997_v47 }
0x156e   :  { %14654 = vmatprep.subr.mxu0 %v14997_v47  ;;  %14671 = vmatprep.mubr.msk.f32.mxu1 %vm14998_vm9, %v14997_v47 }
0x1570   :  { %14647 = vmatmul.mubr.f32.vlgmr.msra.gmra.mxu0 %v10891_v5 }
0x1571   :  { %14655 = vmatpush3.xpose.msra.mxu0 %v10933_v3  ;;  %14656 = vmatprep.mubr.msk.f32.mxu0 %vm14998_vm9, %v14997_v47 }
0x1572   :  { %14664 = vmatprep.subr.mxu0 %v14997_v47 }
0x1574   :  { %14657 = vmatmul.mubr.f32.vlgmr.msra.gmra.mxu0 %v10890_v14 }
0x1575   :  { %14666 = vmatprep.mubr.msk.f32.mxu0 %vm14998_vm9, %v14997_v47 }
0x1618   :  { %v10517_v18 = vpop.f32.mrf.mxu1 }
0x161a   :  { %v14613_v8 = vpop.f32.mrf.mxu1 }
0x161c   :  { %v10665_v9 = vpop.f32.mrf.mxu1 }
0x161e   :  { %v14623_v10 = vpop.f32.mrf.mxu1 }
0x1620   :  { %v10441_v19 = vpop.f32.mrf.mxu0  ;;  %v10811_v21 = vpop.f32.mrf.mxu1 }
0x1621   :  { %v10518_v23 = vadd.f32 %v10517_v18, %v10441_v19 }
0x1622   :  { %v14608_v27 = vpop.f32.mrf.mxu0  ;;  %v14633_v61 = vpop.f32.mrf.mxu1 }
0x1624   :  { %v10591_v30 = vpop.f32.mrf.mxu0  ;;  %v10972_v36 = vpop.f32.mrf.mxu1 }
0x1625   :  { %v10592_v33 = vadd.f32 %v10591_v30, %v10518_v23 }
0x1626   :  { %v14618_v37 = vpop.f32.mrf.mxu0  ;;  %v14643_v31 = vpop.f32.mrf.mxu1 }
0x1627   :  { %v10666_v38 = vadd.f32 %v10665_v9, %v10592_v33 }
0x1628   :  { %v10739_v46 = vpop.f32.mrf.mxu0  ;;  %v11120_v42 = vpop.f32.mrf.mxu1 }
0x1629   :  { %v10740_v22 = vadd.f32 %v10739_v46, %v10666_v38 }
0x162a   :  { %v14628_v35 = vpop.f32.mrf.mxu0  ;;  %v14653_v44 = vpop.f32.mrf.mxu1 }
0x162b   :  { %v10812_v40 = vadd.f32 %v10811_v21, %v10740_v22 }
0x162c   :  { %v10896_v45 = vpop.f32.mrf.mxu0  ;;  %v11266_v52 = vpop.f32.mrf.mxu1 }
0x162d   :  { %v15997_v54 = vadd.f32 %v10812_v40, %v15921_v41  ;;  %v10897_v12 = vadd.f32 %v10896_v45, %v15754_v50 }
0x162e   :  { %v14638_v20 = vpop.f32.mrf.mxu0  ;;  %v14663_v56 = vpop.f32.mrf.mxu1 }
0x162f   :  { %v10973_v57 = vadd.f32 %v10972_v36, %v10897_v12 }
0x1630   :  { %v11046_v58 = vpop.f32.mrf.mxu0 }
0x1631   :  { %v11047_v29 = vadd.f32 %v11046_v58, %v10973_v57 }
0x1632   :  { %v14648_v28 = vpop.f32.mrf.mxu0 }
0x1633   :  { %v11121_v60 = vadd.f32 %v11120_v42, %v11047_v29 }
0x1634   :  { %v11194_v53 = vpop.f32.mrf.mxu0 }
0x1635   :  { %v11195_v41 = vadd.f32 %v11194_v53, %v11121_v60 }
0x1636   :  { %v14658_v49 = vpop.f32.mrf.mxu0 }
0x1637   :  { %v11267_v26 = vadd.f32 %v11266_v52, %v11195_v41 }
0x1639   :  { %v11270_v50 = vsel %vm1247_vm10, %v11267_v26, -inf }
0x163a   :  { %11271 = vmax.xlane.f32.xlu1 %v11270_v50 }
0x163e   :  { %12193 = vadd.xlane.f32.xlu1 %v12192_v63 }
0x16c3   :  { %v11272_v1 = vpop.xlane.xlu1 %11271 }
0x16c4   :  { %v11273_v0 = vsub.f32 %v11267_v26, %v11272_v1 }
0x16c6   :  { %v11274_v3 = vmul.f32 1.442695, %v11273_v0 }
0x16c7   :  { %v12194_v15 = vpop.xlane.xlu1 %12193 }
0x16c8   :  { %14960 = vpow2.f32 %v11274_v3  ;;  %v12198_v0 = vmul.f32 0.03125, %v12194_v15 }
0x16d5   :  { %v14961_v55 = vpop.eup %14960 }
0x16d6   :  { %v11276_v6 = vsel %vm1247_vm10, %v14961_v55, 0.0 }
0x16d7   :  { %11277 = vadd.xlane.f32.xlu0 %v11276_v6 }
0x16ed   :  { %11282 = vrot.lane.b32.xlu0 %v15338_v34, %s15005_s28 }
0x1760   :  { %v11278_v14 = vpop.xlane.xlu0 %11277 }
0x1761   :  { %14962 = vrcp.f32 %v11278_v14  ;;  %v14973_v14 = vld [vmem:[%s16395_s0 + $0x8] sm:$0xff] }
0x1764   :  { %v11283_v4 = vpop.permute.xlu0 %11282 }
0x1765   :  { %v11319_v43 = vand.u32 4294901760, %v11283_v4 }
0x1767   :  { %v11396_v39 = vsub.f32 %v11283_v4, %v11319_v43  ;;  %14665 = vmatpush3.msra.mxu0 %v11319_v43 }
0x1768   :  { %14674 = vmatprep.subr.mxu0 %v14997_v47 }
0x1769   :  { %v11397_v5 = vand.u32 4294901760, %v11396_v39 }
0x176b   :  { %v11398_v7 = vsub.f32 %v11396_v39, %v11397_v5 }
0x176d   :  { %v11399_v2 = vand.u32 4294901760, %v11398_v7 }
0x176e   :  { %v14963_v51 = vpop.eup %14962 }
0x176f   :  { %v11281_v16 = vmul.f32 %v14963_v51, %v14961_v55  ;;  %14670 = vmatpush3.msra.mxu1 %v11399_v2  ;;  %v12200_v55 = vsub.f32 %v16011_v48, %v12198_v0 }
0x1770   :  { %14679 = vmatprep.subr.mxu1 %v14997_v47 }
0x1771   :  { %v11286_v17 = vsel %vm1247_vm10, %v11281_v16, 0 }
0x1772   :  { %v11354_v18 = vand.u32 4294901760, %v11286_v17 }
0x1774   :  { %v11355_v34 = vsub.f32 %v11286_v17, %v11354_v18  ;;  %14672 = vmatmul.mubr.f32.vlgmr.msra.gmra.mxu1 %v11354_v18 }
0x1775   :  { %14680 = vmatpush3.msra.mxu1 %v11319_v43  ;;  %14681 = vmatprep.mubr.msk.f32.mxu1 %vm14998_vm9, %v14997_v47 }
0x1776   :  { %14689 = vmatprep.subr.mxu1 %v14997_v47  ;;  %v11356_v8 = vand.u32 4294901760, %v11355_v34 }
0x1778   :  { %14682 = vmatmul.mubr.f32.vlgmr.msra.gmra.mxu1 %v11356_v8  ;;  %v11357_v9 = vsub.f32 %v11355_v34, %v11356_v8 }
0x1779   :  { %14690 = vmatpush3.msra.mxu1 %v11319_v43  ;;  %14691 = vmatprep.mubr.msk.f32.mxu1 %vm14998_vm9, %v14997_v47 }
0x177a   :  { %v11358_v10 = vand.u32 4294901760, %v11357_v9  ;;  %14699 = vmatprep.subr.mxu1 %v14997_v47 }
0x177c   :  { %14667 = vmatmul.mubr.f32.vlgmr.msra.gmra.mxu0 %v11358_v10  ;;  %14692 = vmatmul.mubr.f32.vlgmr.msra.gmra.mxu1 %v11354_v18 }
0x177d   :  { %14675 = vmatpush3.msra.mxu0 %v11396_v39  ;;  %14676 = vmatprep.mubr.msk.f32.mxu0 %vm14998_vm9, %v14997_v47  ;;  %v12202_v39 = vmul.f32 %v12200_v55, %v12200_v55 }
0x177e   :  { %14684 = vmatprep.subr.mxu0 %v14997_v47  ;;  %14700 = vmatpush3.msra.mxu1 %v15703_v32 }
0x177f   :  { %14701 = vmatprep.mubr.msk.f32.mxu1 %vm14998_vm9, %v14997_v47  ;;  %14709 = vmatprep.subr.mxu1 %v14997_v47 }
0x1780   :  { %14677 = vmatmul.mubr.f32.vlgmr.msra.gmra.mxu0 %v11355_v34 }
0x1781   :  { %14685 = vmatpush3.msra.mxu0 %v11397_v5  ;;  %14686 = vmatprep.mubr.msk.f32.mxu0 %vm14998_vm9, %v14997_v47  ;;  %v12204_v5 = vsel %vm38_vm0, %v12202_v39, 0.0 }
0x1782   :  { %14694 = vmatprep.subr.mxu0 %v14997_v47 }
0x1784   :  { %14687 = vmatmul.mubr.f32.vlgmr.msra.gmra.mxu0 %v11354_v18 }
0x1785   :  { %14695 = vmatpush3.msra.mxu0 %v15691_v13  ;;  %14696 = vmatprep.mubr.msk.f32.mxu0 %vm14998_vm9, %v14997_v47 }
0x1786   :  { %14704 = vmatprep.subr.mxu0 %v14997_v47 }
0x1834   :  { %v11436_v32 = vpop.f32.mrf.mxu1 }
0x1836   :  { %v14673_v19 = vpop.f32.mrf.mxu1 }
0x1837   :  { %v12234_v19 = vsub.s32 4, %v15157_v11 }
0x1838   :  { %v11584_v21 = vpop.f32.mrf.mxu1 }
0x183a   :  { %v14683_v23 = vpop.f32.mrf.mxu1 }
0x183c   :  { %v11360_v27 = vpop.f32.mrf.mxu0  ;;  %v11730_v61 = vpop.f32.mrf.mxu1 }
0x183d   :  { %v11437_v33 = vadd.f32 %v11436_v32, %v11360_v27  ;;  %v12242_v27 = vsub.s32 5, %v15157_v11 }
0x183e   :  { %v14668_v30 = vpop.f32.mrf.mxu0  ;;  %v14693_v36 = vpop.f32.mrf.mxu1 }
0x1840   :  { %v11510_v37 = vpop.f32.mrf.mxu0 }
0x1841   :  { %v11511_v31 = vadd.f32 %v11510_v37, %v11437_v33  ;;  %v12249_v37 = vld [vmem:[%s16402_s7 + $0x18] sm:$0xff] }
0x1842   :  { %v14678_v38 = vpop.f32.mrf.mxu0 }
0x1843   :  { %v11585_v46 = vadd.f32 %v11584_v21, %v11511_v31  ;;  %v14974_v21 = vld [vmem:[%s16398_s3] sm:$0x3f]  ;;  %v12248_v31 = vld [vmem:[%s16402_s7 + $0x10] sm:$0xff]  ;;  %v12247_v38 = vld [vmem:[%s16402_s7 + $0x8] sm:$0xff] }
0x1844   :  { %v11658_v42 = vpop.f32.mrf.mxu0  ;;  %v16077_v23 = vrot.slane %v14974_v21, %v12234_v19  ;;  %v16081_v30 = vrot.slane %v14974_v21, %v12242_v27  ;;  %v16094_v11 = vand.u32 4294901760, %v12248_v31  ;;  %v12796_v19 = vld [vmem:[%s16403_s8 + $0x28] sm:$0xff] }
0x1845   :  { %v11659_v22 = vadd.f32 %v11658_v42, %v11585_v46  ;;  %v16092_v46 = vand.u32 4294901760, %v12249_v37  ;;  %v16096_v42 = vand.u32 4294901760, %v12247_v38  ;;  %v16216_v27 = vand.u32 4294901760, %v12796_v19 }
0x1846   :  { %v14688_v35 = vpop.f32.mrf.mxu0 }
0x1847   :  { %v11731_v44 = vadd.f32 %v11730_v61, %v11659_v22  ;;  %v12236_v61 = vmul.f32 %v16077_v23, %v12200_v55  ;;  %v12246_v22 = vld [vmem:[%s16402_s7] sm:$0xff] }
0x1849   :  { %v11735_v40 = vsel %vm1247_vm10, %v11731_v44, 0  ;;  %v16102_v44 = vand.u32 4294901760, %v12246_v22 }
0x184a   :  { %v11803_v45 = vand.u32 4294901760, %v11735_v40 }
0x184c   :  { %v11804_v52 = vsub.f32 %v11735_v40, %v11803_v45  ;;  %14702 = vmatmul.mubr.f32.vlgmr.msra.gmra.mxu1 %v11803_v45  ;;  %v16105_v40 = vsub.f32 %v12249_v37, %v16092_v46 }
0x184d   :  { %14710 = vmatpush3.msra.mxu1 %v15691_v13  ;;  %14711 = vmatprep.mubr.msk.f32.mxu1 %vm14998_vm9, %v14997_v47 }
0x184e   :  { %v11805_v12 = vand.u32 4294901760, %v11804_v52  ;;  %14719 = vmatprep.subr.mxu1 %v14997_v47 }
0x1850   :  { %v11806_v20 = vsub.f32 %v11804_v52, %v11805_v12  ;;  %14712 = vmatmul.mubr.f32.vlgmr.msra.gmra.mxu1 %v11805_v12 }
0x1851   :  { %14720 = vmatpush3.msra.mxu1 %v15691_v13  ;;  %14721 = vmatprep.mubr.msk.f32.mxu1 %vm14998_vm9, %v14997_v47 }
0x1852   :  { %v11807_v56 = vand.u32 4294901760, %v11806_v20  ;;  %v16116_v20 = vsub.f32 %v12246_v22, %v16102_v44 }
0x1854   :  { %14697 = vmatmul.mubr.f32.vlgmr.msra.gmra.mxu0 %v11807_v56  ;;  %14722 = vmatmul.mubr.f32.vlgmr.msra.gmra.mxu1 %v11803_v45 }
0x1855   :  { %14705 = vmatpush3.msra.mxu0 %v15694_v24  ;;  %14706 = vmatprep.mubr.msk.f32.mxu0 %vm14998_vm9, %v14997_v47 }
0x1856   :  { %14714 = vmatprep.subr.mxu0 %v14997_v47 }
0x1858   :  { %14707 = vmatmul.mubr.f32.vlgmr.msra.gmra.mxu0 %v11804_v52  ;;  %v16111_v52 = vsub.f32 %v12247_v38, %v16096_v42 }
0x1859   :  { %14715 = vmatpush3.msra.mxu0 %v15699_v25  ;;  %14716 = vmatprep.mubr.msk.f32.mxu0 %vm14998_vm9, %v14997_v47 }
0x185a   :  { %14724 = vmatprep.subr.mxu0 %v16092_v46 }
0x185c   :  { %14717 = vmatmul.mubr.f32.vlgmr.msra.gmra.mxu0 %v11803_v45  ;;  %v16108_v45 = vsub.f32 %v12248_v31, %v16094_v11  ;;  %v12794_v31 = vld [vmem:[%s16403_s8 + $0x18] sm:$0xff] }
0x185d   :  { %14725 = vmatpush3.msra.mxu0 %v16092_v46  ;;  %v16247_v22 = vand.u32 4294901760, %v12794_v31 }
0x185e   :  { %14726 = vmatprep.subr.mxu0 %v16094_v11 }
0x185f   :  { %14727 = vmatpush3.msra.mxu0 %v16094_v11 }
0x1860   :  { %14728 = vmatprep.subr.mxu0 %v16096_v42 }
0x1861   :  { %14729 = vmatpush3.msra.mxu0 %v16096_v42 }
0x1862   :  { %14730 = vmatprep.subr.mxu0 %v16102_v44 }
0x1863   :  { %14731 = vmatpush3.msra.mxu0 %v16102_v44 }
0x1864   :  { %14746 = vmatprep.subr.mxu0 %v16105_v40 }
0x190c   :  { %v11885_v13 = vpop.f32.mrf.mxu1 }
0x190e   :  { %v14703_v57 = vpop.f32.mrf.mxu1 }
0x190f   :  { %v16125_v57 = vand.u32 4294901760, %v16108_v45 }
0x1910   :  { %v12033_v58 = vpop.f32.mrf.mxu1 }
0x1912   :  { %v14713_v29 = vpop.f32.mrf.mxu1 }
0x1913   :  { %v16132_v29 = vand.u32 4294901760, %v16116_v20 }
0x1914   :  { %v11809_v28 = vpop.f32.mrf.mxu0  ;;  %v12179_v60 = vpop.f32.mrf.mxu1 }
0x1915   :  { %v11886_v62 = vadd.f32 %v11885_v13, %v11809_v28  ;;  %v16122_v13 = vand.u32 4294901760, %v16105_v40 }
0x1916   :  { %v14698_v53 = vpop.f32.mrf.mxu0  ;;  %v14723_v24 = vpop.f32.mrf.mxu1 }
0x1917   :  { %v12385_v53 = vsub.f32 %v16108_v45, %v16125_v57 }
0x1918   :  { %v11959_v41 = vpop.f32.mrf.mxu0 }
0x1919   :  { %v11960_v49 = vadd.f32 %v11959_v41, %v11886_v62 }
0x191a   :  { %v14708_v26 = vpop.f32.mrf.mxu0 }
0x191b   :  { %v12034_v50 = vadd.f32 %v12033_v58, %v11960_v49  ;;  %v16128_v58 = vand.u32 4294901760, %v16111_v52  ;;  %v12386_v49 = vand.u32 4294901760, %v12385_v53  ;;  %v12399_v26 = vsub.f32 %v16116_v20, %v16132_v29 }
0x191c   :  { %v12107_v63 = vpop.f32.mrf.mxu0 }
0x191d   :  { %v12108_v25 = vadd.f32 %v12107_v63, %v12034_v50  ;;  %v12392_v24 = vsub.f32 %v16111_v52, %v16128_v58 }
0x191e   :  { %v14718_v1 = vpop.f32.mrf.mxu0 }
0x191f   :  { %v12180_v47 = vadd.f32 %v12179_v60, %v12108_v25  ;;  %v12378_v60 = vsub.f32 %v16105_v40, %v16122_v13  ;;  %v12393_v15 = vand.u32 4294901760, %v12392_v24  ;;  %v12400_v25 = vand.u32 4294901760, %v12399_v26 }
0x1921   :  { %v12183_v3 = vadd.f32 %v12180_v47, %v15997_v54  ;;  %v12379_v41 = vand.u32 4294901760, %v12378_v60 }
0x1923   :  { %v12189_v6 = vadd.f32 %v16003_v59, %v12183_v3  ;;  %14735 = vmatprep.subr.mxu1 %v12379_v41 }
0x1924   :  { %14736 = vmatpush3.msra.mxu1 %v12379_v41 }
0x1925   :  { %v16062_v4 = vadd.f32 %v14973_v14, %v12189_v6  ;;  %14737 = vmatprep.subr.mxu1 %v12386_v49 }
0x1926   :  { %14738 = vmatpush3.msra.mxu1 %v12386_v49 }
0x1927   :  { %v12195_v43 = vsel %vm38_vm0, %v16062_v4, 0.0  ;;  %14739 = vmatprep.subr.mxu1 %v12393_v15 }
0x1928   :  { %12196 = vadd.xlane.f32.xlu1 %v12195_v43  ;;  %14740 = vmatpush3.msra.mxu1 %v12393_v15 }
0x1929   :  { %14741 = vmatprep.subr.mxu1 %v12400_v25 }
0x192a   :  { %14742 = vmatpush3.msra.mxu1 %v12400_v25 }
0x192b   :  { %14757 = vmatprep.subr.mxu1 %v16092_v46 }
0x192c   :  { %12205 = vadd.xlane.f32.xlu1 %v12204_v5 }
0x19b1   :  { %v12197_v7 = vpop.xlane.xlu1 %12196 }
0x19b2   :  { %v12199_v54 = vmul.f32 0.03125, %v12197_v7 }
0x19b4   :  { %v16068_v2 = vsub.f32 %v16062_v4, %v12199_v54 }
0x19b5   :  { %v12206_v59 = vpop.xlane.xlu1 %12205 }
0x19b6   :  { %v12210_v51 = vmul.f32 0.032258064, %v12206_v59  ;;  %v12203_v16 = vmul.f32 %v16068_v2, %v16068_v2  ;;  %v12237_v39 = vmul.f32 %v16077_v23, %v16068_v2 }
0x19b8   :  { %14964 = vrsqrt.f32 %v12210_v51  ;;  %v12207_v17 = vsel %vm38_vm0, %v12203_v16, 0.0  ;;  %vm12214_vm13 = vcmp.eq.f32.partialorder %v12210_v51, inf  ;;  %v12217_v8 = vand.u32 2147483648, %v12210_v51 }
0x19b9   :  { %12208 = vadd.xlane.f32.xlu1 %v12207_v17  ;;  %vm12216_vm14 = vcmp.eq.f32.partialorder %v12210_v51, 0.0 }
0x19c5   :  { %v14965_v18 = vpop.eup %14964 }
0x19c6   :  { %v12213_v34 = vmul.f32 %v14965_v18, %v12210_v51 }
0x19c8   :  { %v12215_v9 = vsel %vm12214_vm13, %v12210_v51, %v12213_v34  ;;  %v12798_v34 = vld [vmem:[%s16403_s8 + $0x38] sm:$0xff] }
0x19c9   :  { %v12218_v10 = vsel %vm12216_vm14, %v12217_v8, %v12215_v9  ;;  %v16195_v8 = vand.u32 4294901760, %v12798_v34  ;;  %v12797_v9 = vld [vmem:[%s16403_s8 + $0x30] sm:$0xff] }
0x19ca   :  { %v12226_v32 = vadd.f32 1e-06, %v12218_v10 }
0x19cb   :  { %v16201_v10 = vsub.f32 %v12798_v34, %v16195_v8 }
0x19cc   :  { %14966 = vrcp.f32 %v12226_v32  ;;  %v16203_v32 = vand.u32 4294901760, %v12797_v9 }
0x19cd   :  { %v16211_v21 = vand.u32 4294901760, %v16201_v10 }
0x19ce   :  { %v16214_v23 = vsub.f32 %v12797_v9, %v16203_v32 }
0x19d9   :  { %v14967_v36 = vpop.eup %14966 }
0x19da   :  { %v12238_v33 = vmul.f32 %v14967_v36, %v12236_v61  ;;  %v12795_v61 = vld [vmem:[%s16403_s8 + $0x20] sm:$0xff]  ;;  %v16226_v36 = vand.u32 4294901760, %v16214_v23 }
0x19db   :  { %v16231_v37 = vand.u32 4294901760, %v12795_v61 }
0x19dc   :  { %v12244_v35 = vadd.f32 %v16081_v30, %v12238_v33  ;;  %v16229_v33 = vsub.f32 %v12796_v19, %v16216_v27 }
0x19de   :  { %v12256_v12 = vsel %vm38_vm0, %v12244_v35, 0  ;;  %v12793_v35 = vld [vmem:[%s16403_s8 + $0x10] sm:$0xff] }
0x19df   :  { %v16119_v56 = vand.u32 4294901760, %v12256_v12 }
0x19e1   :  { %14743 = vmatprep.mubr.f32.mxu1 %v16119_v56  ;;  %v16137_v28 = vsub.f32 %v12256_v12, %v16119_v56  ;;  %v16261_v12 = vsub.f32 %v12794_v31, %v16247_v22 }
0x19e3   :  { %v12332_v62 = vand.u32 4294901760, %v16137_v28 }
0x19e5   :  { %v12333_v50 = vsub.f32 %v16137_v28, %v12332_v62 }
0x19e7   :  { %v12334_v63 = vand.u32 4294901760, %v12333_v50 }
0x19e9   :  { %14732 = vmatprep.mubr.f32.mxu0 %v12334_v63 }
0x1a42   :  { %v12209_v1 = vpop.xlane.xlu1 %12208 }
0x1a43   :  { %v12211_v0 = vmul.f32 0.032258064, %v12209_v1 }
0x1a45   :  { %14968 = vrsqrt.f32 %v12211_v0  ;;  %vm12221_vm15 = vcmp.eq.f32.partialorder %v12211_v0, inf  ;;  %v12224_v55 = vand.u32 2147483648, %v12211_v0  ;;  %vm12223_vm1 = vcmp.eq.f32.partialorder %v12211_v0, 0.0 }
0x1a52   :  { %v14969_v47 = vpop.eup %14968 }
0x1a53   :  { %v12220_v3 = vmul.f32 %v14969_v47, %v12211_v0 }
0x1a55   :  { %v12222_v6 = vsel %vm12221_vm15, %v12211_v0, %v12220_v3 }
0x1a56   :  { %v12225_v14 = vsel %vm12223_vm1, %v12224_v55, %v12222_v6  ;;  %v13414_v6 = vld [vmem:[%s16402_s7 + $0x20] ss:$0 sm:$0xff] }
0x1a57   :  { %v12227_v43 = vadd.f32 1e-06, %v12225_v14 }
0x1a59   :  { %14970 = vrcp.f32 %v12227_v43 }
0x1a66   :  { %v14971_v5 = vpop.eup %14970 }
0x1a67   :  { %v12239_v7 = vmul.f32 %v14971_v5, %v12237_v39 }
0x1a69   :  { %v12245_v54 = vadd.f32 %v16081_v30, %v12239_v7  ;;  %v12924_v30 = vsub.f32 %v16201_v10, %v16211_v21 }
0x1a6b   :  { %v12259_v59 = vsel %vm38_vm0, %v12245_v54, 0  ;;  %v12925_v38 = vand.u32 4294901760, %v12924_v30 }
0x1a6c   :  { %v12340_v51 = vand.u32 4294901760, %v12259_v59 }
0x1a6e   :  { %v12341_v16 = vsub.f32 %v12259_v59, %v12340_v51  ;;  %14744 = vmatmul.mubr.f32.vlgmr.msra.gmra.mxu1 %v12340_v51 }
0x1a6f   :  { %14758 = vmatpush3.msra.mxu1 %v16092_v46  ;;  %14765 = vmatprep.mubr.f32.mxu1 %v12332_v62 }
0x1a70   :  { %14759 = vmatprep.subr.mxu1 %v16094_v11  ;;  %v12342_v17 = vand.u32 4294901760, %v12341_v16 }
0x1a71   :  { %14760 = vmatpush3.msra.mxu1 %v16094_v11 }
0x1a72   :  { %14761 = vmatprep.subr.mxu1 %v16096_v42  ;;  %v12343_v2 = vsub.f32 %v12341_v16, %v12342_v17 }
0x1a73   :  { %14762 = vmatpush3.msra.mxu1 %v16096_v42 }
0x1a74   :  { %14763 = vmatprep.subr.mxu1 %v16102_v44  ;;  %v12344_v18 = vand.u32 4294901760, %v12343_v2 }
0x1a75   :  { %14764 = vmatpush3.msra.mxu1 %v16102_v44 }
0x1a76   :  { %14766 = vmatmul.mubr.f32.vlgmr.msra.gmra.mxu1 %v12342_v17  ;;  %14779 = vmatprep.subr.mxu1 %v16092_v46 }
0x1a77   :  { %14733 = vmatmul.mubr.f32.vlgmr.msra.gmra.mxu0 %v12344_v18  ;;  %14780 = vmatpush3.msra.mxu1 %v16092_v46  ;;  %v12931_v46 = vsub.f32 %v16214_v23, %v16226_v36 }
0x1a78   :  { %14747 = vmatpush3.msra.mxu0 %v16105_v40  ;;  %14787 = vmatprep.mubr.f32.mxu1 %v16119_v56 }
0x1a79   :  { %14748 = vmatprep.subr.mxu0 %v16108_v45  ;;  %14754 = vmatprep.mubr.f32.mxu0 %v16137_v28  ;;  %v12791_v28 = vld [vmem:[%s16403_s8] sm:$0xff] }
0x1a7a   :  { %14781 = vmatprep.subr.mxu1 %v16094_v11  ;;  %14749 = vmatpush3.msra.mxu0 %v16108_v45  ;;  %v16288_v62 = vand.u32 4294901760, %v12791_v28 }
0x1a7b   :  { %14782 = vmatpush3.msra.mxu1 %v16094_v11  ;;  %14750 = vmatprep.subr.mxu0 %v16111_v52  ;;  %v16241_v11 = vand.u32 4294901760, %v16229_v33 }
0x1a7c   :  { %14783 = vmatprep.subr.mxu1 %v16096_v42  ;;  %14751 = vmatpush3.msra.mxu0 %v16111_v52  ;;  %v16258_v52 = vand.u32 4294901760, %v12793_v35  ;;  %v16300_v50 = vsub.f32 %v12791_v28, %v16288_v62 }
0x1a7d   :  { %14784 = vmatpush3.msra.mxu1 %v16096_v42  ;;  %14752 = vmatprep.subr.mxu0 %v16116_v20  ;;  %v16244_v42 = vsub.f32 %v12795_v61, %v16231_v37  ;;  %v12938_v40 = vsub.f32 %v16229_v33, %v16241_v11 }
0x1a7e   :  { %14785 = vmatprep.subr.mxu1 %v16102_v44  ;;  %14753 = vmatpush3.msra.mxu0 %v16116_v20  ;;  %v12792_v20 = vld [vmem:[%s16403_s8 + $0x8] sm:$0xff]  ;;  %v16307_v1 = vand.u32 4294901760, %v16300_v50 }
0x1a7f   :  { %14786 = vmatpush3.msra.mxu1 %v16102_v44  ;;  %14755 = vmatmul.mubr.f32.vlgmr.msra.gmra.mxu0 %v12341_v16  ;;  %v12932_v44 = vand.u32 4294901760, %v12931_v46  ;;  %v16256_v45 = vand.u32 4294901760, %v16244_v42 }
0x1a80   :  { %14768 = vmatprep.subr.mxu0 %v16122_v13  ;;  %14788 = vmatmul.mubr.f32.vlgmr.msra.gmra.mxu1 %v12340_v51  ;;  %v12973_v47 = vsub.f32 %v16300_v50, %v16307_v1 }
0x1a81   :  { %14769 = vmatpush3.msra.mxu0 %v16122_v13  ;;  %14776 = vmatprep.mubr.f32.mxu0 %v16119_v56  ;;  %v12939_v56 = vand.u32 4294901760, %v12938_v40  ;;  %v12945_v13 = vsub.f32 %v16244_v42, %v16256_v45 }
0x1a82   :  { %14770 = vmatprep.subr.mxu0 %v16125_v57  ;;  %14809 = vmatprep.subr.mxu1 %v12925_v38  ;;  %v12974_v3 = vand.u32 4294901760, %v12973_v47 }
0x1a83   :  { %14771 = vmatpush3.msra.mxu0 %v16125_v57  ;;  %14810 = vmatpush3.msra.mxu1 %v12925_v38  ;;  %v16270_v57 = vsub.f32 %v12793_v35, %v16258_v52  ;;  %v12946_v60 = vand.u32 4294901760, %v12945_v13 }
0x1a84   :  { %14772 = vmatprep.subr.mxu0 %v16128_v58  ;;  %14811 = vmatprep.subr.mxu1 %v12932_v44 }
0x1a85   :  { %14773 = vmatpush3.msra.mxu0 %v16128_v58  ;;  %v16272_v58 = vand.u32 4294901760, %v12792_v20  ;;  %14812 = vmatpush3.msra.mxu1 %v12932_v44  ;;  %v16283_v53 = vand.u32 4294901760, %v16270_v57 }
0x1a86   :  { %14774 = vmatprep.subr.mxu0 %v16132_v29  ;;  %14813 = vmatprep.subr.mxu1 %v12939_v56 }
0x1a87   :  { %14775 = vmatpush3.msra.mxu0 %v16132_v29  ;;  %v16276_v29 = vand.u32 4294901760, %v16261_v12  ;;  %v16286_v24 = vsub.f32 %v12792_v20, %v16272_v58  ;;  %14814 = vmatpush3.msra.mxu1 %v12939_v56  ;;  %v12959_v49 = vsub.f32 %v16270_v57, %v16283_v53 }
0x1a88   :  { %14777 = vmatmul.mubr.f32.vlgmr.msra.gmra.mxu0 %v12340_v51  ;;  %14790 = vmatprep.subr.mxu0 %v16195_v8 }
0x1a89   :  { %14791 = vmatpush3.msra.mxu0 %v16195_v8  ;;  %v12952_v41 = vsub.f32 %v16261_v12, %v16276_v29  ;;  %14815 = vmatprep.subr.mxu1 %v12946_v60  ;;  %v16297_v26 = vand.u32 4294901760, %v16286_v24  ;;  %v12960_v63 = vand.u32 4294901760, %v12959_v49 }
0x1a8a   :  { %14792 = vmatprep.subr.mxu0 %v16203_v32  ;;  %14816 = vmatpush3.msra.mxu1 %v12946_v60 }
0x1a8b   :  { %14793 = vmatpush3.msra.mxu0 %v16203_v32  ;;  %v12953_v15 = vand.u32 4294901760, %v12952_v41  ;;  %v12966_v25 = vsub.f32 %v16286_v24, %v16297_v26 }
0x1a8c   :  { %14794 = vmatprep.subr.mxu0 %v16216_v27 }
0x1a8d   :  { %14795 = vmatpush3.msra.mxu0 %v16216_v27  ;;  %14817 = vmatprep.subr.mxu1 %v12953_v15  ;;  %v12967_v0 = vand.u32 4294901760, %v12966_v25 }
0x1a8e   :  { %14796 = vmatprep.subr.mxu0 %v16231_v37  ;;  %14818 = vmatpush3.msra.mxu1 %v12953_v15 }
0x1a8f   :  { %14797 = vmatpush3.msra.mxu0 %v16231_v37  ;;  %14819 = vmatprep.subr.mxu1 %v12960_v63 }
0x1a90   :  { %14798 = vmatprep.subr.mxu0 %v16247_v22  ;;  %14820 = vmatpush3.msra.mxu1 %v12960_v63 }
0x1a91   :  { %14799 = vmatpush3.msra.mxu0 %v16247_v22  ;;  %14821 = vmatprep.subr.mxu1 %v12967_v0 }
0x1a92   :  { %14800 = vmatprep.subr.mxu0 %v16258_v52  ;;  %14822 = vmatpush3.msra.mxu1 %v12967_v0 }
0x1a93   :  { %14801 = vmatpush3.msra.mxu0 %v16258_v52  ;;  %14823 = vmatprep.subr.mxu1 %v12974_v3 }
0x1a94   :  { %14802 = vmatprep.subr.mxu0 %v16272_v58  ;;  %14824 = vmatpush3.msra.mxu1 %v12974_v3 }
0x1a95   :  { %14803 = vmatpush3.msra.mxu0 %v16272_v58  ;;  %14847 = vmatprep.subr.mxu1 %v16195_v8 }
0x1a96   :  { %14804 = vmatprep.subr.mxu0 %v16288_v62 }
0x1a97   :  { %14805 = vmatpush3.msra.mxu0 %v16288_v62 }
0x1a98   :  { %14828 = vmatprep.subr.mxu0 %v16201_v10 }
0x1b2e   :  { %v14745_v14 = vpop.f32.mrf.mxu1 }
0x1b30   :  { %v12437_v54 = vpop.f32.mrf.mxu1 }
0x1b36   :  { %v14767_v51 = vpop.f32.mrf.mxu1 }
0x1b37   :  { %v14734_v55 = vpop.f32.mrf.mxu0 }
0x1b38   :  { %v12347_v39 = vadd.f32 %v14734_v55, %v13414_v6  ;;  %v12607_v34 = vpop.f32.mrf.mxu1 }
0x1b39   :  { %v12336_v43 = vpop.f32.mrf.mxu0 }
0x1b3a   :  { %v12337_v5 = vadd.f32 %v13414_v6, %v12336_v43  ;;  %v12444_v59 = vadd.f32 %v14745_v14, %v12347_v39 }
0x1b3c   :  { %v12438_v2 = vadd.f32 %v12437_v54, %v12337_v5 }
0x1b3f   :  { %v14756_v7 = vpop.f32.mrf.mxu0 }
0x1b40   :  { %v12531_v17 = vadd.f32 %v14756_v7, %v12444_v59  ;;  %v14789_v19 = vpop.f32.mrf.mxu1 }
0x1b41   :  { %v12523_v16 = vpop.f32.mrf.mxu0 }
0x1b42   :  { %v12524_v18 = vadd.f32 %v12523_v16, %v12438_v2  ;;  %v12616_v9 = vadd.f32 %v14767_v51, %v12531_v17  ;;  %v12779_v44 = vpop.f32.mrf.mxu1 }
0x1b44   :  { %v12608_v31 = vadd.f32 %v12607_v34, %v12524_v18 }
0x1b48   :  { %v14778_v61 = vpop.f32.mrf.mxu0 }
0x1b49   :  { %v12705_v30 = vadd.f32 %v14778_v61, %v12616_v9 }
0x1b4a   :  { %v12698_v38 = vpop.f32.mrf.mxu0 }
0x1b4b   :  { %v12786_v46 = vadd.f32 %v14789_v19, %v12705_v30  ;;  %v12699_v35 = vadd.f32 %v12698_v38, %v12608_v31 }
0x1b4d   :  { %v12790_v40 = vmax.f32 %v12786_v46, 0.0  ;;  %v12780_v20 = vadd.f32 %v12779_v44, %v12699_v35 }
0x1b4f   :  { %v12809_v56 = vsel %vm12804_vm2, %v12790_v40, 0  ;;  %v12789_v13 = vmax.f32 %v12780_v20, 0.0 }
0x1b50   :  { %v16317_v28 = vand.u32 4294901760, %v12809_v56 }
0x1b51   :  { %v12806_v60 = vsel %vm12804_vm2, %v12789_v13, 0 }
0x1b52   :  { %v12895_v41 = vsub.f32 %v12809_v56, %v16317_v28  ;;  %v12884_v49 = vand.u32 4294901760, %v12806_v60 }
0x1b54   :  { %v12896_v15 = vand.u32 4294901760, %v12895_v41  ;;  %v12885_v63 = vsub.f32 %v12806_v60, %v12884_v49  ;;  %14825 = vmatprep.mubr.f32.mxu1 %v12884_v49 }
0x1b55   :  { %14826 = vmatmul.mubr.f32.vlgmr.msra.gmra.mxu1 %v16317_v28 }
0x1b56   :  { %14848 = vmatpush3.msra.mxu1 %v16195_v8  ;;  %v12886_v25 = vand.u32 4294901760, %v12885_v63  ;;  %v12897_v0 = vsub.f32 %v12895_v41, %v12896_v15 }
0x1b57   :  { %14849 = vmatprep.subr.mxu1 %v16203_v32 }
0x1b58   :  { %14850 = vmatpush3.msra.mxu1 %v16203_v32  ;;  %14863 = vmatprep.mubr.f32.mxu1 %v12886_v25  ;;  %v12887_v47 = vsub.f32 %v12885_v63, %v12886_v25  ;;  %v12898_v55 = vand.u32 4294901760, %v12897_v0 }
0x1b59   :  { %14851 = vmatprep.subr.mxu1 %v16216_v27 }
0x1b5a   :  { %14852 = vmatpush3.msra.mxu1 %v16216_v27  ;;  %v12888_v3 = vand.u32 4294901760, %v12887_v47 }
0x1b5b   :  { %14853 = vmatprep.subr.mxu1 %v16231_v37 }
0x1b5c   :  { %14854 = vmatpush3.msra.mxu1 %v16231_v37  ;;  %14806 = vmatprep.mubr.f32.mxu0 %v12888_v3 }
0x1b5d   :  { %14855 = vmatprep.subr.mxu1 %v16247_v22  ;;  %14807 = vmatmul.mubr.f32.vlgmr.msra.gmra.mxu0 %v12898_v55 }
0x1b5e   :  { %14829 = vmatpush3.msra.mxu0 %v16201_v10  ;;  %14856 = vmatpush3.msra.mxu1 %v16247_v22  ;;  %v13415_v10 = vld [vmem:[%s16403_s8 + $0x40] ss:$0 sm:$0xff]  ;;  %s15006_s8 = smov [#allocation2]  }
0x1b5f   :  { %14830 = vmatprep.subr.mxu0 %v16214_v23  ;;  %14844 = vmatprep.mubr.f32.mxu0 %v12885_v63  ;;  %s13400_s15 = sshll.u32 %s15006_s8, 4  ;;  %s13401_s15 = int_to_ptr.vmem [resolvable:$true] %s13400_s15 }
0x1b60   :  { %14857 = vmatprep.subr.mxu1 %v16258_v52  ;;  %14831 = vmatpush3.msra.mxu0 %v16214_v23  ;;  %s14975_s5 = scalar_lea.vmem %s13401_s15, 256  ;;  %p14980_p1 = scmp.lt.s32.totalorder %s13401_s15, %s13401_s15 }
0x1b61   :  { %14858 = vmatpush3.msra.mxu1 %v16258_v52  ;;  %14832 = vmatprep.subr.mxu0 %v16229_v33  ;;  %p14976_p0 = scmp.ne.s32.totalorder %s13401_s15, %s14975_s5  ;;  %p14981_p2 = scmp.lt.s32.totalorder %s14975_s5, %s14975_s5 }
0x1b62   :  { %14859 = vmatprep.subr.mxu1 %v16272_v58  ;;  %14833 = vmatpush3.msra.mxu0 %v16229_v33 }
0x1b63   :  { %14860 = vmatpush3.msra.mxu1 %v16272_v58  ;;  %14834 = vmatprep.subr.mxu0 %v16244_v42  ;;  %p14982_p3 = por %p14981_p2, %p14980_p1 }
0x1b64   :  { %14861 = vmatprep.subr.mxu1 %v16288_v62  ;;  %14835 = vmatpush3.msra.mxu0 %v16244_v42 }
0x1b65   :  { %14862 = vmatpush3.msra.mxu1 %v16288_v62  ;;  %14836 = vmatprep.subr.mxu0 %v16261_v12  ;;  %p14983_p4 = pnand %p14982_p3, %p14976_p0 }
0x1b66   :  { %14864 = vmatmul.mubr.f32.vlgmr.msra.gmra.mxu1 %v12896_v15  ;;  %14885 = vmatprep.subr.mxu1 %v16195_v8 }
0x1b67   :  { %14837 = vmatpush3.msra.mxu0 %v16261_v12  ;;  %14886 = vmatpush3.msra.mxu1 %v16195_v8 }
0x1b68   :  { %14901 = vmatprep.mubr.f32.mxu1 %v12884_v49  ;;  %14838 = vmatprep.subr.mxu0 %v16270_v57 }
0x1b69   :  { %14887 = vmatprep.subr.mxu1 %v16203_v32  ;;  %14839 = vmatpush3.msra.mxu0 %v16270_v57 }
0x1b6a   :  { %14888 = vmatpush3.msra.mxu1 %v16203_v32  ;;  %14840 = vmatprep.subr.mxu0 %v16286_v24 }
0x1b6b   :  { %14889 = vmatprep.subr.mxu1 %v16216_v27  ;;  %14841 = vmatpush3.msra.mxu0 %v16286_v24 }
0x1b6c   :  { %14890 = vmatpush3.msra.mxu1 %v16216_v27  ;;  %14842 = vmatprep.subr.mxu0 %v16300_v50 }
0x1b6d   :  { %14891 = vmatprep.subr.mxu1 %v16231_v37  ;;  %14843 = vmatpush3.msra.mxu0 %v16300_v50 }
0x1b6e   :  { %14892 = vmatpush3.msra.mxu1 %v16231_v37  ;;  %14845 = vmatmul.mubr.f32.vlgmr.msra.gmra.mxu0 %v12895_v41 }
0x1b6f   :  { %14866 = vmatprep.subr.mxu0 %v16211_v21  ;;  %14893 = vmatprep.subr.mxu1 %v16247_v22 }
0x1b70   :  { %14867 = vmatpush3.msra.mxu0 %v16211_v21  ;;  %14882 = vmatprep.mubr.f32.mxu0 %v12884_v49 }
0x1b71   :  { %14894 = vmatpush3.msra.mxu1 %v16247_v22  ;;  %14868 = vmatprep.subr.mxu0 %v16226_v36 }
0x1b72   :  { %14895 = vmatprep.subr.mxu1 %v16258_v52  ;;  %14869 = vmatpush3.msra.mxu0 %v16226_v36 }
0x1b73   :  { %14896 = vmatpush3.msra.mxu1 %v16258_v52  ;;  %14870 = vmatprep.subr.mxu0 %v16241_v11 }
0x1b74   :  { %14897 = vmatprep.subr.mxu1 %v16272_v58  ;;  %14871 = vmatpush3.msra.mxu0 %v16241_v11 }
0x1b75   :  { %14898 = vmatpush3.msra.mxu1 %v16272_v58  ;;  %14872 = vmatprep.subr.mxu0 %v16256_v45 }
0x1b76   :  { %14899 = vmatprep.subr.mxu1 %v16288_v62  ;;  %14873 = vmatpush3.msra.mxu0 %v16256_v45 }
0x1b77   :  { %14900 = vmatpush3.msra.mxu1 %v16288_v62  ;;  %14874 = vmatprep.subr.mxu0 %v16276_v29 }
0x1b78   :  { %14902 = vmatmul.mubr.f32.vlgmr.msra.gmra.mxu1 %v16317_v28  ;;  %14875 = vmatpush3.msra.mxu0 %v16276_v29 }
0x1b79   :  { %14876 = vmatprep.subr.mxu0 %v16283_v53 }
0x1b7a   :  { %14877 = vmatpush3.msra.mxu0 %v16283_v53 }
0x1b7b   :  { %14878 = vmatprep.subr.mxu0 %v16297_v26 }
0x1b7c   :  { %14879 = vmatpush3.msra.mxu0 %v16297_v26 }
0x1b7d   :  { %14880 = vmatprep.subr.mxu0 %v16307_v1 }
0x1b7e   :  { %14881 = vmatpush3.msra.mxu0 %v16307_v1 }
0x1b7f   :  { %14883 = vmatmul.mubr.f32.vlgmr.msra.gmra.mxu0 %v16317_v28 }
0x1c15   :  { %v14827_v32 = vpop.f32.mrf.mxu1 }
0x1c17   :  { %v13011_v33 = vpop.f32.mrf.mxu1 }
0x1c1d   :  { %v14808_v8 = vpop.f32.mrf.mxu0 }
0x1c1e   :  { %v12901_v23 = vadd.f32 %v14808_v8, %v13415_v10 }
0x1c1f   :  { %v12890_v21 = vpop.f32.mrf.mxu0 }
0x1c20   :  { %v12891_v36 = vadd.f32 %v13415_v10, %v12890_v21  ;;  %v13018_v37 = vadd.f32 %v14827_v32, %v12901_v23 }
0x1c22   :  { %v13012_v45 = vadd.f32 %v13011_v33, %v12891_v36 }
0x1c26   :  { %v14865_v11 = vpop.f32.mrf.mxu1 }
0x1c28   :  { %v13193_v12 = vpop.f32.mrf.mxu1 }
0x1c2e   :  { %v14846_v27 = vpop.f32.mrf.mxu0 }
0x1c2f   :  { %v13113_v22 = vadd.f32 %v14846_v27, %v13018_v37 }
0x1c30   :  { %v13105_v42 = vpop.f32.mrf.mxu0 }
0x1c31   :  { %v13106_v52 = vadd.f32 %v13105_v42, %v13012_v45  ;;  %v13202_v57 = vadd.f32 %v14865_v11, %v13113_v22 }
0x1c33   :  { %v13194_v24 = vadd.f32 %v13193_v12, %v13106_v52 }
0x1c38   :  { %v14903_v58 = vpop.f32.mrf.mxu1 }
0x1c3a   :  { %v13381_v1 = vpop.f32.mrf.mxu1 }
0x1c3f   :  { %v14884_v29 = vpop.f32.mrf.mxu0 }
0x1c40   :  { %v13303_v53 = vadd.f32 %v14884_v29, %v13202_v57 }
0x1c41   :  { %v13296_v62 = vpop.f32.mrf.mxu0 }
0x1c42   :  { %v13388_v26 = vadd.f32 %v14903_v58, %v13303_v53  ;;  %v13297_v50 = vadd.f32 %v13296_v62, %v13194_v24 }
0x1c44   :  { %v13392_v6 = vadd.f32 %v13388_v26, %v16062_v4  ;;  %v13382_v14 = vadd.f32 %v13381_v1, %v13297_v50 }
0x1c46   :  { %13394 = vst.msk [vmem:[#allocation2 + $0x8] sm:$0xff] %vm38_vm0, %v13392_v6  ;;  %v13391_v43 = vadd.f32 %v13382_v14, %v16011_v48 }
0x1c48   :  { %13393 = vst.msk [vmem:[#allocation2] sm:$0xff] %vm38_vm0, %v13391_v43 }
0x1c49   :  { %14986 = shalt.err (!%p14983_p4)
}
0x1c4a   :  { %s15007_s16 = smov 128   ;;  %s15008_s1 = smov 8  }
0x1c4b   :  { %13406 = dma.vmem_to_hbm [thread:$0]  %s13401_s15, 256, %s16404_s9, [#allocation3], %s15007_s16, %s15007_s16, %s15008_s1  }
0x1c4c   :  { %14995 = dma.done.wait [#allocation3], 256  }
0x1c4d   :  { %14996 = vsyncadd [#allocation3], 4294967040 }
0x1c4e   :  { %13410 = vsyncpa [#allocation3], 1 }

</bundles_post_ra>
